<compile_context>
chip_gen: v7x
topology: tpu7x:2x2x1
jax: 0.10.0
libtpu: 0.0.40
codegen_flags: <defaults>
</compile_context>

<pallas_src>
import functools

import jax
import jax.numpy as jnp
from jax.experimental import pallas as pl
from jax.experimental.pallas import tpu as pltpu

LEAKY_SLOPE = 0.2
IN_EPS = 1e-5  # PyTorch InstanceNorm2d default eps
VMEM_LIMIT = 32 * 1024 * 1024  # explicit, fits v5e/v6e/v7x scoped limits


# ---------------------------------------------------------------------------
# Grid-shape heuristic: how many samples to fold into one grid step
# ---------------------------------------------------------------------------
def _choose_samples_per_step(n, m_rows, target_m=256):
    """Pick B (divides n) so that the (B*m_rows, K) block is sublane-aligned
    (or covers the whole array), prefers >=2 grid steps (v7x has 2 TCs), and
    then an MXU-friendly M."""
    best = None
    for b in range(1, n + 1):
        if n % b:
            continue
        m = b * m_rows
        if (m % 8) and b != n:          # would need a masked / illegal block
            continue
        steps = n // b
        score = (
            m % 8 != 0,                 # unaligned (only possible when b == n)
            steps < 2 <= n,             # single step although >=2 were possible
            m < target_m,               # below MXU-friendly M
            b,                          # otherwise prefer more parallel steps
        )
        if best is None or score < best[0]:
            best = (score, b)
    return best[1]


# ---------------------------------------------------------------------------
# Pallas kernels
# ---------------------------------------------------------------------------
def _conv_block_kernel(p_ref, w_ref, b_ref, o_ref, *, normalize, b_samples, m_rows):
    """One group of `b_samples` samples per grid step.

    p_ref: (B*M, K)   im2col patches (bf16), rows grouped per sample
    w_ref: (K, C_out) conv weight as GEMM matrix (bf16, (kh, kw, c_in) K-order)
    b_ref: (1, C_out) bias (f32)
    o_ref: (B*M, C_out) bf16 output (NHWC rows, channels lane-dense)

    out = LeakyReLU_{0.2}(p @ w + b); if normalize: per-sample InstanceNorm
    over the M rows of each sample (biased var, eps=1e-5, no affine).
    """
    acc = jnp.dot(p_ref[...], w_ref[...], preferred_element_type=jnp.float32)
    acc = acc + b_ref[...]
    acc = jnp.maximum(acc, LEAKY_SLOPE * acc)                  # LeakyReLU(0.2)
    if normalize:
        if b_samples == 1:
            mean = jnp.mean(acc, axis=0, keepdims=True)        # [1, C_out]
            var = jnp.mean(acc * acc, axis=0, keepdims=True) - mean * mean
            acc = (acc - mean) * jax.lax.rsqrt(var + IN_EPS)
        else:
            parts = []
            for s in range(b_samples):                         # static unroll
                a = acc[s * m_rows:(s + 1) * m_rows, :]
                mean = jnp.mean(a, axis=0, keepdims=True)
                var = jnp.mean(a * a, axis=0, keepdims=True) - mean * mean
                parts.append((a - mean) * jax.lax.rsqrt(var + IN_EPS))
            acc = jnp.concatenate(parts, axis=0)
    o_ref[...] = acc.astype(o_ref.dtype)


def _block4_head_kernel(p_ref, w_ref, b_ref, fcw_ref, fcb_ref, o_ref, *, m_rows):
    """Block 4 (Conv -> LeakyReLU -> InstanceNorm) fused with Linear+Softmax.

    p_ref:   (1, M, K)        one sample's im2col patches (bf16)
    w_ref:   (K, 512)         conv weight (bf16)
    b_ref:   (1, 512)         conv bias (f32)
    fcw_ref: (M, 512, NP)     fc weight, (h,w)-row major, class-padded (f32)
    fcb_ref: (1, NP)          fc bias, pads = -1e30 (f32)
    o_ref:   (1, 1, NP)       softmax probabilities
    """
    acc = jnp.dot(p_ref[0], w_ref[...], preferred_element_type=jnp.float32)
    acc = acc + b_ref[...]
    acc = jnp.maximum(acc, LEAKY_SLOPE * acc)                  # LeakyReLU(0.2)
    mean = jnp.mean(acc, axis=0, keepdims=True)
    var = jnp.mean(acc * acc, axis=0, keepdims=True) - mean * mean
    acc = (acc - mean) * jax.lax.rsqrt(var + IN_EPS)           # [M, 512] f32

    logits = fcb_ref[...]                                      # [1, NP]
    for r in range(m_rows):                                    # static unroll
        logits = logits + jnp.dot(acc[r:r + 1, :], fcw_ref[r],
                                  preferred_element_type=jnp.float32)
    m = jnp.max(logits, axis=-1, keepdims=True)
    e = jnp.exp(logits - m)
    o_ref[0] = (e / jnp.sum(e, axis=-1, keepdims=True)).astype(o_ref.dtype)


# ---------------------------------------------------------------------------
# pallas_call wrappers
# ---------------------------------------------------------------------------
def conv_block_gemm(patches_flat, w_mat, b_row, normalize, n, m_rows):
    """patches_flat: [N*M, K] bf16, w_mat: [K, C_out] bf16, b_row: [1, C_out] f32."""
    total_m, k = patches_flat.shape
    c_out = w_mat.shape[1]
    b = _choose_samples_per_step(n, m_rows)
    bm = b * m_rows
    steps = n // b
    kernel = functools.partial(_conv_block_kernel, normalize=normalize,
                               b_samples=b, m_rows=m_rows)
    return pl.pallas_call(
        kernel,
        out_shape=jax.ShapeDtypeStruct((total_m, c_out), jnp.bfloat16),
        grid=(steps,),
        in_specs=[
            pl.BlockSpec((bm, k), lambda i: (i, 0)),
            pl.BlockSpec((k, c_out), lambda i: (0, 0)),
            pl.BlockSpec((1, c_out), lambda i: (0, 0)),
        ],
        out_specs=pl.BlockSpec((bm, c_out), lambda i: (i, 0)),
        compiler_params=pltpu.CompilerParams(
            dimension_semantics=("parallel",),      # v7x: 2 TCs split the steps
            vmem_limit_bytes=VMEM_LIMIT,
        ),
    )(patches_flat, w_mat, b_row)


def block4_head_call(patches, w_mat, b_row, fcw3, fcb_pad):
    """patches: [N, M, K] bf16.  Returns softmax probabilities [N, NP] (f32)."""
    n, m_rows, k = patches.shape
    c_out = w_mat.shape[1]
    n_pad = fcw3.shape[-1]
    kernel = functools.partial(_block4_head_kernel, m_rows=m_rows)
    out = pl.pallas_call(
        kernel,
        out_shape=jax.ShapeDtypeStruct((n, 1, n_pad), jnp.float32),
        grid=(n,),
        in_specs=[
            pl.BlockSpec((1, m_rows, k), lambda i: (i, 0, 0)),
            pl.BlockSpec((k, c_out), lambda i: (0, 0)),
            pl.BlockSpec((1, c_out), lambda i: (0, 0)),
            pl.BlockSpec((m_rows, c_out, n_pad), lambda i: (0, 0, 0)),
            pl.BlockSpec((1, n_pad), lambda i: (0, 0)),
        ],
        out_specs=pl.BlockSpec((1, 1, n_pad), lambda i: (i, 0, 0)),
        compiler_params=pltpu.CompilerParams(
            dimension_semantics=("parallel",),
            vmem_limit_bytes=VMEM_LIMIT,
        ),
    )(patches, w_mat, b_row, fcw3, fcb_pad)
    return out.reshape(n, n_pad)


# ---------------------------------------------------------------------------
# JAX glue: NHWC im2col, conv blocks, forward
# ---------------------------------------------------------------------------
def im2col_nhwc(x, k=3, stride=2, pad=1):
    """x: [N, H, W, C] -> patches [N, Ho*Wo, k*k*C] with K-ordering (kh, kw, c)."""
    n, h, w, c = x.shape
    xp = jnp.pad(x, ((0, 0), (pad, pad), (pad, pad), (0, 0)))
    ho = (h + 2 * pad - k) // stride + 1
    wo = (w + 2 * pad - k) // stride + 1
    taps = []
    for i in range(k):
        for j in range(k):
            taps.append(xp[:, i:i + stride * ho:stride, j:j + stride * wo:stride, :])
    pat = jnp.stack(taps, axis=3)                  # [N, Ho, Wo, 9, C]
    return pat.reshape(n, ho * wo, k * k * c), ho, wo


def conv_block(x_nhwc, w_mat, b_row, normalize):
    """Conv2d(3x3, s2, p1) -> LeakyReLU(0.2) -> [InstanceNorm2d], fused kernel."""
    n = x_nhwc.shape[0]
    c_out = w_mat.shape[1]
    patches, ho, wo = im2col_nhwc(x_nhwc)                      # bf16
    m_rows = ho * wo
    patches = patches.reshape(n * m_rows, -1)                  # flat M rows
    out = conv_block_gemm(patches, w_mat, b_row, normalize, n, m_rows)
    return out.reshape(n, ho, wo, c_out)                       # NHWC, no transpose


@functools.partial(jax.jit, static_argnums=(2,))
def classifier_forward(params, img_nchw, n_classes):
    x = jnp.transpose(img_nchw, (0, 2, 3, 1)).astype(jnp.bfloat16)  # NCHW->NHWC once
    x = conv_block(x, params["w1"], params["b1"], normalize=False)
    x = conv_block(x, params["w2"], params["b2"], normalize=True)
    x = conv_block(x, params["w3"], params["b3"], normalize=True)
    # block 4 + Linear + Softmax fused into one kernel
    patches, _, _ = im2col_nhwc(x)                             # [N, M, K] bf16
    probs = block4_head_call(patches, params["w4"], params["b4"],
                             params["fc_w"], params["fc_b"])
    return probs[:, :n_classes]


# ---------------------------------------------------------------------------
# Parameters: PyTorch layout -> kernel layout (done once, outside jit)
# ---------------------------------------------------------------------------
def init_pt_params(key, channels, img_size, n_classes):
    """Parameters in PyTorch layout: conv [C_out, C_in, 3, 3], fc [n_cls, K]."""
    ks = jax.random.split(key, 10)

    def conv_w(k, co, ci):
        return jax.random.normal(k, (co, ci, 3, 3), jnp.float32) * 0.05

    def bias(k, co):
        return jax.random.normal(k, (co,), jnp.float32) * 0.01

    s = img_size // (2 ** 4)
    fc_in = 512 * s * s
    return {
        "w1": conv_w(ks[0], 64, channels),  "b1": bias(ks[1], 64),
        "w2": conv_w(ks[2], 128, 64),       "b2": bias(ks[3], 128),
        "w3": conv_w(ks[4], 256, 128),      "b3": bias(ks[5], 256),
        "w4": conv_w(ks[6], 512, 256),      "b4": bias(ks[7], 512),
        "fc_w": jax.random.normal(ks[8], (n_classes, fc_in), jnp.float32) * 0.02,
        "fc_b": jax.random.normal(ks[9], (n_classes,), jnp.float32) * 0.01,
    }


def convert_params(pt, n_classes):
    """One-time conversion to the kernel-friendly layout (NHWC / lane-dense / bf16)."""
    def conv_mat(w):  # [C_out, C_in, 3, 3] -> [9*C_in, C_out], K-order (kh, kw, c)
        c_out = w.shape[0]
        return jnp.transpose(w, (2, 3, 1, 0)).reshape(-1, c_out).astype(jnp.bfloat16)

    p = {}
    for i in (1, 2, 3, 4):
        p[f"w{i}"] = conv_mat(pt[f"w{i}"])
        p[f"b{i}"] = pt[f"b{i}"].reshape(1, -1).astype(jnp.float32)

    # PyTorch fc_w contracts against a NCHW flatten (c, h, w); the fused head
    # contracts acc[r=(h,w), c] against fcw3[r, c, class].  Permute once, pad
    # the class dim to 128 lanes (weight pad = 0, bias pad = -1e30 => softmax 0).
    fc_w = pt["fc_w"]
    n_cls = fc_w.shape[0]
    s = int(round((fc_w.shape[1] // 512) ** 0.5))
    fcw3 = (fc_w.reshape(n_cls, 512, s, s)
                 .transpose(2, 3, 1, 0)            # [h, w, c, class]
                 .reshape(s * s, 512, n_cls))      # [r, c, class]
    n_pad = ((n_classes + 127) // 128) * 128
    w_pad = jnp.zeros((s * s, 512, n_pad), jnp.float32).at[..., :n_classes].set(fcw3)
    b_pad = jnp.full((1, n_pad), -1e30, jnp.float32).at[0, :n_classes].set(pt["fc_b"])
    p["fc_w"] = w_pad
    p["fc_b"] = b_pad
    return p


# ---------------------------------------------------------------------------
# Pure-JAX reference (PyTorch semantics) for a sanity check
# ---------------------------------------------------------------------------
@jax.jit
def reference_forward(pt_params, img_nchw):
    def block(x, w, b, normalize):
        y = jax.lax.conv_general_dilated(
            x, w, window_strides=(2, 2), padding=((1, 1), (1, 1)),
            dimension_numbers=("NCHW", "OIHW", "NCHW"),
            precision=jax.lax.Precision.HIGHEST)
        y = y + b.reshape(1, -1, 1, 1)
        y = jnp.maximum(y, LEAKY_SLOPE * y)
        if normalize:
            mean = jnp.mean(y, axis=(2, 3), keepdims=True)
            var = jnp.mean((y - mean) ** 2, axis=(2, 3), keepdims=True)
            y = (y - mean) * jax.lax.rsqrt(var + IN_EPS)
        return y

    x = block(img_nchw, pt_params["w1"], pt_params["b1"], False)
    x = block(x, pt_params["w2"], pt_params["b2"], True)
    x = block(x, pt_params["w3"], pt_params["b3"], True)
    x = block(x, pt_params["w4"], pt_params["b4"], True)
    feat = x.reshape(x.shape[0], -1)
    logits = jnp.dot(feat, pt_params["fc_w"].T,
                     precision=jax.lax.Precision.HIGHEST) + pt_params["fc_b"]
    return jax.nn.softmax(logits, axis=-1)


if __name__ == "__main__":
    # Small config consistent with the module (img_size >= 16 for 4 stride-2 convs).
    batch, channels, img_size, n_classes = 2, 4, 32, 10

    key = jax.random.PRNGKey(0)
    k_param, k_img = jax.random.split(key)
    pt_params = init_pt_params(k_param, channels, img_size, n_classes)
    params = convert_params(pt_params, n_classes)
    img = jax.random.normal(k_img, (batch, channels, img_size, img_size), jnp.float32)

    label = classifier_forward(params, img, n_classes)
    label = jax.block_until_ready(label)

    assert label.shape == (batch, n_classes), label.shape
    assert bool(jnp.all(jnp.isfinite(label)))
    # softmax rows must sum to 1
    assert bool(jnp.all(jnp.abs(jnp.sum(label, axis=-1) - 1.0) < 1e-4))

    # sanity check against a plain-JAX (f32, HIGHEST) reference of the module;
    # tolerance covers bf16 GEMM operands (accumulation / IN / softmax are f32).
    ref = jax.block_until_ready(reference_forward(pt_params, img))
    max_diff = float(jnp.max(jnp.abs(label - ref)))
    assert max_diff < 6e-2, f"mismatch vs reference: {max_diff}"

    print("KERNEL_OK")
</pallas_src>

<mosaic_0001>
module attributes {stable_mosaic.version = 11 : i64} {
  func.func @_conv_block_kernel(%arg0: i32, %arg1: memref<256x36xbf16, #tpu.memory_space<vmem>>, %arg2: memref<36x64xbf16, #tpu.memory_space<vmem>>, %arg3: memref<1x64xf32, #tpu.memory_space<vmem>>, %arg4: memref<256x64xbf16, #tpu.memory_space<vmem>>) attributes {dimension_semantics = [#tpu.dimension_semantics<parallel>], iteration_bounds = array<i64: 2>, scalar_prefetch = 0 : i64, scratch_operands = 0 : i64, tpu.core_type = #tpu.core_type<tc>, window_params = [{transform_indices = @transform_0, window_bounds = array<i64: 256, 36>}, {pipeline_mode = #tpu.pipeline_mode<synchronous>, transform_indices = @transform_1, window_bounds = array<i64: 36, 64>}, {pipeline_mode = #tpu.pipeline_mode<synchronous>, transform_indices = @transform_2, window_bounds = array<i64: 1, 64>}, {transform_indices = @transform_3, window_bounds = array<i64: 256, 64>}]} {
    %c0 = arith.constant 0 : index
    %c0_0 = arith.constant 0 : index
    %0 = vector.load %arg1[%c0, %c0_0] : memref<256x36xbf16, #tpu.memory_space<vmem>>, vector<256x36xbf16>
    %c0_1 = arith.constant 0 : index
    %c0_2 = arith.constant 0 : index
    %1 = vector.load %arg2[%c0_1, %c0_2] : memref<36x64xbf16, #tpu.memory_space<vmem>>, vector<36x64xbf16>
    %cst = arith.constant dense<0.000000e+00> : vector<256x64xf32>
    %2 = tpu.matmul %0, %1, %cst {dimension_numbers = #tpu.dot_dimension_numbers<[1], [0], [0], [1], [0, 0, 1, 1], [], []>} : vector<256x36xbf16>, vector<36x64xbf16>, vector<256x64xf32> -> vector<256x64xf32>
    %c0_3 = arith.constant 0 : index
    %c0_4 = arith.constant 0 : index
    %3 = vector.load %arg3[%c0_3, %c0_4] : memref<1x64xf32, #tpu.memory_space<vmem>>, vector<1x64xf32>
    %4 = vector.broadcast %3 : vector<1x64xf32> to vector<256x64xf32>
    %5 = arith.addf %2, %4 : vector<256x64xf32>
    %cst_5 = arith.constant 2.000000e-01 : f32
    %6 = vector.broadcast %cst_5 : f32 to vector<256x64xf32>
    %7 = arith.mulf %6, %5 : vector<256x64xf32>
    %8 = arith.maximumf %5, %7 : vector<256x64xf32>
    %9 = arith.truncf %8 : vector<256x64xf32> to vector<256x64xbf16>
    %c0_6 = arith.constant 0 : index
    %c0_7 = arith.constant 0 : index
    %10 = vector.load %arg4[%c0_6, %c0_7] : memref<256x64xbf16, #tpu.memory_space<vmem>>, vector<256x64xbf16>
    tpu.vector_store %arg4[%c0_6, %c0_7], %9 {strides = array<i32>} : memref<256x64xbf16, #tpu.memory_space<vmem>>, vector<256x64xbf16>,
    return
  }
  func.func @transform_0(%arg0: i32) -> (i32, i32) {
    %c0_i32 = arith.constant 0 : i32
    %c0_i32_0 = arith.constant 0 : i32
    return %arg0, %c0_i32 : i32, i32
  }
  func.func @transform_1(%arg0: i32) -> (i32, i32) {
    %c0_i32 = arith.constant 0 : i32
    %c0_i32_0 = arith.constant 0 : i32
    %c0_i32_1 = arith.constant 0 : i32
    return %c0_i32, %c0_i32_0 : i32, i32
  }
  func.func @transform_2(%arg0: i32) -> (i32, i32) {
    %c0_i32 = arith.constant 0 : i32
    %c0_i32_0 = arith.constant 0 : i32
    %c0_i32_1 = arith.constant 0 : i32
    return %c0_i32, %c0_i32_0 : i32, i32
  }
  func.func @transform_3(%arg0: i32) -> (i32, i32) {
    %c0_i32 = arith.constant 0 : i32
    %c0_i32_0 = arith.constant 0 : i32
    return %arg0, %c0_i32 : i32, i32
  }
}

module attributes {stable_mosaic.version = 11 : i64} {
  func.func @_conv_block_kernel(%arg0: i32, %arg1: memref<64x576xbf16, #tpu.memory_space<vmem>>, %arg2: memref<576x128xbf16, #tpu.memory_space<vmem>>, %arg3: memref<1x128xf32, #tpu.memory_space<vmem>>, %arg4: memref<64x128xbf16, #tpu.memory_space<vmem>>) attributes {dimension_semantics = [#tpu.dimension_semantics<parallel>], iteration_bounds = array<i64: 2>, scalar_prefetch = 0 : i64, scratch_operands = 0 : i64, tpu.core_type = #tpu.core_type<tc>, window_params = [{transform_indices = @transform_0, window_bounds = array<i64: 64, 576>}, {pipeline_mode = #tpu.pipeline_mode<synchronous>, transform_indices = @transform_1, window_bounds = array<i64: 576, 128>}, {pipeline_mode = #tpu.pipeline_mode<synchronous>, transform_indices = @transform_2, window_bounds = array<i64: 1, 128>}, {transform_indices = @transform_3, window_bounds = array<i64: 64, 128>}]} {
    %c0 = arith.constant 0 : index
    %c0_0 = arith.constant 0 : index
    %0 = vector.load %arg1[%c0, %c0_0] : memref<64x576xbf16, #tpu.memory_space<vmem>>, vector<64x576xbf16>
    %c0_1 = arith.constant 0 : index
    %c0_2 = arith.constant 0 : index
    %1 = vector.load %arg2[%c0_1, %c0_2] : memref<576x128xbf16, #tpu.memory_space<vmem>>, vector<576x128xbf16>
    %cst = arith.constant dense<0.000000e+00> : vector<64x128xf32>
    %2 = tpu.matmul %0, %1, %cst {dimension_numbers = #tpu.dot_dimension_numbers<[1], [0], [0], [1], [0, 0, 1, 1], [], []>} : vector<64x576xbf16>, vector<576x128xbf16>, vector<64x128xf32> -> vector<64x128xf32>
    %c0_3 = arith.constant 0 : index
    %c0_4 = arith.constant 0 : index
    %3 = vector.load %arg3[%c0_3, %c0_4] : memref<1x128xf32, #tpu.memory_space<vmem>>, vector<1x128xf32>
    %4 = vector.broadcast %3 : vector<1x128xf32> to vector<64x128xf32>
    %5 = arith.addf %2, %4 : vector<64x128xf32>
    %cst_5 = arith.constant 2.000000e-01 : f32
    %6 = vector.broadcast %cst_5 : f32 to vector<64x128xf32>
    %7 = arith.mulf %6, %5 : vector<64x128xf32>
    %8 = arith.maximumf %5, %7 : vector<64x128xf32>
    %cst_6 = arith.constant dense<0.000000e+00> : vector<128xf32>
    %9 = vector.multi_reduction <add>, %8, %cst_6 [0] : vector<64x128xf32> to vector<128xf32>
    %10 = vector.shape_cast %9 : vector<128xf32> to vector<1x128xf32>
    %cst_7 = arith.constant 6.400000e+01 : f32
    %11 = vector.broadcast %cst_7 : f32 to vector<1x128xf32>
    %12 = arith.divf %10, %11 : vector<1x128xf32>
    %13 = arith.mulf %8, %8 : vector<64x128xf32>
    %cst_8 = arith.constant dense<0.000000e+00> : vector<128xf32>
    %14 = vector.multi_reduction <add>, %13, %cst_8 [0] : vector<64x128xf32> to vector<128xf32>
    %15 = vector.shape_cast %14 : vector<128xf32> to vector<1x128xf32>
    %cst_9 = arith.constant 6.400000e+01 : f32
    %16 = vector.broadcast %cst_9 : f32 to vector<1x128xf32>
    %17 = arith.divf %15, %16 : vector<1x128xf32>
    %18 = arith.mulf %12, %12 : vector<1x128xf32>
    %19 = arith.subf %17, %18 : vector<1x128xf32>
    %20 = vector.broadcast %12 : vector<1x128xf32> to vector<64x128xf32>
    %21 = arith.subf %8, %20 : vector<64x128xf32>
    %cst_10 = arith.constant 9.99999974E-6 : f32
    %22 = vector.broadcast %cst_10 : f32 to vector<1x128xf32>
    %23 = arith.addf %19, %22 : vector<1x128xf32>
    %24 = math.rsqrt %23 : vector<1x128xf32>
    %25 = vector.broadcast %24 : vector<1x128xf32> to vector<64x128xf32>
    %26 = arith.mulf %21, %25 : vector<64x128xf32>
    %27 = arith.truncf %26 : vector<64x128xf32> to vector<64x128xbf16>
    %c0_11 = arith.constant 0 : index
    %c0_12 = arith.constant 0 : index
    %28 = vector.load %arg4[%c0_11, %c0_12] : memref<64x128xbf16, #tpu.memory_space<vmem>>, vector<64x128xbf16>
    tpu.vector_store %arg4[%c0_11, %c0_12], %27 {strides = array<i32>} : memref<64x128xbf16, #tpu.memory_space<vmem>>, vector<64x128xbf16>,
    return
  }
  func.func @transform_0(%arg0: i32) -> (i32, i32) {
    %c0_i32 = arith.constant 0 : i32
    %c0_i32_0 = arith.constant 0 : i32
    return %arg0, %c0_i32 : i32, i32
  }
  func.func @transform_1(%arg0: i32) -> (i32, i32) {
    %c0_i32 = arith.constant 0 : i32
    %c0_i32_0 = arith.constant 0 : i32
    %c0_i32_1 = arith.constant 0 : i32
    return %c0_i32, %c0_i32_0 : i32, i32
  }
  func.func @transform_2(%arg0: i32) -> (i32, i32) {
    %c0_i32 = arith.constant 0 : i32
    %c0_i32_0 = arith.constant 0 : i32
    %c0_i32_1 = arith.constant 0 : i32
    return %c0_i32, %c0_i32_0 : i32, i32
  }
  func.func @transform_3(%arg0: i32) -> (i32, i32) {
    %c0_i32 = arith.constant 0 : i32
    %c0_i32_0 = arith.constant 0 : i32
    return %arg0, %c0_i32 : i32, i32
  }
}

module attributes {stable_mosaic.version = 11 : i64} {
  func.func @_conv_block_kernel(%arg0: i32, %arg1: memref<16x1152xbf16, #tpu.memory_space<vmem>>, %arg2: memref<1152x256xbf16, #tpu.memory_space<vmem>>, %arg3: memref<1x256xf32, #tpu.memory_space<vmem>>, %arg4: memref<16x256xbf16, #tpu.memory_space<vmem>>) attributes {dimension_semantics = [#tpu.dimension_semantics<parallel>], iteration_bounds = array<i64: 2>, scalar_prefetch = 0 : i64, scratch_operands = 0 : i64, tpu.core_type = #tpu.core_type<tc>, window_params = [{transform_indices = @transform_0, window_bounds = array<i64: 16, 1152>}, {pipeline_mode = #tpu.pipeline_mode<synchronous>, transform_indices = @transform_1, window_bounds = array<i64: 1152, 256>}, {pipeline_mode = #tpu.pipeline_mode<synchronous>, transform_indices = @transform_2, window_bounds = array<i64: 1, 256>}, {transform_indices = @transform_3, window_bounds = array<i64: 16, 256>}]} {
    %c0 = arith.constant 0 : index
    %c0_0 = arith.constant 0 : index
    %0 = vector.load %arg1[%c0, %c0_0] : memref<16x1152xbf16, #tpu.memory_space<vmem>>, vector<16x1152xbf16>
    %c0_1 = arith.constant 0 : index
    %c0_2 = arith.constant 0 : index
    %1 = vector.load %arg2[%c0_1, %c0_2] : memref<1152x256xbf16, #tpu.memory_space<vmem>>, vector<1152x256xbf16>
    %cst = arith.constant dense<0.000000e+00> : vector<16x256xf32>
    %2 = tpu.matmul %0, %1, %cst {dimension_numbers = #tpu.dot_dimension_numbers<[1], [0], [0], [1], [0, 0, 1, 1], [], []>} : vector<16x1152xbf16>, vector<1152x256xbf16>, vector<16x256xf32> -> vector<16x256xf32>
    %c0_3 = arith.constant 0 : index
    %c0_4 = arith.constant 0 : index
    %3 = vector.load %arg3[%c0_3, %c0_4] : memref<1x256xf32, #tpu.memory_space<vmem>>, vector<1x256xf32>
    %4 = vector.broadcast %3 : vector<1x256xf32> to vector<16x256xf32>
    %5 = arith.addf %2, %4 : vector<16x256xf32>
    %cst_5 = arith.constant 2.000000e-01 : f32
    %6 = vector.broadcast %cst_5 : f32 to vector<16x256xf32>
    %7 = arith.mulf %6, %5 : vector<16x256xf32>
    %8 = arith.maximumf %5, %7 : vector<16x256xf32>
    %cst_6 = arith.constant dense<0.000000e+00> : vector<256xf32>
    %9 = vector.multi_reduction <add>, %8, %cst_6 [0] : vector<16x256xf32> to vector<256xf32>
    %10 = vector.shape_cast %9 : vector<256xf32> to vector<1x256xf32>
    %cst_7 = arith.constant 1.600000e+01 : f32
    %11 = vector.broadcast %cst_7 : f32 to vector<1x256xf32>
    %12 = arith.divf %10, %11 : vector<1x256xf32>
    %13 = arith.mulf %8, %8 : vector<16x256xf32>
    %cst_8 = arith.constant dense<0.000000e+00> : vector<256xf32>
    %14 = vector.multi_reduction <add>, %13, %cst_8 [0] : vector<16x256xf32> to vector<256xf32>
    %15 = vector.shape_cast %14 : vector<256xf32> to vector<1x256xf32>
    %cst_9 = arith.constant 1.600000e+01 : f32
    %16 = vector.broadcast %cst_9 : f32 to vector<1x256xf32>
    %17 = arith.divf %15, %16 : vector<1x256xf32>
    %18 = arith.mulf %12, %12 : vector<1x256xf32>
    %19 = arith.subf %17, %18 : vector<1x256xf32>
    %20 = vector.broadcast %12 : vector<1x256xf32> to vector<16x256xf32>
    %21 = arith.subf %8, %20 : vector<16x256xf32>
    %cst_10 = arith.constant 9.99999974E-6 : f32
    %22 = vector.broadcast %cst_10 : f32 to vector<1x256xf32>
    %23 = arith.addf %19, %22 : vector<1x256xf32>
    %24 = math.rsqrt %23 : vector<1x256xf32>
    %25 = vector.broadcast %24 : vector<1x256xf32> to vector<16x256xf32>
    %26 = arith.mulf %21, %25 : vector<16x256xf32>
    %27 = arith.truncf %26 : vector<16x256xf32> to vector<16x256xbf16>
    %c0_11 = arith.constant 0 : index
    %c0_12 = arith.constant 0 : index
    %28 = vector.load %arg4[%c0_11, %c0_12] : memref<16x256xbf16, #tpu.memory_space<vmem>>, vector<16x256xbf16>
    tpu.vector_store %arg4[%c0_11, %c0_12], %27 {strides = array<i32>} : memref<16x256xbf16, #tpu.memory_space<vmem>>, vector<16x256xbf16>,
    return
  }
  func.func @transform_0(%arg0: i32) -> (i32, i32) {
    %c0_i32 = arith.constant 0 : i32
    %c0_i32_0 = arith.constant 0 : i32
    return %arg0, %c0_i32 : i32, i32
  }
  func.func @transform_1(%arg0: i32) -> (i32, i32) {
    %c0_i32 = arith.constant 0 : i32
    %c0_i32_0 = arith.constant 0 : i32
    %c0_i32_1 = arith.constant 0 : i32
    return %c0_i32, %c0_i32_0 : i32, i32
  }
  func.func @transform_2(%arg0: i32) -> (i32, i32) {
    %c0_i32 = arith.constant 0 : i32
    %c0_i32_0 = arith.constant 0 : i32
    %c0_i32_1 = arith.constant 0 : i32
    return %c0_i32, %c0_i32_0 : i32, i32
  }
  func.func @transform_3(%arg0: i32) -> (i32, i32) {
    %c0_i32 = arith.constant 0 : i32
    %c0_i32_0 = arith.constant 0 : i32
    return %arg0, %c0_i32 : i32, i32
  }
}

module attributes {stable_mosaic.version = 11 : i64} {
  func.func @_block4_head_kernel(%arg0: i32, %arg1: memref<1x4x2304xbf16, #tpu.memory_space<vmem>>, %arg2: memref<2304x512xbf16, #tpu.memory_space<vmem>>, %arg3: memref<1x512xf32, #tpu.memory_space<vmem>>, %arg4: memref<4x512x128xf32, #tpu.memory_space<vmem>>, %arg5: memref<1x128xf32, #tpu.memory_space<vmem>>, %arg6: memref<1x1x128xf32, #tpu.memory_space<vmem>>) attributes {dimension_semantics = [#tpu.dimension_semantics<parallel>], iteration_bounds = array<i64: 2>, scalar_prefetch = 0 : i64, scratch_operands = 0 : i64, tpu.core_type = #tpu.core_type<tc>, window_params = [{transform_indices = @transform_0, window_bounds = array<i64: 1, 4, 2304>}, {pipeline_mode = #tpu.pipeline_mode<synchronous>, transform_indices = @transform_1, window_bounds = array<i64: 2304, 512>}, {pipeline_mode = #tpu.pipeline_mode<synchronous>, transform_indices = @transform_2, window_bounds = array<i64: 1, 512>}, {pipeline_mode = #tpu.pipeline_mode<synchronous>, transform_indices = @transform_3, window_bounds = array<i64: 4, 512, 128>}, {pipeline_mode = #tpu.pipeline_mode<synchronous>, transform_indices = @transform_4, window_bounds = array<i64: 1, 128>}, {transform_indices = @transform_5, window_bounds = array<i64: 1, 1, 128>}]} {
    %c0 = arith.constant 0 : index
    %c0_0 = arith.constant 0 : index
    %c0_1 = arith.constant 0 : index
    %0 = vector.load %arg1[%c0, %c0_0, %c0_1] : memref<1x4x2304xbf16, #tpu.memory_space<vmem>>, vector<1x4x2304xbf16>
    %1 = vector.shape_cast %0 : vector<1x4x2304xbf16> to vector<4x2304xbf16>
    %c0_2 = arith.constant 0 : index
    %c0_3 = arith.constant 0 : index
    %2 = vector.load %arg2[%c0_2, %c0_3] : memref<2304x512xbf16, #tpu.memory_space<vmem>>, vector<2304x512xbf16>
    %cst = arith.constant dense<0.000000e+00> : vector<4x512xf32>
    %3 = tpu.matmul %1, %2, %cst {dimension_numbers = #tpu.dot_dimension_numbers<[1], [0], [0], [1], [0, 0, 1, 1], [], []>} : vector<4x2304xbf16>, vector<2304x512xbf16>, vector<4x512xf32> -> vector<4x512xf32>
    %c0_4 = arith.constant 0 : index
    %c0_5 = arith.constant 0 : index
    %4 = vector.load %arg3[%c0_4, %c0_5] : memref<1x512xf32, #tpu.memory_space<vmem>>, vector<1x512xf32>
    %5 = vector.broadcast %4 : vector<1x512xf32> to vector<4x512xf32>
    %6 = arith.addf %3, %5 : vector<4x512xf32>
    %cst_6 = arith.constant 2.000000e-01 : f32
    %7 = vector.broadcast %cst_6 : f32 to vector<4x512xf32>
    %8 = arith.mulf %7, %6 : vector<4x512xf32>
    %9 = arith.maximumf %6, %8 : vector<4x512xf32>
    %cst_7 = arith.constant dense<0.000000e+00> : vector<512xf32>
    %10 = vector.multi_reduction <add>, %9, %cst_7 [0] : vector<4x512xf32> to vector<512xf32>
    %11 = vector.shape_cast %10 : vector<512xf32> to vector<1x512xf32>
    %cst_8 = arith.constant 4.000000e+00 : f32
    %12 = vector.broadcast %cst_8 : f32 to vector<1x512xf32>
    %13 = arith.divf %11, %12 : vector<1x512xf32>
    %14 = arith.mulf %9, %9 : vector<4x512xf32>
    %cst_9 = arith.constant dense<0.000000e+00> : vector<512xf32>
    %15 = vector.multi_reduction <add>, %14, %cst_9 [0] : vector<4x512xf32> to vector<512xf32>
    %16 = vector.shape_cast %15 : vector<512xf32> to vector<1x512xf32>
    %cst_10 = arith.constant 4.000000e+00 : f32
    %17 = vector.broadcast %cst_10 : f32 to vector<1x512xf32>
    %18 = arith.divf %16, %17 : vector<1x512xf32>
    %19 = arith.mulf %13, %13 : vector<1x512xf32>
    %20 = arith.subf %18, %19 : vector<1x512xf32>
    %21 = vector.broadcast %13 : vector<1x512xf32> to vector<4x512xf32>
    %22 = arith.subf %9, %21 : vector<4x512xf32>
    %cst_11 = arith.constant 9.99999974E-6 : f32
    %23 = vector.broadcast %cst_11 : f32 to vector<1x512xf32>
    %24 = arith.addf %20, %23 : vector<1x512xf32>
    %25 = math.rsqrt %24 : vector<1x512xf32>
    %26 = vector.broadcast %25 : vector<1x512xf32> to vector<4x512xf32>
    %27 = arith.mulf %22, %26 : vector<4x512xf32>
    %c0_12 = arith.constant 0 : index
    %c0_13 = arith.constant 0 : index
    %28 = vector.load %arg5[%c0_12, %c0_13] : memref<1x128xf32, #tpu.memory_space<vmem>>, vector<1x128xf32>
    %29 = vector.extract_strided_slice %27 {offsets = [0, 0], sizes = [1, 512], strides = [1, 1]} : vector<4x512xf32> to vector<1x512xf32>
    %c0_14 = arith.constant 0 : index
    %c0_15 = arith.constant 0 : index
    %c0_16 = arith.constant 0 : index
    %30 = vector.load %arg4[%c0_14, %c0_15, %c0_16] : memref<4x512x128xf32, #tpu.memory_space<vmem>>, vector<1x512x128xf32>
    %31 = vector.shape_cast %30 : vector<1x512x128xf32> to vector<512x128xf32>
    %cst_17 = arith.constant dense<0.000000e+00> : vector<1x128xf32>
    %32 = tpu.matmul %29, %31, %cst_17 {dimension_numbers = #tpu.dot_dimension_numbers<[1], [0], [0], [1], [0, 0, 1, 1], [], []>} : vector<1x512xf32>, vector<512x128xf32>, vector<1x128xf32> -> vector<1x128xf32>
    %33 = arith.addf %28, %32 : vector<1x128xf32>
    %34 = vector.extract_strided_slice %27 {offsets = [1, 0], sizes = [1, 512], strides = [1, 1]} : vector<4x512xf32> to vector<1x512xf32>
    %c1 = arith.constant 1 : index
    %c0_18 = arith.constant 0 : index
    %c0_19 = arith.constant 0 : index
    %35 = vector.load %arg4[%c1, %c0_18, %c0_19] : memref<4x512x128xf32, #tpu.memory_space<vmem>>, vector<1x512x128xf32>
    %36 = vector.shape_cast %35 : vector<1x512x128xf32> to vector<512x128xf32>
    %cst_20 = arith.constant dense<0.000000e+00> : vector<1x128xf32>
    %37 = tpu.matmul %34, %36, %cst_20 {dimension_numbers = #tpu.dot_dimension_numbers<[1], [0], [0], [1], [0, 0, 1, 1], [], []>} : vector<1x512xf32>, vector<512x128xf32>, vector<1x128xf32> -> vector<1x128xf32>
    %38 = arith.addf %33, %37 : vector<1x128xf32>
    %39 = vector.extract_strided_slice %27 {offsets = [2, 0], sizes = [1, 512], strides = [1, 1]} : vector<4x512xf32> to vector<1x512xf32>
    %c2 = arith.constant 2 : index
    %c0_21 = arith.constant 0 : index
    %c0_22 = arith.constant 0 : index
    %40 = vector.load %arg4[%c2, %c0_21, %c0_22] : memref<4x512x128xf32, #tpu.memory_space<vmem>>, vector<1x512x128xf32>
    %41 = vector.shape_cast %40 : vector<1x512x128xf32> to vector<512x128xf32>
    %cst_23 = arith.constant dense<0.000000e+00> : vector<1x128xf32>
    %42 = tpu.matmul %39, %41, %cst_23 {dimension_numbers = #tpu.dot_dimension_numbers<[1], [0], [0], [1], [0, 0, 1, 1], [], []>} : vector<1x512xf32>, vector<512x128xf32>, vector<1x128xf32> -> vector<1x128xf32>
    %43 = arith.addf %38, %42 : vector<1x128xf32>
    %44 = vector.extract_strided_slice %27 {offsets = [3, 0], sizes = [1, 512], strides = [1, 1]} : vector<4x512xf32> to vector<1x512xf32>
    %c3 = arith.constant 3 : index
    %c0_24 = arith.constant 0 : index
    %c0_25 = arith.constant 0 : index
    %45 = vector.load %arg4[%c3, %c0_24, %c0_25] : memref<4x512x128xf32, #tpu.memory_space<vmem>>, vector<1x512x128xf32>
    %46 = vector.shape_cast %45 : vector<1x512x128xf32> to vector<512x128xf32>
    %cst_26 = arith.constant dense<0.000000e+00> : vector<1x128xf32>
    %47 = tpu.matmul %44, %46, %cst_26 {dimension_numbers = #tpu.dot_dimension_numbers<[1], [0], [0], [1], [0, 0, 1, 1], [], []>} : vector<1x512xf32>, vector<512x128xf32>, vector<1x128xf32> -> vector<1x128xf32>
    %48 = arith.addf %43, %47 : vector<1x128xf32>
    %cst_27 = arith.constant dense<0xFF800000> : vector<1xf32>
    %49 = vector.multi_reduction <maximumf>, %48, %cst_27 [1] : vector<1x128xf32> to vector<1xf32>
    %50 = vector.shape_cast %49 : vector<1xf32> to vector<1x1xf32>
    %51 = vector.broadcast %50 : vector<1x1xf32> to vector<1x128xf32>
    %52 = arith.subf %48, %51 : vector<1x128xf32>
    %53 = math.exp %52 : vector<1x128xf32>
    %cst_28 = arith.constant dense<0.000000e+00> : vector<1xf32>
    %54 = vector.multi_reduction <add>, %53, %cst_28 [1] : vector<1x128xf32> to vector<1xf32>
    %55 = vector.shape_cast %54 : vector<1xf32> to vector<1x1xf32>
    %56 = vector.broadcast %55 : vector<1x1xf32> to vector<1x128xf32>
    %57 = arith.divf %53, %56 : vector<1x128xf32>
    %c0_29 = arith.constant 0 : index
    %c0_30 = arith.constant 0 : index
    %c0_31 = arith.constant 0 : index
    %58 = vector.load %arg6[%c0_29, %c0_30, %c0_31] : memref<1x1x128xf32, #tpu.memory_space<vmem>>, vector<1x1x128xf32>
    %59 = vector.shape_cast %58 : vector<1x1x128xf32> to vector<1x128xf32>
    %60 = vector.shape_cast %57 : vector<1x128xf32> to vector<1x1x128xf32>
    tpu.vector_store %arg6[%c0_29, %c0_30, %c0_31], %60 {strides = array<i32>} : memref<1x1x128xf32, #tpu.memory_space<vmem>>, vector<1x1x128xf32>,
    return
  }
  func.func @transform_0(%arg0: i32) -> (i32, i32, i32) {
    %c0_i32 = arith.constant 0 : i32
    %c0_i32_0 = arith.constant 0 : i32
    %c0_i32_1 = arith.constant 0 : i32
    return %arg0, %c0_i32, %c0_i32_0 : i32, i32, i32
  }
  func.func @transform_1(%arg0: i32) -> (i32, i32) {
    %c0_i32 = arith.constant 0 : i32
    %c0_i32_0 = arith.constant 0 : i32
    %c0_i32_1 = arith.constant 0 : i32
    return %c0_i32, %c0_i32_0 : i32, i32
  }
  func.func @transform_2(%arg0: i32) -> (i32, i32) {
    %c0_i32 = arith.constant 0 : i32
    %c0_i32_0 = arith.constant 0 : i32
    %c0_i32_1 = arith.constant 0 : i32
    return %c0_i32, %c0_i32_0 : i32, i32
  }
  func.func @transform_3(%arg0: i32) -> (i32, i32, i32) {
    %c0_i32 = arith.constant 0 : i32
    %c0_i32_0 = arith.constant 0 : i32
    %c0_i32_1 = arith.constant 0 : i32
    %c0_i32_2 = arith.constant 0 : i32
    return %c0_i32, %c0_i32_0, %c0_i32_1 : i32, i32, i32
  }
  func.func @transform_4(%arg0: i32) -> (i32, i32) {
    %c0_i32 = arith.constant 0 : i32
    %c0_i32_0 = arith.constant 0 : i32
    %c0_i32_1 = arith.constant 0 : i32
    return %c0_i32, %c0_i32_0 : i32, i32
  }
  func.func @transform_5(%arg0: i32) -> (i32, i32, i32) {
    %c0_i32 = arith.constant 0 : i32
    %c0_i32_0 = arith.constant 0 : i32
    %c0_i32_1 = arith.constant 0 : i32
    return %arg0, %c0_i32, %c0_i32_0 : i32, i32, i32
  }
}

</mosaic_0001>

<bundles_post_ra>
// kernel: classifier_forward.4
= control target key start
LH: loop header
LB: loop body
LE: loop exit
PB: predicated region body
PF: predicated region fallthrough
CT: control target
= control target key end

     0   :  { %s1040_s12 = smov 0   ;;  %s1210_s0 = inlined_call_operand.vmem [shape: bf16[512,36], index: 0, kind: input, shape index: {}]   ;;  %s1211_s1 = inlined_call_operand.vmem [shape: bf16[36,64], index: 1, kind: input, shape index: {}]   ;;  %s1212_s2 = inlined_call_operand.vmem [shape: f32[1,64], index: 2, kind: input, shape index: {}]   ;;  %s1213_s3 = inlined_call_operand.vmem [shape: bf16[512,64], index: 3, kind: output, shape index: {}]  }
   0x1 LB: > { %s809_s13 = sadd.s32 4294967295, %s1018_s12   ;;  %p813_p0 = scmp.ge.s32.totalorder %s1018_s12, 1  ;;  %s1018_s12 = sphi %s1040_s12, %s13_s12  }
   0x2   : > { %p138_p1 = scmp.lt.s32.totalorder %s1018_s12, 3 }
   0x4   : > { %p139_p2 = pnand %p813_p0, %p138_p1 }
   0x5   : > { %v993_v0 = vld [vmem:[%s1211_s1] sm:$0xff] (!%p139_p2)   ;;  %v994_v1 = vld [vmem:[%s1211_s1 + $0x8] sm:$0xff] (!%p139_p2)   ;;  %s814_s18 = sshll.u32 (!%p139_p2), %s809_s13, 5  ;;  %v995_v2 = vld [vmem:[%s1211_s1 + $0x10] ss:$0 sps:$4 sm:$0x33] (!%p139_p2)  }
   0x6   : > { %142 = sbr.rel (%p139_p2) target bundleno = 270 (0x10e), region = 32  ;;  %939 = vmatprep.subr.bf16.mxu0 (!%p139_p2), %v993_v0  ;;  %977 = vmatprep.subr.bf16.mxu1 (!%p139_p2), %v993_v0  ;;  %p163_p3 = scmp.lt.s32.totalorder (!%p139_p2), %s814_s18, 63  ;;  %vm363_vm0 = vcmask (!%p139_p2), 1041408   ;;  %vm314_vm1 = vcmask (!%p139_p2), 293888   ;;  %v1102_v20 = vld [vmem:[%s1212_s2] ss:$0 sm:$0xff] (!%p139_p2) }
   0x7   : > { %940 = vmatpush3.bf16.msra.mxu0 (!%p139_p2), %v993_v0  ;;  %980 = vmatpush3.bf16.msra.mxu1 (!%p139_p2), %v993_v0  ;;  %v365_v3 = vsel (!%p139_p2), %vm363_vm0, %v995_v2, 0  ;;  %vm720_vm2 = vcmask (!%p139_p2), 519168  }
   0x8   : > { %941 = vmatprep.subr.bf16.mxu0 (!%p139_p2), %v994_v1  ;;  %978 = vmatprep.subr.bf16.mxu1 (!%p139_p2), %v994_v1 }
   0xb   : > { %942 = vmatpush3.bf16.msra.mxu0 (!%p139_p2), %v994_v1  ;;  %981 = vmatpush3.bf16.msra.mxu1 (!%p139_p2), %v994_v1 }
   0xc   : > { %983 = vmatprep.subr.msk.bf16.mxu0 (!%p139_p2), %vm363_vm0, %v995_v2  ;;  %984 = vmatprep.subr.msk.bf16.mxu1 (!%p139_p2), %vm363_vm0, %v995_v2 }
   0xd   : > { %s1215_s18 = smov (!%p163_p3, %s814_s18), 63 }
   0xe   : > { %s815_s21 = sshll.u32 %s1215_s18, 2 }
   0xf   : > { %s1065_s24 = scalar_lea.vmem %s1210_s0, %s815_s21  ;;  %944 = vmatpush3.bf16.msra.mxu0 %v365_v3  ;;  %982 = vmatpush3.bf16.msra.mxu1 %v365_v3  ;;  %s1117_s29 = scalar_lea.vmem %s1213_s3, %s815_s21 }
  0x10   : > { %v996_v4 = vld [vmem:[%s1065_s24] sm:$0xff]   ;;  %v998_v6 = vld [vmem:[%s1065_s24 + $0x8] sm:$0xff]   ;;  %v1000_v8 = vld [vmem:[%s1065_s24 + $0x10] sm:$0xff]  }
  0x11   : > { %v997_v5 = vld [vmem:[%s1065_s24 + $0x40] sm:$0xff]   ;;  %945 = vmatprep.mubr.msk.bf16.mxu0 %vm314_vm1, %v996_v4  ;;  %v999_v7 = vld [vmem:[%s1065_s24 + $0x48] sm:$0xff]   ;;  %v1001_v9 = vld [vmem:[%s1065_s24 + $0x50] sm:$0xff]  }
  0x12   : > { %961 = vmatprep.mubr.msk.bf16.mxu1 %vm314_vm1, %v997_v5  ;;  %946 = vmatmul.mubr.msk.bf16.vlgmr.msra.gmra.mrb[0].mxu0 %vm314_vm1, %v998_v6  ;;  %v1002_v10 = vld [vmem:[%s1065_s24 + $0x18] sm:$0xff]   ;;  %v1004_v12 = vld [vmem:[%s1065_s24 + $0x20] sm:$0xff]   ;;  %v1006_v14 = vld [vmem:[%s1065_s24 + $0x28] sm:$0xff]  }
  0x13   : > { %962 = vmatmul.mubr.msk.bf16.vlgmr.msra.gmra.mrb[0].mxu1 %vm314_vm1, %v999_v7  ;;  %949 = vmatprep.mubr.msk.bf16.mxu0 %vm314_vm1, %v1000_v8  ;;  %v1003_v11 = vld [vmem:[%s1065_s24 + $0x58] sm:$0xff]   ;;  %v1005_v13 = vld [vmem:[%s1065_s24 + $0x60] sm:$0xff]   ;;  %v1007_v15 = vld [vmem:[%s1065_s24 + $0x68] sm:$0xff]  }
  0x14   : > { %965 = vmatprep.mubr.msk.bf16.mxu1 %vm314_vm1, %v1001_v9  ;;  %v1008_v16 = vld [vmem:[%s1065_s24 + $0x30] sm:$0xff]   ;;  %v1010_v18 = vld [vmem:[%s1065_s24 + $0x38] sm:$0xff]  }
  0x15   : > { %v1009_v17 = vld [vmem:[%s1065_s24 + $0x70] sm:$0xff]   ;;  %v1011_v19 = vld [vmem:[%s1065_s24 + $0x78] sm:$0xff]  }
  0x1a   : > { %950 = vmatmul.mubr.msk.bf16.gmra.mrb[4].mxu0 %vm314_vm1, %v1002_v10 }
  0x1b   : > { %966 = vmatmul.mubr.msk.bf16.gmra.mrb[4].mxu1 %vm314_vm1, %v1003_v11  ;;  %953 = vmatprep.mubr.msk.bf16.mxu0 %vm314_vm1, %v1004_v12 }
  0x1c   : > { %969 = vmatprep.mubr.msk.bf16.mxu1 %vm314_vm1, %v1005_v13 }
  0x22   : > { %954 = vmatmul.mubr.msk.bf16.gmra.mrb[8].mxu0 %vm314_vm1, %v1006_v14 }
  0x23   : > { %970 = vmatmul.mubr.msk.bf16.gmra.mrb[8].mxu1 %vm314_vm1, %v1007_v15  ;;  %957 = vmatprep.mubr.msk.bf16.mxu0 %vm314_vm1, %v1008_v16 }
  0x24   : > { %973 = vmatprep.mubr.msk.bf16.mxu1 %vm314_vm1, %v1009_v17 }
  0x2a   : > { %958 = vmatmul.mubr.msk.bf16.gmra.mrb[12].mxu0 %vm314_vm1, %v1010_v18 }
  0x2b   : > { %974 = vmatmul.mubr.msk.bf16.gmra.mrb[12].mxu1 %vm314_vm1, %v1011_v19 }
  0xe5   : > { %v947_v21 = vpop.f32.mrb[0].mxu0 }
  0xe6   : > { %v963_v22 = vpop.f32.mrb[0].mxu1  ;;  %v410_v23 = vadd.f32 %v947_v21, %v1102_v20  ;;  %v401_v25 = vpop.f32.mrb[1].mxu0 }
  0xe7   : > { %v474_v24 = vadd.f32 %v963_v22, %v1102_v20  ;;  %v465_v26 = vpop.f32.mrb[1].mxu1  ;;  %v402_v27 = vadd.f32 %v1102_v20, %v401_v25  ;;  %v948_v29 = vpop.f32.mrb[2].mxu0 }
  0xe8   : > { %v466_v28 = vadd.f32 %v1102_v20, %v465_v26  ;;  %v964_v30 = vpop.f32.mrb[2].mxu1  ;;  %v530_v31 = vmul.f32 0.2, %v410_v23  ;;  %v413_v33 = vadd.f32 %v948_v29, %v1102_v20  ;;  %v404_v35 = vpop.f32.mrb[3].mxu0 }
  0xe9   : > { %v546_v32 = vmul.f32 0.2, %v474_v24  ;;  %v477_v34 = vadd.f32 %v964_v30, %v1102_v20  ;;  %v468_v36 = vpop.f32.mrb[3].mxu1  ;;  %v528_v37 = vmul.f32 0.2, %v402_v27  ;;  %v405_v39 = vadd.f32 %v1102_v20, %v404_v35 }
  0xea   : > { %v544_v38 = vmul.f32 0.2, %v466_v28  ;;  %v469_v40 = vadd.f32 %v1102_v20, %v468_v36  ;;  %v562_v41 = vmax.f32 %v410_v23, %v530_v31  ;;  %v531_v43 = vmul.f32 0.2, %v413_v33 }
  0xeb   : > { %v578_v42 = vmax.f32 %v474_v24, %v546_v32  ;;  %v547_v44 = vmul.f32 0.2, %v477_v34  ;;  %v560_v45 = vmax.f32 %v402_v27, %v528_v37  ;;  %v529_v47 = vmul.f32 0.2, %v405_v39 }
  0xec   : > { %v576_v46 = vmax.f32 %v466_v28, %v544_v38  ;;  %v545_v48 = vmul.f32 0.2, %v469_v40  ;;  %v890_v49 = vpack.c.bf16 %v562_v41, %v562_v41  ;;  %v563_v51 = vmax.f32 %v413_v33, %v531_v43 }
  0xed   : > { %v906_v50 = vpack.c.bf16 %v578_v42, %v578_v42  ;;  %v579_v52 = vmax.f32 %v477_v34, %v547_v44  ;;  %v888_v53 = vpack.c.bf16 %v560_v45, %v560_v45  ;;  %v561_v55 = vmax.f32 %v405_v39, %v529_v47  ;;  %v951_v57 = vpop.f32.mrb[4].mxu0 }
  0xee   : > { %v904_v54 = vpack.c.bf16 %v576_v46, %v576_v46  ;;  %v577_v56 = vmax.f32 %v469_v40, %v545_v48  ;;  %v967_v58 = vpop.f32.mrb[4].mxu1  ;;  %723 = vst.msk [vmem:[%s1117_s29 + $0x8] sm:$0xf] %vm720_vm2, %v890_v49  ;;  %v891_v59 = vpack.c.bf16 %v563_v51, %v563_v51  ;;  %v426_v61 = vadd.f32 %v951_v57, %v1102_v20  ;;  %v417_v63 = vpop.f32.mrb[5].mxu0 }
  0xef   : > { %739 = vst.msk [vmem:[%s1117_s29 + $0x48] sm:$0xf] %vm720_vm2, %v906_v50  ;;  %v907_v60 = vpack.c.bf16 %v579_v52, %v579_v52  ;;  %v490_v62 = vadd.f32 %v967_v58, %v1102_v20  ;;  %v481_v0 = vpop.f32.mrb[5].mxu1  ;;  %721 = vst.msk [vmem:[%s1117_s29] sm:$0xf] %vm720_vm2, %v888_v53  ;;  %v889_v1 = vpack.c.bf16 %v561_v55, %v561_v55  ;;  %v952_v5 = vpop.f32.mrb[6].mxu0 }
  0xf0   : > { %737 = vst.msk [vmem:[%s1117_s29 + $0x40] sm:$0xf] %vm720_vm2, %v904_v54  ;;  %v905_v2 = vpack.c.bf16 %v577_v56, %v577_v56  ;;  %v418_v3 = vadd.f32 %v1102_v20, %v417_v63  ;;  %v482_v4 = vadd.f32 %v1102_v20, %v481_v0  ;;  %v968_v6 = vpop.f32.mrb[6].mxu1  ;;  %724 = vst.msk [vmem:[%s1117_s29 + $0xc] sm:$0xf] %vm720_vm2, %v891_v59  ;;  %v420_v11 = vpop.f32.mrb[7].mxu0 }
  0xf1   : > { %740 = vst.msk [vmem:[%s1117_s29 + $0x4c] sm:$0xf] %vm720_vm2, %v907_v60  ;;  %v534_v7 = vmul.f32 0.2, %v426_v61  ;;  %v550_v8 = vmul.f32 0.2, %v490_v62  ;;  %v429_v9 = vadd.f32 %v952_v5, %v1102_v20  ;;  %v493_v10 = vadd.f32 %v968_v6, %v1102_v20 }
  0xf2   : > { %v484_v12 = vpop.f32.mrb[7].mxu1  ;;  %722 = vst.msk [vmem:[%s1117_s29 + $0x4] sm:$0xf] %vm720_vm2, %v889_v1  ;;  %738 = vst.msk [vmem:[%s1117_s29 + $0x44] sm:$0xf] %vm720_vm2, %v905_v2  ;;  %v421_v15 = vadd.f32 %v1102_v20, %v420_v11 }
  0xf3   : > { %v532_v13 = vmul.f32 0.2, %v418_v3  ;;  %v548_v14 = vmul.f32 0.2, %v482_v4  ;;  %v485_v16 = vadd.f32 %v1102_v20, %v484_v12  ;;  %v566_v17 = vmax.f32 %v426_v61, %v534_v7 }
  0xf4   : > { %v582_v18 = vmax.f32 %v490_v62, %v550_v8  ;;  %v535_v19 = vmul.f32 0.2, %v429_v9  ;;  %v551_v21 = vmul.f32 0.2, %v493_v10  ;;  %v533_v24 = vmul.f32 0.2, %v421_v15 }
  0xf5   : > { %v564_v22 = vmax.f32 %v418_v3, %v532_v13  ;;  %v580_v23 = vmax.f32 %v482_v4, %v548_v14  ;;  %v549_v25 = vmul.f32 0.2, %v485_v16  ;;  %v894_v26 = vpack.c.bf16 %v566_v17, %v566_v17  ;;  %v955_v34 = vpop.f32.mrb[8].mxu0 }
  0xf6   : > { %v910_v27 = vpack.c.bf16 %v582_v18, %v582_v18  ;;  %v567_v28 = vmax.f32 %v429_v9, %v535_v19  ;;  %v583_v29 = vmax.f32 %v493_v10, %v551_v21  ;;  %v565_v32 = vmax.f32 %v421_v15, %v533_v24  ;;  %v971_v35 = vpop.f32.mrb[8].mxu1  ;;  %v433_v40 = vpop.f32.mrb[9].mxu0 }
  0xf7   : > { %v892_v30 = vpack.c.bf16 %v564_v22, %v564_v22  ;;  %v908_v31 = vpack.c.bf16 %v580_v23, %v580_v23  ;;  %v581_v33 = vmax.f32 %v485_v16, %v549_v25  ;;  %727 = vst.msk [vmem:[%s1117_s29 + $0x18] sm:$0xf] %vm720_vm2, %v894_v26  ;;  %v442_v38 = vadd.f32 %v955_v34, %v1102_v20  ;;  %v497_v41 = vpop.f32.mrb[9].mxu1  ;;  %v956_v46 = vpop.f32.mrb[10].mxu0 }
  0xf8   : > { %743 = vst.msk [vmem:[%s1117_s29 + $0x58] sm:$0xf] %vm720_vm2, %v910_v27  ;;  %v895_v36 = vpack.c.bf16 %v567_v28, %v567_v28  ;;  %v911_v37 = vpack.c.bf16 %v583_v29, %v583_v29  ;;  %v506_v39 = vadd.f32 %v971_v35, %v1102_v20  ;;  %v893_v42 = vpack.c.bf16 %v565_v32, %v565_v32  ;;  %v972_v47 = vpop.f32.mrb[10].mxu1  ;;  %v436_v52 = vpop.f32.mrb[11].mxu0 }
  0xf9   : > { %725 = vst.msk [vmem:[%s1117_s29 + $0x10] sm:$0xf] %vm720_vm2, %v892_v30  ;;  %741 = vst.msk [vmem:[%s1117_s29 + $0x50] sm:$0xf] %vm720_vm2, %v908_v31  ;;  %v909_v43 = vpack.c.bf16 %v581_v33, %v581_v33  ;;  %v434_v44 = vadd.f32 %v1102_v20, %v433_v40  ;;  %v498_v45 = vadd.f32 %v1102_v20, %v497_v41  ;;  %v538_v48 = vmul.f32 0.2, %v442_v38 }
  0xfa   : > { %728 = vst.msk [vmem:[%s1117_s29 + $0x1c] sm:$0xf] %vm720_vm2, %v895_v36  ;;  %744 = vst.msk [vmem:[%s1117_s29 + $0x5c] sm:$0xf] %vm720_vm2, %v911_v37  ;;  %v554_v49 = vmul.f32 0.2, %v506_v39  ;;  %v445_v50 = vadd.f32 %v956_v46, %v1102_v20  ;;  %v509_v51 = vadd.f32 %v972_v47, %v1102_v20  ;;  %v437_v56 = vadd.f32 %v1102_v20, %v436_v52 }
  0xfb   : > { %v500_v53 = vpop.f32.mrb[11].mxu1  ;;  %726 = vst.msk [vmem:[%s1117_s29 + $0x14] sm:$0xf] %vm720_vm2, %v893_v42  ;;  %742 = vst.msk [vmem:[%s1117_s29 + $0x54] sm:$0xf] %vm720_vm2, %v909_v43  ;;  %v570_v58 = vmax.f32 %v442_v38, %v538_v48 }
  0xfc   : > { %v536_v54 = vmul.f32 0.2, %v434_v44  ;;  %v552_v55 = vmul.f32 0.2, %v498_v45  ;;  %v501_v57 = vadd.f32 %v1102_v20, %v500_v53  ;;  %v586_v59 = vmax.f32 %v506_v39, %v554_v49 }
  0xfd   : > { %v539_v60 = vmul.f32 0.2, %v445_v50  ;;  %v555_v61 = vmul.f32 0.2, %v509_v51  ;;  %v537_v0 = vmul.f32 0.2, %v437_v56  ;;  %v898_v2 = vpack.c.bf16 %v570_v58, %v570_v58 }
  0xfe   : > { %v568_v62 = vmax.f32 %v434_v44, %v536_v54  ;;  %v584_v63 = vmax.f32 %v498_v45, %v552_v55  ;;  %v553_v1 = vmul.f32 0.2, %v501_v57  ;;  %v914_v3 = vpack.c.bf16 %v586_v59, %v586_v59  ;;  %v959_v10 = vpop.f32.mrb[12].mxu0  ;;  %v975_v11 = vpop.f32.mrb[12].mxu1 }
  0xff   : > { %v571_v4 = vmax.f32 %v445_v50, %v539_v60  ;;  %v587_v5 = vmax.f32 %v509_v51, %v555_v61  ;;  %v569_v8 = vmax.f32 %v437_v56, %v537_v0  ;;  %731 = vst.msk [vmem:[%s1117_s29 + $0x28] sm:$0xf] %vm720_vm2, %v898_v2  ;;  %v458_v14 = vadd.f32 %v959_v10, %v1102_v20  ;;  %v449_v16 = vpop.f32.mrb[13].mxu0  ;;  %v513_v17 = vpop.f32.mrb[13].mxu1 }
 0x100   : > { %v896_v6 = vpack.c.bf16 %v568_v62, %v568_v62  ;;  %v912_v7 = vpack.c.bf16 %v584_v63, %v584_v63  ;;  %v585_v9 = vmax.f32 %v501_v57, %v553_v1  ;;  %747 = vst.msk [vmem:[%s1117_s29 + $0x68] sm:$0xf] %vm720_vm2, %v914_v3  ;;  %v522_v15 = vadd.f32 %v975_v11, %v1102_v20  ;;  %v960_v23 = vpop.f32.mrb[14].mxu0  ;;  %v976_v24 = vpop.f32.mrb[14].mxu1 }
 0x101   : > { %v899_v12 = vpack.c.bf16 %v571_v4, %v571_v4  ;;  %v915_v13 = vpack.c.bf16 %v587_v5, %v587_v5  ;;  %v897_v18 = vpack.c.bf16 %v569_v8, %v569_v8  ;;  %v450_v21 = vadd.f32 %v1102_v20, %v449_v16  ;;  %v452_v29 = vpop.f32.mrb[15].mxu0  ;;  %v516_v30 = vpop.f32.mrb[15].mxu1 }
 0x102   : > { %729 = vst.msk [vmem:[%s1117_s29 + $0x20] sm:$0xf] %vm720_vm2, %v896_v6  ;;  %745 = vst.msk [vmem:[%s1117_s29 + $0x60] sm:$0xf] %vm720_vm2, %v912_v7  ;;  %v913_v19 = vpack.c.bf16 %v585_v9, %v585_v9  ;;  %v514_v22 = vadd.f32 %v1102_v20, %v513_v17  ;;  %v542_v25 = vmul.f32 0.2, %v458_v14  ;;  %v461_v27 = vadd.f32 %v960_v23, %v1102_v20 }
 0x103   : > { %732 = vst.msk [vmem:[%s1117_s29 + $0x2c] sm:$0xf] %vm720_vm2, %v899_v12  ;;  %748 = vst.msk [vmem:[%s1117_s29 + $0x6c] sm:$0xf] %vm720_vm2, %v915_v13  ;;  %v558_v26 = vmul.f32 0.2, %v522_v15  ;;  %v525_v28 = vadd.f32 %v976_v24, %v1102_v20  ;;  %v453_v33 = vadd.f32 %v1102_v20, %v452_v29  ;;  %v517_v34 = vadd.f32 %v1102_v20, %v516_v30 }
 0x104   : > { %730 = vst.msk [vmem:[%s1117_s29 + $0x24] sm:$0xf] %vm720_vm2, %v897_v18  ;;  %746 = vst.msk [vmem:[%s1117_s29 + $0x64] sm:$0xf] %vm720_vm2, %v913_v19  ;;  %v540_v31 = vmul.f32 0.2, %v450_v21  ;;  %v574_v35 = vmax.f32 %v458_v14, %v542_v25 }
 0x105   : > { %v556_v32 = vmul.f32 0.2, %v514_v22  ;;  %v590_v36 = vmax.f32 %v522_v15, %v558_v26  ;;  %v543_v37 = vmul.f32 0.2, %v461_v27  ;;  %v559_v38 = vmul.f32 0.2, %v525_v28 }
 0x106   : > { %v572_v39 = vmax.f32 %v450_v21, %v540_v31  ;;  %v541_v41 = vmul.f32 0.2, %v453_v33  ;;  %v557_v42 = vmul.f32 0.2, %v517_v34  ;;  %v902_v43 = vpack.c.bf16 %v574_v35, %v574_v35 }
 0x107   : > { %v588_v40 = vmax.f32 %v514_v22, %v556_v32  ;;  %v918_v44 = vpack.c.bf16 %v590_v36, %v590_v36  ;;  %v575_v45 = vmax.f32 %v461_v27, %v543_v37  ;;  %v591_v46 = vmax.f32 %v525_v28, %v559_v38 }
 0x108   : > { %v900_v20 = vpack.c.bf16 %v572_v39, %v572_v39  ;;  %v573_v48 = vmax.f32 %v453_v33, %v541_v41  ;;  %v589_v49 = vmax.f32 %v517_v34, %v557_v42  ;;  %735 = vst.msk [vmem:[%s1117_s29 + $0x38] sm:$0xf] %vm720_vm2, %v902_v43 }
 0x109   : > { %v916_v47 = vpack.c.bf16 %v588_v40, %v588_v40  ;;  %751 = vst.msk [vmem:[%s1117_s29 + $0x78] sm:$0xf] %vm720_vm2, %v918_v44  ;;  %v903_v50 = vpack.c.bf16 %v575_v45, %v575_v45  ;;  %v919_v51 = vpack.c.bf16 %v591_v46, %v591_v46 }
 0x10a   : > { %733 = vst.msk [vmem:[%s1117_s29 + $0x30] sm:$0xf] %vm720_vm2, %v900_v20  ;;  %v901_v52 = vpack.c.bf16 %v573_v48, %v573_v48  ;;  %v917_v53 = vpack.c.bf16 %v589_v49, %v589_v49 }
 0x10b   : > { %749 = vst.msk [vmem:[%s1117_s29 + $0x70] sm:$0xf] %vm720_vm2, %v916_v47  ;;  %736 = vst.msk [vmem:[%s1117_s29 + $0x3c] sm:$0xf] %vm720_vm2, %v903_v50 }
 0x10c   : > { %752 = vst.msk [vmem:[%s1117_s29 + $0x7c] sm:$0xf] %vm720_vm2, %v919_v51  ;;  %734 = vst.msk [vmem:[%s1117_s29 + $0x34] sm:$0xf] %vm720_vm2, %v901_v52 }
 0x10d   : > { %750 = vst.msk [vmem:[%s1117_s29 + $0x74] sm:$0xf] %vm720_vm2, %v917_v53 }
 0x10e PF: > { %s13_s12 = sadd.s32 1, %s1018_s12  }
 0x10f   : > { %p10_p4 = scmp.ge.s32.totalorder %s13_s12, 4  }
 0x111   :  { %12 = sbr.rel (!%p10_p4) target bundleno = 1 (0x1), region = 62 }

// kernel: classifier_forward.5
= control target key start
LH: loop header
LB: loop body
LE: loop exit
PB: predicated region body
PF: predicated region fallthrough
CT: control target
= control target key end

     0   :  { %s1300_s12 = smov 0   ;;  %s1471_s0 = inlined_call_operand.vmem [shape: bf16[128,576], index: 0, kind: input, shape index: {}]   ;;  %s1472_s1 = inlined_call_operand.vmem [shape: bf16[576,128], index: 1, kind: input, shape index: {}]   ;;  %s1473_s2 = inlined_call_operand.vmem [shape: f32[1,128], index: 2, kind: input, shape index: {}]   ;;  %s1474_s3 = inlined_call_operand.vmem [shape: bf16[128,128], index: 3, kind: output, shape index: {}]  }
   0x1 LB: > { %s974_s13 = sadd.s32 4294967295, %s1278_s12   ;;  %p978_p0 = scmp.ge.s32.totalorder %s1278_s12, 1  ;;  %s1278_s12 = sphi %s1300_s12, %s13_s12  }
   0x2   : > { %p139_p1 = scmp.lt.s32.totalorder %s1278_s12, 3 }
   0x4   : > { %p140_p2 = pnand %p978_p0, %p139_p1 }
   0x5   : > { %v1206_v0 = vld [vmem:[%s1472_s1 + $0x40] sm:$0xff] (!%p140_p2)   ;;  %v1210_v4 = vld [vmem:[%s1472_s1 + $0x48] sm:$0xff] (!%p140_p2)   ;;  %v1214_v8 = vld [vmem:[%s1472_s1 + $0x50] sm:$0xff] (!%p140_p2)   ;;  %s979_s19 = sshll.u32 (!%p140_p2), %s974_s13, 3  ;;  %vm597_vm0 = vcmask (!%p140_p2), 523264  }
   0x6   : > { %143 = sbr.rel (%p140_p2) target bundleno = 343 (0x157), region = 32  ;;  %v1207_v1 = vld [vmem:[%s1472_s1 + $0xc0] sm:$0xff] (!%p140_p2)   ;;  %1085 = vmatprep.subr.bf16.mxu0 (!%p140_p2), %v1206_v0  ;;  %v1211_v5 = vld [vmem:[%s1472_s1 + $0xc8] sm:$0xff] (!%p140_p2)   ;;  %v1215_v9 = vld [vmem:[%s1472_s1 + $0xd0] sm:$0xff] (!%p140_p2)   ;;  %p165_p3 = scmp.lt.s32.totalorder (!%p140_p2), %s979_s19, 15 }
   0x7   : > { %v1208_v2 = vld [vmem:[%s1472_s1] sm:$0xff] (!%p140_p2)   ;;  %1125 = vmatprep.subr.bf16.mxu1 (!%p140_p2), %v1207_v1  ;;  %v1212_v6 = vld [vmem:[%s1472_s1 + $0x8] sm:$0xff] (!%p140_p2)   ;;  %v1216_v10 = vld [vmem:[%s1472_s1 + $0x10] sm:$0xff] (!%p140_p2)  }
   0x8   : > { %v1209_v3 = vld [vmem:[%s1472_s1 + $0x80] sm:$0xff] (!%p140_p2)   ;;  %1086 = vmatpush3.bf16.msra.mxu0 (!%p140_p2), %v1208_v2  ;;  %v1213_v7 = vld [vmem:[%s1472_s1 + $0x88] sm:$0xff] (!%p140_p2)   ;;  %v1217_v11 = vld [vmem:[%s1472_s1 + $0x90] sm:$0xff] (!%p140_p2)  }
   0x9   : > { %1126 = vmatpush3.bf16.msra.mxu1 (!%p140_p2), %v1209_v3  ;;  %1087 = vmatprep.subr.bf16.mxu0 (!%p140_p2), %v1210_v4  ;;  %v1218_v12 = vld [vmem:[%s1472_s1 + $0x58] sm:$0xff] (!%p140_p2)   ;;  %v1222_v16 = vld [vmem:[%s1472_s1 + $0x60] sm:$0xff] (!%p140_p2)   ;;  %v1226_v20 = vld [vmem:[%s1472_s1 + $0x68] sm:$0xff] (!%p140_p2)  }
   0xa   : > { %1127 = vmatprep.subr.bf16.mxu1 (!%p140_p2), %v1211_v5  ;;  %v1219_v13 = vld [vmem:[%s1472_s1 + $0xd8] sm:$0xff] (!%p140_p2)   ;;  %v1223_v17 = vld [vmem:[%s1472_s1 + $0xe0] sm:$0xff] (!%p140_p2)   ;;  %v1227_v21 = vld [vmem:[%s1472_s1 + $0xe8] sm:$0xff] (!%p140_p2)  }
   0xb   : > { %v1220_v14 = vld [vmem:[%s1472_s1 + $0x18] sm:$0xff] (!%p140_p2)   ;;  %v1224_v18 = vld [vmem:[%s1472_s1 + $0x20] sm:$0xff] (!%p140_p2)   ;;  %v1228_v22 = vld [vmem:[%s1472_s1 + $0x28] sm:$0xff] (!%p140_p2)  }
   0xc   : > { %1088 = vmatpush3.bf16.msra.mxu0 (!%p140_p2), %v1212_v6  ;;  %v1221_v15 = vld [vmem:[%s1472_s1 + $0x98] sm:$0xff] (!%p140_p2)   ;;  %v1225_v19 = vld [vmem:[%s1472_s1 + $0xa0] sm:$0xff] (!%p140_p2)   ;;  %v1229_v23 = vld [vmem:[%s1472_s1 + $0xa8] sm:$0xff] (!%p140_p2)  }
   0xd   : > { %1128 = vmatpush3.bf16.msra.mxu1 %v1213_v7  ;;  %1089 = vmatprep.subr.bf16.mxu0 %v1214_v8  ;;  %s1476_s19 = smov (!%p165_p3, %s979_s19), 15  ;;  %v1230_v24 = vld [vmem:[%s1472_s1 + $0x70] sm:$0xff]   ;;  %v1234_v28 = vld [vmem:[%s1472_s1 + $0x78] sm:$0xff]   ;;  %v1244_v36 = vld [vmem:[%s1472_s1 + $0x100] sm:$0xff]  }
   0xe   : > { %1129 = vmatprep.subr.bf16.mxu1 %v1215_v9  ;;  %v1231_v25 = vld [vmem:[%s1472_s1 + $0xf0] sm:$0xff]   ;;  %s1197_s16 = smul.u32 20, %s1476_s19  ;;  %v1235_v29 = vld [vmem:[%s1472_s1 + $0xf8] sm:$0xff]   ;;  %v1251_v39 = vld [vmem:[%s1472_s1 + $0x108] sm:$0xff]   ;;  %s982_s17 = sshll.u32 %s1476_s19, 2 }
   0xf   : > { %v1232_v26 = vld [vmem:[%s1472_s1 + $0x30] sm:$0xff]   ;;  %v1236_v30 = vld [vmem:[%s1472_s1 + $0x38] sm:$0xff]   ;;  %v983_v57 = vld [vmem:[%s1473_s2] ss:$0 sm:$0xff]  ;;  %s175_s21 = scalar_lea.vmem %s1474_s3, %s982_s17 }
  0x10   : > { %1090 = vmatpush3.bf16.msra.mxu0 %v1216_v10  ;;  %v1233_v27 = vld [vmem:[%s1472_s1 + $0xb0] sm:$0xff]   ;;  %s1406_s13 = scalar_lea.vmem %s1471_s0, %s1197_s16  ;;  %v1237_v31 = vld [vmem:[%s1472_s1 + $0xb8] sm:$0xff]  }
  0x11   : > { %1130 = vmatpush3.bf16.msra.mxu1 %v1217_v11  ;;  %1091 = vmatprep.subr.bf16.mxu0 %v1218_v12  ;;  %v1238_v32 = vld [vmem:[%s1406_s13] ss:$20 sps:$4 sm:$0xff]   ;;  %v1240_v33 = vld [vmem:[%s1406_s13 + $0x4] ss:$20 sps:$4 sm:$0xff]   ;;  %v1241_v34 = vld [vmem:[%s1406_s13 + $0x8] ss:$20 sps:$4 sm:$0xff]  }
  0x12   : > { %1131 = vmatprep.subr.bf16.mxu1 %v1219_v13  ;;  %v1243_v35 = vld [vmem:[%s1406_s13 + $0xc] ss:$20 sps:$4 sm:$0xff]   ;;  %642 = vmatprep.mubr.bf16.mxu0 %v1240_v33  ;;  %v1247_v38 = vld [vmem:[%s1406_s13 + $0x34] ss:$20 sps:$4 sm:$0xff]   ;;  %v1250_v41 = vld [vmem:[%s1406_s13 + $0x30] ss:$20 sps:$4 sm:$0xff]  }
  0x13   : > { %707 = vmatprep.mubr.bf16.mxu1 %v1243_v35  ;;  %v1245_v37 = vld [vmem:[%s1406_s13 + $0x2c] ss:$20 sps:$4 sm:$0xff]   ;;  %v1249_v40 = vld [vmem:[%s1406_s13 + $0x28] ss:$20 sps:$4 sm:$0xff]   ;;  %v1258_v44 = vld [vmem:[%s1472_s1 + $0x110] sm:$0xff]  }
  0x14   : > { %1092 = vmatpush3.bf16.msra.mxu0 %v1220_v14  ;;  %v1252_v42 = vld [vmem:[%s1406_s13 + $0x54] ss:$20 sps:$4 sm:$0xff]   ;;  %v1254_v43 = vld [vmem:[%s1406_s13 + $0x5c] ss:$20 sps:$4 sm:$0xff]   ;;  %v1257_v47 = vld [vmem:[%s1406_s13 + $0x58] ss:$20 sps:$4 sm:$0xff]  }
  0x15   : > { %1132 = vmatpush3.bf16.msra.mxu1 %v1221_v15  ;;  %1093 = vmatprep.subr.bf16.mxu0 %v1222_v16  ;;  %v1265_v45 = vld [vmem:[%s1472_s1 + $0x118] sm:$0xff]   ;;  %v1256_v46 = vld [vmem:[%s1406_s13 + $0x50] ss:$20 sps:$4 sm:$0xff]   ;;  %v1264_v51 = vld [vmem:[%s1406_s13 + $0x80] ss:$20 sps:$4 sm:$0xff]  }
  0x16   : > { %1133 = vmatprep.subr.bf16.mxu1 %v1223_v17  ;;  %v1259_v48 = vld [vmem:[%s1406_s13 + $0x7c] ss:$20 sps:$4 sm:$0xff]   ;;  %v1261_v49 = vld [vmem:[%s1406_s13 + $0x84] ss:$20 sps:$4 sm:$0xff]   ;;  %v1267_v53 = vld [vmem:[%s1406_s13 + $0x60] ss:$20 sps:$4 sm:$0xff]  }
  0x17   : > { %v1263_v50 = vld [vmem:[%s1406_s13 + $0x78] ss:$20 sps:$4 sm:$0xff]   ;;  %v1266_v52 = vld [vmem:[%s1406_s13 + $0x10] ss:$20 sps:$4 sm:$0xff]   ;;  %v1269_v55 = vld [vmem:[%s1406_s13 + $0x88] ss:$20 sps:$4 sm:$0xff]  }
  0x18   : > { %1094 = vmatpush3.bf16.msra.mxu0 %v1224_v18  ;;  %v1268_v54 = vld [vmem:[%s1406_s13 + $0x38] ss:$20 sps:$4 sm:$0xff]  }
  0x19   : > { %1134 = vmatpush3.bf16.msra.mxu1 %v1225_v19  ;;  %1095 = vmatprep.subr.bf16.mxu0 %v1226_v20 }
  0x1a   : > { %1135 = vmatprep.subr.bf16.mxu1 %v1227_v21 }
  0x1c   : > { %1096 = vmatpush3.bf16.msra.mxu0 %v1228_v22 }
  0x1d   : > { %1136 = vmatpush3.bf16.msra.mxu1 %v1229_v23  ;;  %1097 = vmatprep.subr.bf16.mxu0 %v1230_v24 }
  0x1e   : > { %1137 = vmatprep.subr.bf16.mxu1 %v1231_v25 }
  0x20   : > { %1098 = vmatpush3.bf16.msra.mxu0 %v1232_v26 }
  0x21   : > { %1138 = vmatpush3.bf16.msra.mxu1 %v1233_v27  ;;  %1099 = vmatprep.subr.bf16.mxu0 %v1234_v28 }
  0x22   : > { %1139 = vmatprep.subr.bf16.mxu1 %v1235_v29 }
  0x24   : > { %1100 = vmatpush3.bf16.msra.mxu0 %v1236_v30 }
  0x25   : > { %1140 = vmatpush3.bf16.msra.mxu1 %v1237_v31  ;;  %1173 = vmatprep.subr.bf16.mxu0 %v1244_v36 }
  0x26   : > { %1189 = vmatprep.subr.bf16.mxu1 %v1244_v36 }
  0x27   : > { %643 = vmatmul.mubr.bf16.vlgmr.msra.gmra.mrb[0].mxu0 %v1238_v32 }
  0x28   : > { %708 = vmatmul.mubr.bf16.vlgmr.msra.gmra.mrb[0].mxu1 %v1241_v34  ;;  %1174 = vmatpush3.bf16.msra.mxu0 %v1244_v36 }
  0x29   : > { %650 = vmatprep.mubr.bf16.mxu0 %v1245_v37  ;;  %715 = vmatprep.mubr.bf16.mxu1 %v1247_v38 }
  0x2a   : > { %1193 = vmatpush3.bf16.msra.mxu1 %v1244_v36  ;;  %1175 = vmatprep.subr.bf16.mxu0 %v1251_v39 }
  0x2b   : > { %1190 = vmatprep.subr.bf16.mxu1 %v1251_v39 }
  0x2c   : > { %1176 = vmatpush3.bf16.msra.mxu0 %v1251_v39 }
  0x2d   : > { %1177 = vmatprep.subr.bf16.mxu0 %v1258_v44 }
  0x2e   : > { %1194 = vmatpush3.bf16.msra.mxu1 %v1251_v39 }
  0x2f   : > { %651 = vmatmul.mubr.bf16.gmra.mrb[4].mxu0 %v1249_v40  ;;  %1191 = vmatprep.subr.bf16.mxu1 %v1258_v44 }
  0x30   : > { %716 = vmatmul.mubr.bf16.gmra.mrb[4].mxu1 %v1250_v41  ;;  %658 = vmatprep.mubr.bf16.mxu0 %v1252_v42 }
  0x31   : > { %723 = vmatprep.mubr.bf16.mxu1 %v1254_v43  ;;  %1178 = vmatpush3.bf16.msra.mxu0 %v1258_v44 }
  0x32   : > { %1179 = vmatprep.subr.bf16.mxu0 %v1265_v45  ;;  %1195 = vmatpush3.bf16.msra.mxu1 %v1258_v44 }
  0x33   : > { %1192 = vmatprep.subr.bf16.mxu1 %v1265_v45 }
  0x35   : > { %1180 = vmatpush3.bf16.msra.mxu0 %v1265_v45 }
  0x36   : > { %1196 = vmatpush3.bf16.msra.mxu1 %v1265_v45 }
  0x37   : > { %659 = vmatmul.mubr.bf16.gmra.mrb[8].mxu0 %v1256_v46 }
  0x38   : > { %724 = vmatmul.mubr.bf16.gmra.mrb[8].mxu1 %v1257_v47  ;;  %666 = vmatprep.mubr.bf16.mxu0 %v1259_v48 }
  0x39   : > { %731 = vmatprep.mubr.bf16.mxu1 %v1261_v49 }
  0x3f   : > { %667 = vmatmul.mubr.bf16.gmra.mrb[12].mxu0 %v1263_v50 }
  0x40   : > { %732 = vmatmul.mubr.bf16.gmra.mrb[12].mxu1 %v1264_v51  ;;  %1181 = vmatprep.mubr.msk.bf16.mxu0 %vm597_vm0, %v1266_v52 }
  0x41   : > { %1185 = vmatprep.mubr.msk.bf16.mxu1 %vm597_vm0, %v1267_v53 }
  0x47   : > { %1182 = vmatmul.mubr.msk.bf16.vlgmr.msra.gmra.mrb[16].mxu0 %vm597_vm0, %v1268_v54 }
  0x48   : > { %1186 = vmatmul.mubr.msk.bf16.vlgmr.msra.gmra.mrb[16].mxu1 %vm597_vm0, %v1269_v55 }
  0xfa   : > { %v1101_v56 = vpop.f32.mrb[0].mxu0 }
  0xfb   : > { %v1102_v58 = vpop.f32.mrb[1].mxu0  ;;  %v1141_v59 = vpop.f32.mrb[0].mxu1 }
  0xfc   : > { %v1103_v60 = vadd.f32 %v1102_v58, %v1101_v56  ;;  %v1104_v61 = vpop.f32.mrb[2].mxu0  ;;  %v1142_v62 = vpop.f32.mrb[1].mxu1 }
  0xfd   : > { %v1105_v63 = vpop.f32.mrb[3].mxu0  ;;  %v1143_v0 = vadd.f32 %v1142_v62, %v1141_v59  ;;  %v1144_v1 = vpop.f32.mrb[2].mxu1 }
  0xfe   : > { %v645_v2 = vadd.f32 %v1103_v60, %v983_v57  ;;  %v1106_v3 = vadd.f32 %v1105_v63, %v1104_v61  ;;  %v1145_v4 = vpop.f32.mrb[3].mxu1 }
  0xff   : > { %v1146_v5 = vadd.f32 %v1145_v4, %v1144_v1 }
 0x100   : > { %v648_v6 = vadd.f32 %v1106_v3, %v983_v57  ;;  %v710_v7 = vadd.f32 %v1143_v0, %v645_v2 }
 0x102   : > { %v1107_v8 = vpop.f32.mrb[4].mxu0  ;;  %v1449_v9 = vadd.f32 %v1146_v5, %v648_v6 }
 0x103   : > { %v1108_v10 = vpop.f32.mrb[5].mxu0  ;;  %v1147_v11 = vpop.f32.mrb[4].mxu1 }
 0x104   : > { %v1109_v12 = vadd.f32 %v1108_v10, %v1107_v8  ;;  %v1110_v13 = vpop.f32.mrb[6].mxu0  ;;  %v1148_v14 = vpop.f32.mrb[5].mxu1 }
 0x105   : > { %v1111_v15 = vpop.f32.mrb[7].mxu0  ;;  %v1149_v16 = vadd.f32 %v1148_v14, %v1147_v11  ;;  %v1150_v17 = vpop.f32.mrb[6].mxu1 }
 0x106   : > { %v653_v18 = vadd.f32 %v1109_v12, %v983_v57  ;;  %v1112_v19 = vadd.f32 %v1111_v15, %v1110_v13  ;;  %v1151_v20 = vpop.f32.mrb[7].mxu1 }
 0x107   : > { %v1152_v21 = vadd.f32 %v1151_v20, %v1150_v17 }
 0x108   : > { %v656_v22 = vadd.f32 %v1112_v19, %v983_v57  ;;  %v718_v23 = vadd.f32 %v1149_v16, %v653_v18 }
 0x10a   : > { %v1113_v24 = vpop.f32.mrb[8].mxu0  ;;  %v721_v25 = vadd.f32 %v1152_v21, %v656_v22 }
 0x10b   : > { %v1114_v26 = vpop.f32.mrb[9].mxu0  ;;  %v1153_v27 = vpop.f32.mrb[8].mxu1 }
 0x10c   : > { %v1115_v28 = vadd.f32 %v1114_v26, %v1113_v24  ;;  %v1116_v29 = vpop.f32.mrb[10].mxu0  ;;  %v1154_v30 = vpop.f32.mrb[9].mxu1 }
 0x10d   : > { %v1117_v31 = vpop.f32.mrb[11].mxu0  ;;  %v1155_v32 = vadd.f32 %v1154_v30, %v1153_v27  ;;  %v1156_v33 = vpop.f32.mrb[10].mxu1 }
 0x10e   : > { %v661_v34 = vadd.f32 %v1115_v28, %v983_v57  ;;  %v1118_v35 = vadd.f32 %v1117_v31, %v1116_v29  ;;  %v1157_v36 = vpop.f32.mrb[11].mxu1 }
 0x10f   : > { %v1158_v37 = vadd.f32 %v1157_v36, %v1156_v33 }
 0x110   : > { %v664_v38 = vadd.f32 %v1118_v35, %v983_v57  ;;  %v726_v39 = vadd.f32 %v1155_v32, %v661_v34 }
 0x112   : > { %v1119_v40 = vpop.f32.mrb[12].mxu0  ;;  %v729_v41 = vadd.f32 %v1158_v37, %v664_v38 }
 0x113   : > { %v1120_v42 = vpop.f32.mrb[13].mxu0  ;;  %v1159_v43 = vpop.f32.mrb[12].mxu1 }
 0x114   : > { %v1121_v44 = vadd.f32 %v1120_v42, %v1119_v40  ;;  %v1122_v45 = vpop.f32.mrb[14].mxu0  ;;  %v1160_v46 = vpop.f32.mrb[13].mxu1 }
 0x115   : > { %v1123_v47 = vpop.f32.mrb[15].mxu0  ;;  %v1161_v48 = vadd.f32 %v1160_v46, %v1159_v43  ;;  %v1162_v49 = vpop.f32.mrb[14].mxu1 }
 0x116   : > { %v669_v50 = vadd.f32 %v1121_v44, %v983_v57  ;;  %v1124_v51 = vadd.f32 %v1123_v47, %v1122_v45  ;;  %v1163_v52 = vpop.f32.mrb[15].mxu1 }
 0x117   : > { %v1164_v53 = vadd.f32 %v1163_v52, %v1162_v49 }
 0x118   : > { %v672_v54 = vadd.f32 %v1124_v51, %v983_v57  ;;  %v734_v55 = vadd.f32 %v1161_v48, %v669_v50 }
 0x11a   : > { %v1183_v56 = vpop.f32.mrb[16].mxu0  ;;  %v737_v58 = vadd.f32 %v1164_v53, %v672_v54 }
 0x11b   : > { %v783_v59 = vadd.f32 %v1183_v56, %v718_v23  ;;  %v1187_v60 = vpop.f32.mrb[16].mxu1  ;;  %v774_v61 = vpop.f32.mrb[17].mxu0 }
 0x11c   : > { %v799_v62 = vadd.f32 %v1187_v60, %v734_v55  ;;  %v775_v63 = vadd.f32 %v774_v61, %v710_v7  ;;  %v790_v0 = vpop.f32.mrb[17].mxu1  ;;  %v1184_v1 = vpop.f32.mrb[18].mxu0 }
 0x11d   : > { %v791_v2 = vadd.f32 %v790_v0, %v726_v39  ;;  %v786_v3 = vadd.f32 %v1184_v1, %v721_v25  ;;  %v1188_v4 = vpop.f32.mrb[18].mxu1  ;;  %v777_v5 = vpop.f32.mrb[19].mxu0  ;;  %v807_v6 = vmul.f32 0.2, %v783_v59 }
 0x11e   : > { %v805_v8 = vmul.f32 0.2, %v775_v63  ;;  %v802_v10 = vadd.f32 %v1188_v4, %v737_v58  ;;  %v778_v11 = vadd.f32 %v777_v5, %v1449_v9  ;;  %v793_v57 = vpop.f32.mrb[19].mxu1  ;;  %v811_v23 = vmul.f32 0.2, %v799_v62 }
 0x11f   : > { %v808_v12 = vmul.f32 0.2, %v786_v3  ;;  %v794_v13 = vadd.f32 %v793_v57, %v729_v41  ;;  %v1454_v16 = vmax.f32 %v783_v59, %v807_v6  ;;  %v809_v7 = vmul.f32 0.2, %v791_v2 }
 0x120   : > { %v1452_v14 = vmax.f32 %v775_v63, %v805_v8  ;;  %v806_v15 = vmul.f32 0.2, %v778_v11  ;;  %v812_v27 = vmul.f32 0.2, %v802_v10  ;;  %v819_v32 = vmax.f32 %v799_v62, %v811_v23 }
 0x121   : > { %v816_v18 = vmax.f32 %v786_v3, %v808_v12  ;;  %v810_v22 = vmul.f32 0.2, %v794_v13  ;;  %v838_v9 = vmul.f32 %v1454_v16, %v1454_v16  ;;  %v817_v24 = vmax.f32 %v791_v2, %v809_v7 }
 0x122   : > { %v814_v17 = vmax.f32 %v778_v11, %v806_v15  ;;  %v836_v19 = vmul.f32 %v1452_v14, %v1452_v14  ;;  %v820_v36 = vmax.f32 %v802_v10, %v812_v27  ;;  %v842_v40 = vmul.f32 %v819_v32, %v819_v32 }
 0x123   : > { %v839_v28 = vmul.f32 %v816_v18, %v816_v18  ;;  %v818_v30 = vmax.f32 %v794_v13, %v810_v22  ;;  %v840_v33 = vmul.f32 %v817_v24, %v817_v24 }
 0x124   : > { %v821_v20 = vadd.f32 %v814_v17, %v1452_v14  ;;  %v837_v21 = vmul.f32 %v814_v17, %v814_v17  ;;  %v843_v43 = vmul.f32 %v820_v36, %v820_v36 }
 0x125   : > { %v841_v38 = vmul.f32 %v818_v30, %v818_v30 }
 0x126   : > { %v822_v25 = vadd.f32 %v821_v20, %v1454_v16  ;;  %v844_v26 = vadd.f32 %v837_v21, %v836_v19 }
 0x128   : > { %v845_v29 = vadd.f32 %v844_v26, %v838_v9  ;;  %v823_v31 = vadd.f32 %v822_v25, %v816_v18 }
 0x12a   : > { %v824_v34 = vadd.f32 %v823_v31, %v817_v24  ;;  %v846_v35 = vadd.f32 %v845_v29, %v839_v28 }
 0x12c   : > { %v825_v37 = vadd.f32 %v824_v34, %v818_v30  ;;  %v847_v39 = vadd.f32 %v846_v35, %v840_v33 }
 0x12e   : > { %v826_v41 = vadd.f32 %v825_v37, %v819_v32  ;;  %v848_v42 = vadd.f32 %v847_v39, %v841_v38 }
 0x130   : > { %v827_v44 = vadd.f32 %v826_v41, %v820_v36  ;;  %v849_v45 = vadd.f32 %v848_v42, %v842_v40 }
 0x132   : > { %v828_v46 = vrot.slane %v827_v44, 4  ;;  %v850_v47 = vadd.f32 %v849_v45, %v843_v43 }
 0x134   : > { %v829_v48 = vadd.f32 %v828_v46, %v827_v44  ;;  %v851_v49 = vrot.slane %v850_v47, 4 }
 0x136   : > { %v830_v50 = vrot.slane %v829_v48, 2  ;;  %v852_v51 = vadd.f32 %v851_v49, %v850_v47 }
 0x138   : > { %v831_v52 = vadd.f32 %v830_v50, %v829_v48  ;;  %v853_v53 = vrot.slane %v852_v51, 2 }
 0x13a   : > { %v832_v54 = vrot.slane %v831_v52, 1  ;;  %v854_v55 = vadd.f32 %v853_v53, %v852_v51 }
 0x13c   : > { %v833_v56 = vadd.f32 %v832_v54, %v831_v52  ;;  %v855_v58 = vrot.slane %v854_v55, 1 }
 0x13e   : > { %v835_v59 = vmul.f32 0.015625, %v833_v56  ;;  %v856_v60 = vadd.f32 %v855_v58, %v854_v55 }
 0x140   : > { %v857_v61 = vmul.f32 0.015625, %v856_v60  ;;  %v858_v62 = vmul.f32 %v835_v59, %v835_v59  ;;  %v860_v63 = vsub.f32 %v1452_v14, %v835_v59  ;;  %v861_v0 = vsub.f32 %v814_v17, %v835_v59 }
 0x141   : > { %v862_v1 = vsub.f32 %v1454_v16, %v835_v59  ;;  %v863_v2 = vsub.f32 %v816_v18, %v835_v59  ;;  %v864_v3 = vsub.f32 %v817_v24, %v835_v59  ;;  %v865_v4 = vsub.f32 %v818_v30, %v835_v59 }
 0x142   : > { %v859_v5 = vsub.f32 %v857_v61, %v858_v62  ;;  %v866_v6 = vsub.f32 %v819_v32, %v835_v59  ;;  %v867_v8 = vsub.f32 %v820_v36, %v835_v59 }
 0x144   : > { %v868_v10 = vadd.f32 1e-05, %v859_v5 }
 0x146   : > { %1270 = vrsqrt.f32 %v868_v10 }
 0x150   : > { %v1271_v11 = vpop.eup %1270 }
 0x151   : > { %v870_v57 = vmul.f32 %v1271_v11, %v860_v63  ;;  %v871_v12 = vmul.f32 %v1271_v11, %v861_v0  ;;  %v872_v13 = vmul.f32 %v1271_v11, %v862_v1  ;;  %v873_v15 = vmul.f32 %v1271_v11, %v863_v2 }
 0x152   : > { %v874_v14 = vmul.f32 %v1271_v11, %v864_v3  ;;  %v875_v16 = vmul.f32 %v1271_v11, %v865_v4  ;;  %v876_v7 = vmul.f32 %v1271_v11, %v866_v6  ;;  %v877_v17 = vmul.f32 %v1271_v11, %v867_v8 }
 0x153   : > { %v1065_v18 = vpack.c.bf16 %v871_v12, %v870_v57  ;;  %v1070_v19 = vpack.c.bf16 %v873_v15, %v872_v13 }
 0x154   : > { %v1075_v20 = vpack.c.bf16 %v875_v16, %v874_v14  ;;  %v1080_v21 = vpack.c.bf16 %v877_v17, %v876_v7 }
 0x155   : > { %1066 = vst [vmem:[%s175_s21] sm:$0xff] %v1065_v18   ;;  %1082 = vst [vmem:[%s175_s21 + $0x8] sm:$0xff] %v1070_v19  }
 0x156   : > { %1083 = vst [vmem:[%s175_s21 + $0x10] sm:$0xff] %v1075_v20   ;;  %1084 = vst [vmem:[%s175_s21 + $0x18] sm:$0xff] %v1080_v21  }
 0x157 PF: > { %s13_s12 = sadd.s32 1, %s1278_s12  }
 0x158   : > { %p10_p4 = scmp.ge.s32.totalorder %s13_s12, 4  }
 0x15a   :  { %12 = sbr.rel (!%p10_p4) target bundleno = 1 (0x1), region = 62 }

// kernel: classifier_forward.6
= control target key start
LH: loop header
LB: loop body
LE: loop exit
PB: predicated region body
PF: predicated region fallthrough
CT: control target
= control target key end

     0   :  { %s1922_s12 = smov 0   ;;  %s2391_s0 = inlined_call_operand.vmem [shape: bf16[32,1152], index: 0, kind: input, shape index: {}]   ;;  %s2392_s1 = inlined_call_operand.vmem [shape: bf16[1152,256], index: 1, kind: input, shape index: {}]   ;;  %s2393_s2 = inlined_call_operand.vmem [shape: f32[1,256], index: 2, kind: input, shape index: {}]   ;;  %s2394_s3 = inlined_call_operand.vmem [shape: bf16[32,256], index: 3, kind: output, shape index: {}]  }
   0x1 LB: > { %s1460_s13 = sadd.s32 4294967295, %s1899_s12   ;;  %p1464_p0 = scmp.ge.s32.totalorder %s1899_s12, 1  ;;  %s1899_s12 = sphi %s1922_s12, %s13_s12  }
   0x2   : > { %p139_p1 = scmp.lt.s32.totalorder %s1899_s12, 3 }
   0x4   : > { %p140_p2 = pnand %p1464_p0, %p139_p1 }
   0x5   : > { %v1660_v0 = vld [vmem:[%s2392_s1 + $0x4] ss:$8 sps:$4 sm:$0xff] (!%p140_p2)   ;;  %v1664_v2 = vld [vmem:[%s2392_s1] ss:$8 sps:$4 sm:$0xff] (!%p140_p2)   ;;  %v1666_v4 = vld [vmem:[%s2392_s1 + $0x14] ss:$8 sps:$4 sm:$0xff] (!%p140_p2)  }
   0x6   : > { %143 = sbr.rel (%p140_p2) target bundleno = 426 (0x1aa), region = 32  ;;  %v1662_v1 = vld [vmem:[%s2392_s1 + $0x204] ss:$8 sps:$4 sm:$0xff] (!%p140_p2)   ;;  %1112 = vmatprep.subr.bf16.mxu1 (!%p140_p2), %v1660_v0  ;;  %v1665_v3 = vld [vmem:[%s2392_s1 + $0x200] ss:$8 sps:$4 sm:$0xff] (!%p140_p2)   ;;  %s1465_s24 = sshll.u32 (!%p140_p2), %s1460_s13, 1 }
   0x7   : > { %1198 = vmatprep.subr.bf16.mxu0 (!%p140_p2), %v1662_v1  ;;  %1113 = vmatpush1.bf16.msra.mxu1 (!%p140_p2), %v1664_v2  ;;  %v1668_v5 = vld [vmem:[%s2392_s1 + $0x214] ss:$8 sps:$4 sm:$0xff] (!%p140_p2)   ;;  %v1670_v6 = vld [vmem:[%s2392_s1 + $0x10] ss:$8 sps:$4 sm:$0xff] (!%p140_p2)   ;;  %v1672_v8 = vld [vmem:[%s2392_s1 + $0x24] ss:$8 sps:$4 sm:$0xff] (!%p140_p2)  }
   0x8   : > { %1199 = vmatpush1.bf16.msra.mxu0 (!%p140_p2), %v1665_v3  ;;  %1114 = vmatprep.subr.bf16.mxu1 (!%p140_p2), %v1666_v4  ;;  %v1671_v7 = vld [vmem:[%s2392_s1 + $0x210] ss:$8 sps:$4 sm:$0xff] (!%p140_p2)   ;;  %v1674_v9 = vld [vmem:[%s2392_s1 + $0x224] ss:$8 sps:$4 sm:$0xff] (!%p140_p2)   ;;  %v1676_v10 = vld [vmem:[%s2392_s1 + $0x20] ss:$8 sps:$4 sm:$0xff] (!%p140_p2)  }
   0x9   : > { %1200 = vmatprep.subr.bf16.mxu0 (!%p140_p2), %v1668_v5  ;;  %v1677_v11 = vld [vmem:[%s2392_s1 + $0x220] ss:$8 sps:$4 sm:$0xff] (!%p140_p2)   ;;  %v1678_v12 = vld [vmem:[%s2392_s1 + $0x34] ss:$8 sps:$4 sm:$0xff] (!%p140_p2)   ;;  %v1682_v14 = vld [vmem:[%s2392_s1 + $0x30] ss:$8 sps:$4 sm:$0xff] (!%p140_p2)  }
   0xa   : > { %v1680_v13 = vld [vmem:[%s2392_s1 + $0x234] ss:$8 sps:$4 sm:$0xff] (!%p140_p2)   ;;  %v1683_v15 = vld [vmem:[%s2392_s1 + $0x230] ss:$8 sps:$4 sm:$0xff] (!%p140_p2)   ;;  %v1684_v16 = vld [vmem:[%s2392_s1 + $0x44] ss:$8 sps:$4 sm:$0xff] (!%p140_p2)  }
   0xb   : > { %1115 = vmatpush1.bf16.msra.mxu1 (!%p140_p2), %v1670_v6  ;;  %v1686_v17 = vld [vmem:[%s2392_s1 + $0x244] ss:$8 sps:$4 sm:$0xff] (!%p140_p2)   ;;  %v1688_v18 = vld [vmem:[%s2392_s1 + $0x40] ss:$8 sps:$4 sm:$0xff] (!%p140_p2)   ;;  %v1690_v20 = vld [vmem:[%s2392_s1 + $0x54] ss:$8 sps:$4 sm:$0xff] (!%p140_p2)  }
   0xc   : > { %1201 = vmatpush1.bf16.msra.mxu0 (!%p140_p2), %v1671_v7  ;;  %1116 = vmatprep.subr.bf16.mxu1 (!%p140_p2), %v1672_v8  ;;  %v1689_v19 = vld [vmem:[%s2392_s1 + $0x240] ss:$8 sps:$4 sm:$0xff] (!%p140_p2)   ;;  %v1692_v21 = vld [vmem:[%s2392_s1 + $0x254] ss:$8 sps:$4 sm:$0xff] (!%p140_p2)   ;;  %v1694_v22 = vld [vmem:[%s2392_s1 + $0x50] ss:$8 sps:$4 sm:$0xff] (!%p140_p2)  }
   0xd   : > { %1202 = vmatprep.subr.bf16.mxu0 %v1674_v9  ;;  %v1695_v23 = vld [vmem:[%s2392_s1 + $0x250] ss:$8 sps:$4 sm:$0xff]   ;;  %v1696_v24 = vld [vmem:[%s2392_s1 + $0x64] ss:$8 sps:$4 sm:$0xff]   ;;  %v1700_v26 = vld [vmem:[%s2392_s1 + $0x60] ss:$8 sps:$4 sm:$0xff]  }
   0xe   : > { %v1698_v25 = vld [vmem:[%s2392_s1 + $0x264] ss:$8 sps:$4 sm:$0xff]   ;;  %v1701_v27 = vld [vmem:[%s2392_s1 + $0x260] ss:$8 sps:$4 sm:$0xff]   ;;  %v1702_v28 = vld [vmem:[%s2392_s1 + $0x74] ss:$8 sps:$4 sm:$0xff]  }
   0xf   : > { %1117 = vmatpush1.bf16.msra.mxu1 %v1676_v10  ;;  %v1704_v29 = vld [vmem:[%s2392_s1 + $0x274] ss:$8 sps:$4 sm:$0xff]   ;;  %v1706_v30 = vld [vmem:[%s2392_s1 + $0x70] ss:$8 sps:$4 sm:$0xff]   ;;  %v1708_v32 = vld [vmem:[%s2392_s1 + $0x84] ss:$8 sps:$4 sm:$0xff]  }
  0x10   : > { %1203 = vmatpush1.bf16.msra.mxu0 %v1677_v11  ;;  %1118 = vmatprep.subr.bf16.mxu1 %v1678_v12  ;;  %v1707_v31 = vld [vmem:[%s2392_s1 + $0x270] ss:$8 sps:$4 sm:$0xff]   ;;  %p166_p3 = scmp.lt.s32.totalorder %s1465_s24, 3  ;;  %v1710_v33 = vld [vmem:[%s2392_s1 + $0x284] ss:$8 sps:$4 sm:$0xff]  }
  0x11   : > { %1204 = vmatprep.subr.bf16.mxu0 %v1680_v13  ;;  %v1712_v34 = vld [vmem:[%s2392_s1 + $0x80] ss:$8 sps:$4 sm:$0xff]   ;;  %v1714_v36 = vld [vmem:[%s2392_s1 + $0x94] ss:$8 sps:$4 sm:$0xff]   ;;  %v1718_v38 = vld [vmem:[%s2392_s1 + $0x90] ss:$8 sps:$4 sm:$0xff]  }
  0x12   : > { %v1713_v35 = vld [vmem:[%s2392_s1 + $0x280] ss:$8 sps:$4 sm:$0xff]   ;;  %s2396_s24 = smov (!%p166_p3, %s1465_s24), 3  ;;  %v1716_v37 = vld [vmem:[%s2392_s1 + $0x294] ss:$8 sps:$4 sm:$0xff]  }
  0x13   : > { %1119 = vmatpush1.bf16.msra.mxu1 %v1682_v14  ;;  %v1719_v39 = vld [vmem:[%s2392_s1 + $0x290] ss:$8 sps:$4 sm:$0xff]   ;;  %v1720_v40 = vld [vmem:[%s2392_s1 + $0xa4] ss:$8 sps:$4 sm:$0xff]   ;;  %s1650_s21 = smul.u32 36, %s2396_s24 }
  0x14   : > { %1205 = vmatpush1.bf16.msra.mxu0 %v1683_v15  ;;  %1120 = vmatprep.subr.bf16.mxu1 %v1684_v16  ;;  %v1722_v41 = vld [vmem:[%s2392_s1 + $0x2a4] ss:$8 sps:$4 sm:$0xff]   ;;  %v1724_v42 = vld [vmem:[%s2392_s1 + $0xa0] ss:$8 sps:$4 sm:$0xff]   ;;  %v1726_v44 = vld [vmem:[%s2392_s1 + $0xb4] ss:$8 sps:$4 sm:$0xff]  }
  0x15   : > { %1206 = vmatprep.subr.bf16.mxu0 %v1686_v17  ;;  %v1725_v43 = vld [vmem:[%s2392_s1 + $0x2a0] ss:$8 sps:$4 sm:$0xff]   ;;  %s2073_s13 = scalar_lea.vmem %s2391_s0, %s1650_s21  ;;  %v1728_v45 = vld [vmem:[%s2392_s1 + $0x2b4] ss:$8 sps:$4 sm:$0xff]   ;;  %v1730_v46 = vld [vmem:[%s2392_s1 + $0xb0] ss:$8 sps:$4 sm:$0xff]  }
  0x16   : > { %v1731_v47 = vld [vmem:[%s2392_s1 + $0x2b0] ss:$8 sps:$4 sm:$0xff]   ;;  %v1758_v48 = vld [vmem:[%s2073_s13 + $0x4] ss:$36 sps:$4 sm:$0xff]   ;;  %v1738_v54 = vld [vmem:[%s2392_s1 + $0xd4] ss:$8 sps:$4 sm:$0xff]  }
  0x17   : > { %1121 = vmatpush1.bf16.msra.mxu1 %v1688_v18  ;;  %v1732_v49 = vld [vmem:[%s2392_s1 + $0xc4] ss:$8 sps:$4 sm:$0xff]   ;;  %1144 = vmatprep.mubr.bf16.mxu1 %v1758_v48  ;;  %v1764_v51 = vld [vmem:[%s2073_s13 + $0x14] ss:$36 sps:$4 sm:$0xff]   ;;  %v1736_v52 = vld [vmem:[%s2392_s1 + $0xc0] ss:$8 sps:$4 sm:$0xff]  }
  0x18   : > { %1207 = vmatpush1.bf16.msra.mxu0 %v1689_v19  ;;  %1122 = vmatprep.subr.bf16.mxu1 %v1690_v20  ;;  %v1734_v50 = vld [vmem:[%s2392_s1 + $0x2c4] ss:$8 sps:$4 sm:$0xff]   ;;  %v1737_v53 = vld [vmem:[%s2392_s1 + $0x2c0] ss:$8 sps:$4 sm:$0xff]   ;;  %v1740_v55 = vld [vmem:[%s2392_s1 + $0x2d4] ss:$8 sps:$4 sm:$0xff]  }
  0x19   : > { %1208 = vmatprep.subr.bf16.mxu0 %v1692_v21  ;;  %1230 = vmatprep.mubr.bf16.mxu0 %v1764_v51  ;;  %v1742_v56 = vld [vmem:[%s2392_s1 + $0xd0] ss:$8 sps:$4 sm:$0xff]   ;;  %v1744_v58 = vld [vmem:[%s2392_s1 + $0xe4] ss:$8 sps:$4 sm:$0xff]   ;;  %v1748_v60 = vld [vmem:[%s2392_s1 + $0xe0] ss:$8 sps:$4 sm:$0xff]  }
  0x1a   : > { %v1743_v57 = vld [vmem:[%s2392_s1 + $0x2d0] ss:$8 sps:$4 sm:$0xff]   ;;  %v1746_v59 = vld [vmem:[%s2392_s1 + $0x2e4] ss:$8 sps:$4 sm:$0xff]   ;;  %v1749_v61 = vld [vmem:[%s2392_s1 + $0x2e0] ss:$8 sps:$4 sm:$0xff]  }
  0x1b   : > { %1123 = vmatpush1.bf16.msra.mxu1 %v1694_v22  ;;  %v1750_v62 = vld [vmem:[%s2392_s1 + $0xf4] ss:$8 sps:$4 sm:$0xff]   ;;  %v1754_v0 = vld [vmem:[%s2392_s1 + $0xf0] ss:$8 sps:$4 sm:$0xff]   ;;  %v1761_v2 = vld [vmem:[%s2392_s1 + $0x104] ss:$8 sps:$4 sm:$0xff]  }
  0x1c   : > { %1209 = vmatpush1.bf16.msra.mxu0 %v1695_v23  ;;  %1124 = vmatprep.subr.bf16.mxu1 %v1696_v24  ;;  %v1752_v63 = vld [vmem:[%s2392_s1 + $0x2f4] ss:$8 sps:$4 sm:$0xff]   ;;  %v1755_v1 = vld [vmem:[%s2392_s1 + $0x2f0] ss:$8 sps:$4 sm:$0xff]   ;;  %v1767_v3 = vld [vmem:[%s2392_s1 + $0x304] ss:$8 sps:$4 sm:$0xff]  }
  0x1d   : > { %1210 = vmatprep.subr.bf16.mxu0 %v1698_v25  ;;  %v1756_v4 = vld [vmem:[%s2073_s13] ss:$36 sps:$4 sm:$0xff]   ;;  %v1762_v6 = vld [vmem:[%s2073_s13 + $0x10] ss:$36 sps:$4 sm:$0xff]  }
  0x1e   : > { %v1759_v5 = vld [vmem:[%s2392_s1 + $0x100] ss:$8 sps:$4 sm:$0xff]   ;;  %v1770_v8 = vld [vmem:[%s2392_s1 + $0x114] ss:$8 sps:$4 sm:$0xff]   ;;  %v1768_v10 = vld [vmem:[%s2392_s1 + $0x110] ss:$8 sps:$4 sm:$0xff]  }
  0x1f   : > { %1125 = vmatpush1.bf16.msra.mxu1 %v1700_v26  ;;  %v1765_v7 = vld [vmem:[%s2392_s1 + $0x300] ss:$8 sps:$4 sm:$0xff]   ;;  %v1773_v9 = vld [vmem:[%s2392_s1 + $0x314] ss:$8 sps:$4 sm:$0xff]   ;;  %v1771_v11 = vld [vmem:[%s2392_s1 + $0x310] ss:$8 sps:$4 sm:$0xff]  }
  0x20   : > { %1211 = vmatpush1.bf16.msra.mxu0 %v1701_v27  ;;  %1126 = vmatprep.subr.bf16.mxu1 %v1702_v28  ;;  %v1776_v12 = vld [vmem:[%s2392_s1 + $0x124] ss:$8 sps:$4 sm:$0xff]   ;;  %v1774_v14 = vld [vmem:[%s2392_s1 + $0x120] ss:$8 sps:$4 sm:$0xff]   ;;  %v1782_v16 = vld [vmem:[%s2392_s1 + $0x134] ss:$8 sps:$4 sm:$0xff]  }
  0x21   : > { %1212 = vmatprep.subr.bf16.mxu0 %v1704_v29  ;;  %v1779_v13 = vld [vmem:[%s2392_s1 + $0x324] ss:$8 sps:$4 sm:$0xff]   ;;  %v1777_v15 = vld [vmem:[%s2392_s1 + $0x320] ss:$8 sps:$4 sm:$0xff]   ;;  %v1785_v17 = vld [vmem:[%s2392_s1 + $0x334] ss:$8 sps:$4 sm:$0xff]  }
  0x22   : > { %v1780_v18 = vld [vmem:[%s2392_s1 + $0x130] ss:$8 sps:$4 sm:$0xff]   ;;  %v1788_v20 = vld [vmem:[%s2392_s1 + $0x144] ss:$8 sps:$4 sm:$0xff]   ;;  %v1786_v22 = vld [vmem:[%s2392_s1 + $0x140] ss:$8 sps:$4 sm:$0xff]  }
  0x23   : > { %1127 = vmatpush1.bf16.msra.mxu1 %v1706_v30  ;;  %v1783_v19 = vld [vmem:[%s2392_s1 + $0x330] ss:$8 sps:$4 sm:$0xff]   ;;  %v1791_v21 = vld [vmem:[%s2392_s1 + $0x344] ss:$8 sps:$4 sm:$0xff]   ;;  %v1789_v23 = vld [vmem:[%s2392_s1 + $0x340] ss:$8 sps:$4 sm:$0xff]  }
  0x24   : > { %1213 = vmatpush1.bf16.msra.mxu0 %v1707_v31  ;;  %1128 = vmatprep.subr.bf16.mxu1 %v1708_v32  ;;  %v1794_v24 = vld [vmem:[%s2392_s1 + $0x154] ss:$8 sps:$4 sm:$0xff]   ;;  %v1792_v26 = vld [vmem:[%s2392_s1 + $0x150] ss:$8 sps:$4 sm:$0xff]   ;;  %v1800_v28 = vld [vmem:[%s2392_s1 + $0x164] ss:$8 sps:$4 sm:$0xff]  }
  0x25   : > { %1214 = vmatprep.subr.bf16.mxu0 %v1710_v33  ;;  %v1797_v25 = vld [vmem:[%s2392_s1 + $0x354] ss:$8 sps:$4 sm:$0xff]   ;;  %v1795_v27 = vld [vmem:[%s2392_s1 + $0x350] ss:$8 sps:$4 sm:$0xff]   ;;  %v1803_v29 = vld [vmem:[%s2392_s1 + $0x364] ss:$8 sps:$4 sm:$0xff]  }
  0x26   : > { %v1798_v30 = vld [vmem:[%s2392_s1 + $0x160] ss:$8 sps:$4 sm:$0xff]   ;;  %v1806_v32 = vld [vmem:[%s2392_s1 + $0x174] ss:$8 sps:$4 sm:$0xff]  }
  0x27   : > { %1129 = vmatpush1.bf16.msra.mxu1 %v1712_v34  ;;  %v1801_v31 = vld [vmem:[%s2392_s1 + $0x360] ss:$8 sps:$4 sm:$0xff]   ;;  %v1809_v33 = vld [vmem:[%s2392_s1 + $0x374] ss:$8 sps:$4 sm:$0xff]   ;;  %v1860_v34 = vld [vmem:[%s2073_s13 + $0xc] ss:$36 sps:$4 sm:$0xff]  }
  0x28   : > { %1215 = vmatpush1.bf16.msra.mxu0 %v1713_v35  ;;  %1130 = vmatprep.subr.bf16.mxu1 %v1714_v36  ;;  %v1863_v35 = vld [vmem:[%s2073_s13 + $0x1c] ss:$36 sps:$4 sm:$0xff]   ;;  %v1804_v36 = vld [vmem:[%s2392_s1 + $0x170] ss:$8 sps:$4 sm:$0xff]  }
  0x29   : > { %1216 = vmatprep.subr.bf16.mxu0 %v1716_v37  ;;  %v1807_v37 = vld [vmem:[%s2392_s1 + $0x370] ss:$8 sps:$4 sm:$0xff]   ;;  %v1822_v48 = vld [vmem:[%s2392_s1 + $0x1a0] ss:$8 sps:$4 sm:$0xff]   ;;  %v1833_v51 = vld [vmem:[%s2392_s1 + $0x3b4] ss:$8 sps:$4 sm:$0xff]  }
  0x2b   : > { %1131 = vmatpush1.bf16.msra.mxu1 %v1718_v38  ;;  %v1812_v38 = vld [vmem:[%s2392_s1 + $0x184] ss:$8 sps:$4 sm:$0xff]  }
  0x2c   : > { %1217 = vmatpush1.bf16.msra.mxu0 %v1719_v39  ;;  %1132 = vmatprep.subr.bf16.mxu1 %v1720_v40  ;;  %v1815_v39 = vld [vmem:[%s2392_s1 + $0x384] ss:$8 sps:$4 sm:$0xff]   ;;  %v1810_v40 = vld [vmem:[%s2392_s1 + $0x180] ss:$8 sps:$4 sm:$0xff]  }
  0x2d   : > { %1218 = vmatprep.subr.bf16.mxu0 %v1722_v41  ;;  %v1813_v41 = vld [vmem:[%s2392_s1 + $0x380] ss:$8 sps:$4 sm:$0xff]  }
  0x2f   : > { %1133 = vmatpush1.bf16.msra.mxu1 %v1724_v42  ;;  %v1818_v42 = vld [vmem:[%s2392_s1 + $0x194] ss:$8 sps:$4 sm:$0xff]  }
  0x30   : > { %1219 = vmatpush1.bf16.msra.mxu0 %v1725_v43  ;;  %1134 = vmatprep.subr.bf16.mxu1 %v1726_v44  ;;  %v1821_v43 = vld [vmem:[%s2392_s1 + $0x394] ss:$8 sps:$4 sm:$0xff]   ;;  %v1816_v44 = vld [vmem:[%s2392_s1 + $0x190] ss:$8 sps:$4 sm:$0xff]  }
  0x31   : > { %1220 = vmatprep.subr.bf16.mxu0 %v1728_v45  ;;  %v1819_v45 = vld [vmem:[%s2392_s1 + $0x390] ss:$8 sps:$4 sm:$0xff]  }
  0x33   : > { %1135 = vmatpush1.bf16.msra.mxu1 %v1730_v46  ;;  %v1824_v46 = vld [vmem:[%s2392_s1 + $0x1a4] ss:$8 sps:$4 sm:$0xff]  }
  0x34   : > { %1221 = vmatpush1.bf16.msra.mxu0 %v1731_v47  ;;  %1136 = vmatprep.subr.bf16.mxu1 %v1732_v49  ;;  %v1827_v47 = vld [vmem:[%s2392_s1 + $0x3a4] ss:$8 sps:$4 sm:$0xff]   ;;  %v1825_v49 = vld [vmem:[%s2392_s1 + $0x3a0] ss:$8 sps:$4 sm:$0xff]  }
  0x35   : > { %1222 = vmatprep.subr.bf16.mxu0 %v1734_v50  ;;  %v1830_v50 = vld [vmem:[%s2392_s1 + $0x1b4] ss:$8 sps:$4 sm:$0xff]  }
  0x37   : > { %1137 = vmatpush1.bf16.msra.mxu1 %v1736_v52  ;;  %v1828_v52 = vld [vmem:[%s2392_s1 + $0x1b0] ss:$8 sps:$4 sm:$0xff]  }
  0x38   : > { %1223 = vmatpush1.bf16.msra.mxu0 %v1737_v53  ;;  %1138 = vmatprep.subr.bf16.mxu1 %v1738_v54  ;;  %v1831_v53 = vld [vmem:[%s2392_s1 + $0x3b0] ss:$8 sps:$4 sm:$0xff]   ;;  %v1836_v54 = vld [vmem:[%s2392_s1 + $0x1c4] ss:$8 sps:$4 sm:$0xff]  }
  0x39   : > { %1224 = vmatprep.subr.bf16.mxu0 %v1740_v55  ;;  %v1839_v55 = vld [vmem:[%s2392_s1 + $0x3c4] ss:$8 sps:$4 sm:$0xff]  }
  0x3b   : > { %1139 = vmatpush1.bf16.msra.mxu1 %v1742_v56  ;;  %v1834_v56 = vld [vmem:[%s2392_s1 + $0x1c0] ss:$8 sps:$4 sm:$0xff]  }
  0x3c   : > { %1225 = vmatpush1.bf16.msra.mxu0 %v1743_v57  ;;  %1140 = vmatprep.subr.bf16.mxu1 %v1744_v58  ;;  %v1837_v57 = vld [vmem:[%s2392_s1 + $0x3c0] ss:$8 sps:$4 sm:$0xff]   ;;  %v1842_v58 = vld [vmem:[%s2392_s1 + $0x1d4] ss:$8 sps:$4 sm:$0xff]  }
  0x3d   : > { %1226 = vmatprep.subr.bf16.mxu0 %v1746_v59  ;;  %v1845_v59 = vld [vmem:[%s2392_s1 + $0x3d4] ss:$8 sps:$4 sm:$0xff]  }
  0x3f   : > { %1141 = vmatpush1.bf16.msra.mxu1 %v1748_v60  ;;  %v1840_v60 = vld [vmem:[%s2392_s1 + $0x1d0] ss:$8 sps:$4 sm:$0xff]  }
  0x40   : > { %1227 = vmatpush1.bf16.msra.mxu0 %v1749_v61  ;;  %1142 = vmatprep.subr.bf16.mxu1 %v1750_v62  ;;  %v1843_v61 = vld [vmem:[%s2392_s1 + $0x3d0] ss:$8 sps:$4 sm:$0xff]   ;;  %v1848_v62 = vld [vmem:[%s2392_s1 + $0x1e4] ss:$8 sps:$4 sm:$0xff]  }
  0x41   : > { %1228 = vmatprep.subr.bf16.mxu0 %v1752_v63  ;;  %v1851_v63 = vld [vmem:[%s2392_s1 + $0x3e4] ss:$8 sps:$4 sm:$0xff]  }
  0x43   : > { %1143 = vmatpush1.bf16.msra.mxu1 %v1754_v0  ;;  %v1846_v0 = vld [vmem:[%s2392_s1 + $0x1e0] ss:$8 sps:$4 sm:$0xff]  }
  0x44   : > { %1229 = vmatpush1.bf16.msra.mxu0 %v1755_v1  ;;  %1155 = vmatprep.subr.bf16.mxu1 %v1761_v2  ;;  %v1849_v1 = vld [vmem:[%s2392_s1 + $0x3e0] ss:$8 sps:$4 sm:$0xff]   ;;  %v1854_v2 = vld [vmem:[%s2392_s1 + $0x1f4] ss:$8 sps:$4 sm:$0xff]  }
  0x45   : > { %1241 = vmatprep.subr.bf16.mxu0 %v1767_v3  ;;  %v1857_v3 = vld [vmem:[%s2392_s1 + $0x3f4] ss:$8 sps:$4 sm:$0xff]  }
  0x46   : > { %1145 = vmatmul.mubr.bf16.vlgmr.msra.gmra.mrb[0].mxu1 %v1756_v4  ;;  %v1852_v4 = vld [vmem:[%s2392_s1 + $0x1f0] ss:$8 sps:$4 sm:$0xff]  }
  0x47   : > { %1231 = vmatmul.mubr.bf16.vlgmr.msra.gmra.mrb[0].mxu0 %v1762_v6  ;;  %1156 = vmatpush1.bf16.msra.mxu1 %v1759_v5  ;;  %v1855_v5 = vld [vmem:[%s2392_s1 + $0x3f0] ss:$8 sps:$4 sm:$0xff]   ;;  %v1866_v6 = vld [vmem:[%s2392_s1 + $0x404] ss:$8 sps:$4 sm:$0xff]  }
  0x48   : > { %1242 = vmatpush1.bf16.msra.mxu0 %v1765_v7  ;;  %1157 = vmatprep.subr.bf16.mxu1 %v1770_v8  ;;  %v1858_v7 = vld [vmem:[%s2073_s13 + $0x8] ss:$36 sps:$4 sm:$0xff]   ;;  %v1861_v8 = vld [vmem:[%s2073_s13 + $0x18] ss:$36 sps:$4 sm:$0xff]  }
  0x49   : > { %1243 = vmatprep.subr.bf16.mxu0 %v1773_v9  ;;  %1187 = vmatprep.mubr.bf16.mxu1 %v1860_v34  ;;  %v1864_v9 = vld [vmem:[%s2392_s1 + $0x400] ss:$8 sps:$4 sm:$0xff]  }
  0x4a   : > { %1273 = vmatprep.mubr.bf16.mxu0 %v1863_v35 }
  0x4b   : > { %1158 = vmatpush1.bf16.msra.mxu1 %v1768_v10  ;;  %v1869_v10 = vld [vmem:[%s2392_s1 + $0x414] ss:$8 sps:$4 sm:$0xff]  }
  0x4c   : > { %1244 = vmatpush1.bf16.msra.mxu0 %v1771_v11  ;;  %1159 = vmatprep.subr.bf16.mxu1 %v1776_v12  ;;  %v1867_v11 = vld [vmem:[%s2392_s1 + $0x410] ss:$8 sps:$4 sm:$0xff]   ;;  %v1901_v12 = vmov 0  }
  0x4d   : > { %1245 = vmatprep.subr.bf16.mxu0 %v1779_v13  ;;  %v1872_v13 = vld [vmem:[%s2392_s1 + $0x424] ss:$8 sps:$4 sm:$0xff]  }
  0x4f   : > { %1160 = vmatpush1.bf16.msra.mxu1 %v1774_v14  ;;  %v1870_v14 = vld [vmem:[%s2392_s1 + $0x420] ss:$8 sps:$4 sm:$0xff]  }
  0x50   : > { %1246 = vmatpush1.bf16.msra.mxu0 %v1777_v15  ;;  %1161 = vmatprep.subr.bf16.mxu1 %v1782_v16  ;;  %v1875_v15 = vld [vmem:[%s2392_s1 + $0x434] ss:$8 sps:$4 sm:$0xff]   ;;  %v1873_v16 = vld [vmem:[%s2392_s1 + $0x430] ss:$8 sps:$4 sm:$0xff]  }
  0x51   : > { %1247 = vmatprep.subr.bf16.mxu0 %v1785_v17  ;;  %v1878_v17 = vld [vmem:[%s2392_s1 + $0x444] ss:$8 sps:$4 sm:$0xff]  }
  0x53   : > { %1162 = vmatpush1.bf16.msra.mxu1 %v1780_v18  ;;  %v1876_v18 = vld [vmem:[%s2392_s1 + $0x440] ss:$8 sps:$4 sm:$0xff]  }
  0x54   : > { %1248 = vmatpush1.bf16.msra.mxu0 %v1783_v19  ;;  %1163 = vmatprep.subr.bf16.mxu1 %v1788_v20  ;;  %v1881_v19 = vld [vmem:[%s2392_s1 + $0x454] ss:$8 sps:$4 sm:$0xff]   ;;  %v1879_v20 = vld [vmem:[%s2392_s1 + $0x450] ss:$8 sps:$4 sm:$0xff]  }
  0x55   : > { %1249 = vmatprep.subr.bf16.mxu0 %v1791_v21  ;;  %v1884_v21 = vld [vmem:[%s2392_s1 + $0x464] ss:$8 sps:$4 sm:$0xff]  }
  0x57   : > { %1164 = vmatpush1.bf16.msra.mxu1 %v1786_v22  ;;  %v1882_v22 = vld [vmem:[%s2392_s1 + $0x460] ss:$8 sps:$4 sm:$0xff]  }
  0x58   : > { %1250 = vmatpush1.bf16.msra.mxu0 %v1789_v23  ;;  %1165 = vmatprep.subr.bf16.mxu1 %v1794_v24  ;;  %v1887_v23 = vld [vmem:[%s2392_s1 + $0x474] ss:$8 sps:$4 sm:$0xff]   ;;  %v1885_v24 = vld [vmem:[%s2392_s1 + $0x470] ss:$8 sps:$4 sm:$0xff]  }
  0x59   : > { %1251 = vmatprep.subr.bf16.mxu0 %v1797_v25  ;;  %v1888_v25 = vld [vmem:[%s2073_s13 + $0x20] ss:$36 sps:$4 sm:$0xff]   ;;  %s1627_s13 = sshll.u32 %s2396_s24, 3 }
  0x5a   : > { %s177_s18 = scalar_lea.vmem %s2394_s3, %s1627_s13 }
  0x5b   : > { %1166 = vmatpush1.bf16.msra.mxu1 %v1792_v26 }
  0x5c   : > { %1252 = vmatpush1.bf16.msra.mxu0 %v1795_v27  ;;  %1167 = vmatprep.subr.bf16.mxu1 %v1800_v28 }
  0x5d   : > { %1253 = vmatprep.subr.bf16.mxu0 %v1803_v29 }
  0x5f   : > { %1168 = vmatpush1.bf16.msra.mxu1 %v1798_v30  ;;  %v336_v30 = vlaneseq }
  0x60   : > { %1254 = vmatpush1.bf16.msra.mxu0 %v1801_v31  ;;  %1169 = vmatprep.subr.bf16.mxu1 %v1806_v32 }
  0x61   : > { %1255 = vmatprep.subr.bf16.mxu0 %v1809_v33  ;;  %v337_v31 = vshrl.u32 %v336_v30, 7  ;;  %v334_v33 = vld [vmem:[%s2393_s2] sm:$0x3] }
  0x63   : > { %1170 = vmatpush1.bf16.msra.mxu1 %v1804_v36  ;;  %v338_v32 = vsub.s32 0, %v337_v31  ;;  %v342_v34 = vsub.s32 1, %v337_v31 }
  0x64   : > { %1256 = vmatpush1.bf16.msra.mxu0 %v1807_v37  ;;  %1171 = vmatprep.subr.bf16.mxu1 %v1812_v38 }
  0x65   : > { %1257 = vmatprep.subr.bf16.mxu0 %v1815_v39  ;;  %v339_v35 = vrot.slane %v334_v33, %v338_v32  ;;  %v343_v36 = vrot.slane %v334_v33, %v342_v34 }
  0x67   : > { %1172 = vmatpush1.bf16.msra.mxu1 %v1810_v40 }
  0x68   : > { %1258 = vmatpush1.bf16.msra.mxu0 %v1813_v41  ;;  %1173 = vmatprep.subr.bf16.mxu1 %v1818_v42 }
  0x69   : > { %1259 = vmatprep.subr.bf16.mxu0 %v1821_v43 }
  0x6b   : > { %1174 = vmatpush1.bf16.msra.mxu1 %v1816_v44 }
  0x6c   : > { %1260 = vmatpush1.bf16.msra.mxu0 %v1819_v45  ;;  %1175 = vmatprep.subr.bf16.mxu1 %v1824_v46 }
  0x6d   : > { %1261 = vmatprep.subr.bf16.mxu0 %v1827_v47 }
  0x6f   : > { %1176 = vmatpush1.bf16.msra.mxu1 %v1822_v48 }
  0x70   : > { %1262 = vmatpush1.bf16.msra.mxu0 %v1825_v49  ;;  %1177 = vmatprep.subr.bf16.mxu1 %v1830_v50 }
  0x71   : > { %1263 = vmatprep.subr.bf16.mxu0 %v1833_v51 }
  0x73   : > { %1178 = vmatpush1.bf16.msra.mxu1 %v1828_v52 }
  0x74   : > { %1264 = vmatpush1.bf16.msra.mxu0 %v1831_v53  ;;  %1179 = vmatprep.subr.bf16.mxu1 %v1836_v54 }
  0x75   : > { %1265 = vmatprep.subr.bf16.mxu0 %v1839_v55 }
  0x77   : > { %1180 = vmatpush1.bf16.msra.mxu1 %v1834_v56 }
  0x78   : > { %1266 = vmatpush1.bf16.msra.mxu0 %v1837_v57  ;;  %1181 = vmatprep.subr.bf16.mxu1 %v1842_v58 }
  0x79   : > { %1267 = vmatprep.subr.bf16.mxu0 %v1845_v59 }
  0x7b   : > { %1182 = vmatpush1.bf16.msra.mxu1 %v1840_v60 }
  0x7c   : > { %1268 = vmatpush1.bf16.msra.mxu0 %v1843_v61  ;;  %1183 = vmatprep.subr.bf16.mxu1 %v1848_v62 }
  0x7d   : > { %1269 = vmatprep.subr.bf16.mxu0 %v1851_v63 }
  0x7f   : > { %1184 = vmatpush1.bf16.msra.mxu1 %v1846_v0 }
  0x80   : > { %1270 = vmatpush1.bf16.msra.mxu0 %v1849_v1  ;;  %1185 = vmatprep.subr.bf16.mxu1 %v1854_v2 }
  0x81   : > { %1271 = vmatprep.subr.bf16.mxu0 %v1857_v3 }
  0x83   : > { %1186 = vmatpush1.bf16.msra.mxu1 %v1852_v4 }
  0x84   : > { %1272 = vmatpush1.bf16.msra.mxu0 %v1855_v5 }
  0x85   : > { %1284 = vmatprep.subr.bf16.mxu0 %v1866_v6 }
  0x86   : > { %1188 = vmatmul.mubr.bf16.vlgmr.msra.gmra.mrb[0].mxu1 %v1858_v7 }
  0x87   : > { %1274 = vmatmul.mubr.bf16.vlgmr.msra.gmra.mrb[0].mxu0 %v1861_v8 }
  0x88   : > { %1285 = vmatpush1.bf16.msra.mxu0 %v1864_v9  ;;  %1316 = vmatprep.mubr.bf16.mxu0 %v1901_v12 }
  0x89   : > { %1286 = vmatprep.subr.bf16.mxu0 %v1869_v10 }
  0x8c   : > { %1287 = vmatpush1.bf16.msra.mxu0 %v1867_v11 }
  0x8d   : > { %1288 = vmatprep.subr.bf16.mxu0 %v1872_v13 }
  0x90   : > { %1289 = vmatpush1.bf16.msra.mxu0 %v1870_v14 }
  0x91   : > { %1290 = vmatprep.subr.bf16.mxu0 %v1875_v15 }
  0x94   : > { %1291 = vmatpush1.bf16.msra.mxu0 %v1873_v16 }
  0x95   : > { %1292 = vmatprep.subr.bf16.mxu0 %v1878_v17 }
  0x98   : > { %1293 = vmatpush1.bf16.msra.mxu0 %v1876_v18 }
  0x99   : > { %1294 = vmatprep.subr.bf16.mxu0 %v1881_v19 }
  0x9c   : > { %1295 = vmatpush1.bf16.msra.mxu0 %v1879_v20 }
  0x9d   : > { %1296 = vmatprep.subr.bf16.mxu0 %v1884_v21 }
  0xa0   : > { %1297 = vmatpush1.bf16.msra.mxu0 %v1882_v22 }
  0xa1   : > { %1298 = vmatprep.subr.bf16.mxu0 %v1887_v23 }
  0xa4   : > { %1299 = vmatpush1.bf16.msra.mxu0 %v1885_v24 }
  0xa7   : > { %1317 = vmatmul.mubr.bf16.vlgmr.msra.gmra.mrb[0].mxu0 %v1888_v25 }
 0x159   : > { %v1189_v26 = vpop.f32.mrb[0].mxu1 }
 0x15a   : > { %v1191_v27 = vpop.f32.mrb[1].mxu1  ;;  %v1630_v37 = vadd.f32 %v1189_v26, %v339_v35 }
 0x15b   : > { %v1193_v28 = vpop.f32.mrb[2].mxu1  ;;  %v1632_v38 = vadd.f32 %v1191_v27, %v343_v36 }
 0x15c   : > { %v1195_v29 = vpop.f32.mrb[3].mxu1  ;;  %v1634_v40 = vadd.f32 %v1193_v28, %v339_v35 }
 0x15d   : > { %v1636_v43 = vadd.f32 %v1195_v29, %v343_v36 }
 0x17a   : > { %v1318_v39 = vpop.f32.mrb[0].mxu0 }
 0x17b   : > { %v1631_v41 = vadd.f32 %v1630_v37, %v1318_v39  ;;  %v1320_v42 = vpop.f32.mrb[1].mxu0 }
 0x17c   : > { %v1633_v44 = vadd.f32 %v1632_v38, %v1320_v42  ;;  %v1322_v45 = vpop.f32.mrb[2].mxu0 }
 0x17d   : > { %v1327_v46 = vmul.f32 0.2, %v1631_v41  ;;  %v1635_v47 = vadd.f32 %v1634_v40, %v1322_v45  ;;  %v1324_v48 = vpop.f32.mrb[3].mxu0 }
 0x17e   : > { %v1328_v49 = vmul.f32 0.2, %v1633_v44  ;;  %v1637_v50 = vadd.f32 %v1636_v43, %v1324_v48 }
 0x17f   : > { %v1331_v51 = vmax.f32 %v1631_v41, %v1327_v46  ;;  %v1329_v52 = vmul.f32 0.2, %v1635_v47 }
 0x180   : > { %v1332_v53 = vmax.f32 %v1633_v44, %v1328_v49  ;;  %v1330_v54 = vmul.f32 0.2, %v1637_v50 }
 0x181   : > { %v1333_v55 = vmax.f32 %v1635_v47, %v1329_v52  ;;  %v1352_v57 = vmul.f32 %v1331_v51, %v1331_v51 }
 0x182   : > { %v1334_v56 = vmax.f32 %v1637_v50, %v1330_v54  ;;  %v1353_v60 = vmul.f32 %v1332_v53, %v1332_v53 }
 0x183   : > { %v1335_v58 = vadd.f32 %v1333_v55, %v1331_v51  ;;  %v1354_v59 = vmul.f32 %v1333_v55, %v1333_v55 }
 0x184   : > { %v1342_v61 = vadd.f32 %v1334_v56, %v1332_v53  ;;  %v1355_v62 = vmul.f32 %v1334_v56, %v1334_v56 }
 0x185   : > { %v1336_v63 = vrot.slane %v1335_v58, 4  ;;  %v1356_v0 = vadd.f32 %v1354_v59, %v1352_v57 }
 0x186   : > { %v1343_v1 = vrot.slane %v1342_v61, 4  ;;  %v1363_v2 = vadd.f32 %v1355_v62, %v1353_v60 }
 0x187   : > { %v1337_v3 = vadd.f32 %v1336_v63, %v1335_v58  ;;  %v1357_v4 = vrot.slane %v1356_v0, 4 }
 0x188   : > { %v1344_v5 = vadd.f32 %v1343_v1, %v1342_v61  ;;  %v1364_v6 = vrot.slane %v1363_v2, 4 }
 0x189   : > { %v1338_v7 = vrot.slane %v1337_v3, 2  ;;  %v1358_v8 = vadd.f32 %v1357_v4, %v1356_v0 }
 0x18a   : > { %v1345_v9 = vrot.slane %v1344_v5, 2  ;;  %v1365_v10 = vadd.f32 %v1364_v6, %v1363_v2 }
 0x18b   : > { %v1339_v11 = vadd.f32 %v1338_v7, %v1337_v3  ;;  %v1359_v12 = vrot.slane %v1358_v8, 2 }
 0x18c   : > { %v1346_v13 = vadd.f32 %v1345_v9, %v1344_v5  ;;  %v1366_v14 = vrot.slane %v1365_v10, 2 }
 0x18d   : > { %v1340_v15 = vrot.slane %v1339_v11, 1  ;;  %v1360_v16 = vadd.f32 %v1359_v12, %v1358_v8 }
 0x18e   : > { %v1347_v17 = vrot.slane %v1346_v13, 1  ;;  %v1367_v18 = vadd.f32 %v1366_v14, %v1365_v10 }
 0x18f   : > { %v1341_v19 = vadd.f32 %v1340_v15, %v1339_v11  ;;  %v1361_v20 = vrot.slane %v1360_v16, 1 }
 0x190   : > { %v1348_v21 = vadd.f32 %v1347_v17, %v1346_v13  ;;  %v1368_v22 = vrot.slane %v1367_v18, 1 }
 0x191   : > { %v1350_v23 = vmul.f32 0.0625, %v1341_v19  ;;  %v1362_v24 = vadd.f32 %v1361_v20, %v1360_v16 }
 0x192   : > { %v1351_v25 = vmul.f32 0.0625, %v1348_v21  ;;  %v1369_v26 = vadd.f32 %v1368_v22, %v1367_v18 }
 0x193   : > { %v1370_v27 = vmul.f32 0.0625, %v1362_v24  ;;  %v1372_v28 = vmul.f32 %v1350_v23, %v1350_v23  ;;  %v1376_v29 = vsub.f32 %v1331_v51, %v1350_v23  ;;  %v1378_v30 = vsub.f32 %v1333_v55, %v1350_v23 }
 0x194   : > { %v1371_v31 = vmul.f32 0.0625, %v1369_v26  ;;  %v1373_v32 = vmul.f32 %v1351_v25, %v1351_v25  ;;  %v1377_v33 = vsub.f32 %v1332_v53, %v1351_v25  ;;  %v1379_v34 = vsub.f32 %v1334_v56, %v1351_v25 }
 0x195   : > { %v1374_v35 = vsub.f32 %v1370_v27, %v1372_v28 }
 0x196   : > { %v1375_v36 = vsub.f32 %v1371_v31, %v1373_v32 }
 0x197   : > { %v1380_v37 = vadd.f32 1e-05, %v1374_v35 }
 0x198   : > { %v1381_v38 = vadd.f32 1e-05, %v1375_v36 }
 0x199   : > { %1889 = vrsqrt.f32 %v1380_v37 }
 0x19a   : > { %1891 = vrsqrt.f32 %v1381_v38 }
 0x1a3   : > { %v1890_v39 = vpop.eup %1889 }
 0x1a4   : > { %v1892_v40 = vpop.eup %1891  ;;  %v1384_v41 = vmul.f32 %v1890_v39, %v1376_v29  ;;  %v1386_v42 = vmul.f32 %v1890_v39, %v1378_v30 }
 0x1a5   : > { %v1385_v43 = vmul.f32 %v1892_v40, %v1377_v33  ;;  %v1387_v44 = vmul.f32 %v1892_v40, %v1379_v34 }
 0x1a7   : > { %v1628_v45 = vpack.c.bf16 %v1385_v43, %v1384_v41  ;;  %v1629_v46 = vpack.c.bf16 %v1387_v44, %v1386_v42 }
 0x1a9   : > { %1400 = vst [vmem:[%s177_s18] sm:$0xff] %v1628_v45  ;;  %1401 = vst [vmem:[%s177_s18 + $0x8] sm:$0xff] %v1629_v46 }
 0x1aa PF: > { %s13_s12 = sadd.s32 1, %s1899_s12  }
 0x1ab   : > { %p10_p4 = scmp.ge.s32.totalorder %s13_s12, 4  }
 0x1ad   :  { %12 = sbr.rel (!%p10_p4) target bundleno = 1 (0x1), region = 62 }

// kernel: classifier_forward.7
= control target key start
LH: loop header
LB: loop body
LE: loop exit
PB: predicated region body
PF: predicated region fallthrough
CT: control target
= control target key end

     0   :  { %10 = vsyncpa [#allocation3], 0  ;;  %s10720_s0 = inlined_call_operand.vmem [shape: bf16[2,4,2304], index: 0, kind: input, shape index: {}]   ;;  %s10721_s1 = inlined_call_operand.vmem [shape: bf16[2304,512], index: 1, kind: input, shape index: {}]   ;;  %s10722_s2 = inlined_call_operand.vmem [shape: f32[1,512], index: 2, kind: input, shape index: {}]   ;;  %s10723_s3 = inlined_call_operand.vmem [shape: f32[4,512,128], index: 3, kind: input, shape index: {}]   ;;  %s10724_s4 = inlined_call_operand.vmem [shape: f32[1,128], index: 4, kind: input, shape index: {}]   ;;  %s10725_s5 = inlined_call_operand.hbm [shape: f32[2,1,128], index: 5, kind: output, shape index: {}]  }
   0x1   :  { %12 = vsyncpa [#allocation3 + $0x1], 0  ;;  %s7975_s18 = smov 0   ;;  %s7977_s19 = smov 0  }
   0x2   :  { %s7979_s20 = smov 0   ;;  %s7981_s21 = smov 0  }
   0x3 LB: > { %s7996_s22 = sadd.s32 4294967295, %s7941_s21   ;;  %s5577_s23 = sadd.s32 4294967294, %s7941_s21   ;;  %s7941_s21 = sphi %s7981_s21, %s10731_s21   ;;  %s7937_s20 = sphi %s7979_s20, %s10730_s20   ;;  %s7933_s19 = sphi %s7977_s19, %s10729_s19   ;;  %s7929_s18 = sphi %s7975_s18, %s10728_s18  }
   0x4   : > { %s8000_s24 = sadd.s32 1, %s7941_s21   ;;  %s135_s25 = sadd.s32 1, %s7937_s20 }
   0x5   : > { %s132_s26 = ssub.s32 %s7941_s21, %s8000_s24  ;;  %p145_p0 = scmp.ne.s32.totalorder %s7937_s20, %s7933_s19 }
   0x6   : > { %p133_p1 = scmp.eq.s32.totalorder %s132_s26, 0  ;;  %p146_p2 = scmp.eq.s32.totalorder %s7996_s22, 1 }
   0x7   : > { %p151_p3 = scmp.ne.s32.totalorder %s7933_s19, %s7929_s18  ;;  %p152_p4 = scmp.eq.s32.totalorder %s5577_s23, 1 }
   0x8   : > { %s8011_s27 = scalar_select %p133_p1, %s7937_s20, %s135_s25  }
   0x9   : > { %p8013_p5 = por %p146_p2, %p145_p0  ;;  %p8017_p6 = por %p152_p4, %p151_p3 }
   0xa   : > { %p5580_p7 = scmp.ge.s32.totalorder %s7941_s21, 1  ;;  %p190_p8 = scmp.lt.s32.totalorder %s7941_s21, 3 }
   0xc   : > { %p191_p9 = pnand %p5580_p7, %p190_p8 }
   0xd   : > { %v6999_v0 = vld [vmem:[%s10721_s1 + $0x4] ss:$16 sps:$4 sm:$0xff] (!%p191_p9)   ;;  %v7001_v1 = vld [vmem:[%s10721_s1 + $0xc] ss:$16 sps:$4 sm:$0xff] (!%p191_p9)   ;;  %v7003_v2 = vld [vmem:[%s10721_s1] ss:$16 sps:$4 sm:$0xff] (!%p191_p9)   ;;  %v805_v36 = vlaneseq (!%p191_p9) }
   0xe   : > { %194 = sbr.rel (%p191_p9) target bundleno = 1492 (0x5d4), region = 40  ;;  %3804 = vmatprep.subr.bf16.mxu0 (!%p191_p9), %v6999_v0  ;;  %v7004_v3 = vld [vmem:[%s10721_s1 + $0x8] ss:$16 sps:$4 sm:$0xff] (!%p191_p9)   ;;  %4173 = vmatprep.subr.bf16.mxu1 (!%p191_p9), %v7001_v1  ;;  %v7005_v4 = vld [vmem:[%s10721_s1 + $0x24] ss:$16 sps:$4 sm:$0xff] (!%p191_p9)   ;;  %p217_p10 = scmp.lt.s32.totalorder (!%p191_p9), %s7996_s22, 1 }
   0xf   : > { %3805 = vmatpush1.bf16.msra.mxu0 (!%p191_p9), %v7003_v2  ;;  %4174 = vmatpush1.bf16.msra.mxu1 (!%p191_p9), %v7004_v3  ;;  %v7007_v5 = vld [vmem:[%s10721_s1 + $0x2c] ss:$16 sps:$4 sm:$0xff] (!%p191_p9)   ;;  %v7009_v6 = vld [vmem:[%s10721_s1 + $0x20] ss:$16 sps:$4 sm:$0xff] (!%p191_p9)   ;;  %v7010_v7 = vld [vmem:[%s10721_s1 + $0x28] ss:$16 sps:$4 sm:$0xff] (!%p191_p9)  }
  0x10   : > { %3806 = vmatprep.subr.bf16.mxu0 (!%p191_p9), %v7005_v4  ;;  %4175 = vmatprep.subr.bf16.mxu1 (!%p191_p9), %v7007_v5  ;;  %v7011_v8 = vld [vmem:[%s10721_s1 + $0x44] ss:$16 sps:$4 sm:$0xff] (!%p191_p9)   ;;  %v7013_v9 = vld [vmem:[%s10721_s1 + $0x4c] ss:$16 sps:$4 sm:$0xff] (!%p191_p9)   ;;  %v7015_v10 = vld [vmem:[%s10721_s1 + $0x40] ss:$16 sps:$4 sm:$0xff] (!%p191_p9)  }
  0x11   : > { %v7016_v11 = vld [vmem:[%s10721_s1 + $0x48] ss:$16 sps:$4 sm:$0xff] (!%p191_p9)   ;;  %v7017_v12 = vld [vmem:[%s10721_s1 + $0x64] ss:$16 sps:$4 sm:$0xff] (!%p191_p9)   ;;  %v7019_v13 = vld [vmem:[%s10721_s1 + $0x6c] ss:$16 sps:$4 sm:$0xff] (!%p191_p9)  }
  0x12   : > { %v7021_v14 = vld [vmem:[%s10721_s1 + $0x60] ss:$16 sps:$4 sm:$0xff] (!%p191_p9)   ;;  %v7022_v15 = vld [vmem:[%s10721_s1 + $0x68] ss:$16 sps:$4 sm:$0xff] (!%p191_p9)   ;;  %v7023_v16 = vld [vmem:[%s10721_s1 + $0x84] ss:$16 sps:$4 sm:$0xff] (!%p191_p9)  }
  0x13   : > { %3807 = vmatpush1.bf16.msra.mxu0 (!%p191_p9), %v7009_v6  ;;  %4176 = vmatpush1.bf16.msra.mxu1 (!%p191_p9), %v7010_v7  ;;  %v7025_v17 = vld [vmem:[%s10721_s1 + $0x8c] ss:$16 sps:$4 sm:$0xff] (!%p191_p9)   ;;  %v7027_v18 = vld [vmem:[%s10721_s1 + $0x80] ss:$16 sps:$4 sm:$0xff] (!%p191_p9)   ;;  %v7028_v19 = vld [vmem:[%s10721_s1 + $0x88] ss:$16 sps:$4 sm:$0xff] (!%p191_p9)  }
  0x14   : > { %3808 = vmatprep.subr.bf16.mxu0 (!%p191_p9), %v7011_v8  ;;  %4177 = vmatprep.subr.bf16.mxu1 (!%p191_p9), %v7013_v9  ;;  %v7029_v20 = vld [vmem:[%s10721_s1 + $0xa4] ss:$16 sps:$4 sm:$0xff] (!%p191_p9)   ;;  %v7031_v21 = vld [vmem:[%s10721_s1 + $0xac] ss:$16 sps:$4 sm:$0xff] (!%p191_p9)   ;;  %v7033_v22 = vld [vmem:[%s10721_s1 + $0xa0] ss:$16 sps:$4 sm:$0xff] (!%p191_p9)  }
  0x15   : > { %v7034_v23 = vld [vmem:[%s10721_s1 + $0xa8] ss:$16 sps:$4 sm:$0xff]   ;;  %v7035_v24 = vld [vmem:[%s10721_s1 + $0xc4] ss:$16 sps:$4 sm:$0xff]   ;;  %v7037_v25 = vld [vmem:[%s10721_s1 + $0xcc] ss:$16 sps:$4 sm:$0xff]  }
  0x16   : > { %v7039_v26 = vld [vmem:[%s10721_s1 + $0xc0] ss:$16 sps:$4 sm:$0xff]   ;;  %v7040_v27 = vld [vmem:[%s10721_s1 + $0xc8] ss:$16 sps:$4 sm:$0xff]   ;;  %v7041_v28 = vld [vmem:[%s10721_s1 + $0xe4] ss:$16 sps:$4 sm:$0xff]  }
  0x17   : > { %3809 = vmatpush1.bf16.msra.mxu0 %v7015_v10  ;;  %4178 = vmatpush1.bf16.msra.mxu1 %v7016_v11  ;;  %v7043_v29 = vld [vmem:[%s10721_s1 + $0xec] ss:$16 sps:$4 sm:$0xff]   ;;  %v7045_v30 = vld [vmem:[%s10721_s1 + $0xe0] ss:$16 sps:$4 sm:$0xff]   ;;  %v7046_v31 = vld [vmem:[%s10721_s1 + $0xe8] ss:$16 sps:$4 sm:$0xff]  }
  0x18   : > { %3810 = vmatprep.subr.bf16.mxu0 %v7017_v12  ;;  %4179 = vmatprep.subr.bf16.mxu1 %v7019_v13  ;;  %v7047_v32 = vld [vmem:[%s10721_s1 + $0x104] ss:$16 sps:$4 sm:$0xff]   ;;  %v7049_v33 = vld [vmem:[%s10721_s1 + $0x10c] ss:$16 sps:$4 sm:$0xff]   ;;  %v7051_v34 = vld [vmem:[%s10721_s1 + $0x100] ss:$16 sps:$4 sm:$0xff]  }
  0x19   : > { %v7052_v35 = vld [vmem:[%s10721_s1 + $0x108] ss:$16 sps:$4 sm:$0xff]   ;;  %s218_s13 = scalar_select %p217_p10, %s7996_s22, 1  ;;  %v7943_v37 = vmov 1983009808   ;;  %v8142_v42 = vshrl.u32 %v805_v36, 7 }
  0x1a   : > { %v832_v38 = vunpack.c.l.s4 %v7943_v37  ;;  %v7053_v39 = vld [vmem:[%s10721_s1 + $0x124] ss:$16 sps:$4 sm:$0xff]   ;;  %v7055_v40 = vld [vmem:[%s10721_s1 + $0x12c] ss:$16 sps:$4 sm:$0xff]   ;;  %v7057_v41 = vld [vmem:[%s10721_s1 + $0x120] ss:$16 sps:$4 sm:$0xff]  }
  0x1b   : > { %3811 = vmatpush1.bf16.msra.mxu0 %v7021_v14  ;;  %4180 = vmatpush1.bf16.msra.mxu1 %v7022_v15  ;;  %s6958_s26 = smul.u32 36, %s218_s13  ;;  %v7058_v44 = vld [vmem:[%s10721_s1 + $0x128] ss:$16 sps:$4 sm:$0xff]   ;;  %v7059_v45 = vld [vmem:[%s10721_s1 + $0x144] ss:$16 sps:$4 sm:$0xff]   ;;  %vm4550_vm0 = vcmask 1043456  }
  0x1c   : > { %3812 = vmatprep.subr.bf16.mxu0 %v7023_v16  ;;  %4181 = vmatprep.subr.bf16.mxu1 %v7025_v17  ;;  %v833_v43 = vunpack.c.0.s8 %v832_v38  ;;  %v7061_v46 = vld [vmem:[%s10721_s1 + $0x14c] ss:$16 sps:$4 sm:$0xff]   ;;  %v7063_v47 = vld [vmem:[%s10721_s1 + $0x140] ss:$16 sps:$4 sm:$0xff]   ;;  %v7064_v48 = vld [vmem:[%s10721_s1 + $0x148] ss:$16 sps:$4 sm:$0xff]  }
  0x1d   : > { %s8162_s17 = scalar_lea.vmem %s10720_s0, %s6958_s26  ;;  %v7065_v50 = vld [vmem:[%s10721_s1 + $0x164] ss:$16 sps:$4 sm:$0xff]   ;;  %v7067_v51 = vld [vmem:[%s10721_s1 + $0x16c] ss:$16 sps:$4 sm:$0xff]   ;;  %v7069_v53 = vld [vmem:[%s10721_s1 + $0x160] ss:$16 sps:$4 sm:$0xff]  }
  0x1e   : > { %v8165_v49 = vsub.s32 %v833_v43, %v8142_v42  ;;  %v222_v52 = vld [vmem:[%s8162_s17] sm:$0xff]  ;;  %v7070_v55 = vld [vmem:[%s10721_s1 + $0x168] ss:$16 sps:$4 sm:$0xff]   ;;  %v7073_v57 = vld [vmem:[%s10721_s1 + $0x18c] ss:$16 sps:$4 sm:$0xff]   ;;  %vm5496_vm1 = vcmask 1040384  }
  0x1f   : > { %3813 = vmatpush1.bf16.msra.mxu0 %v7027_v18  ;;  %4182 = vmatpush1.bf16.msra.mxu1 %v7028_v19  ;;  %v7071_v56 = vld [vmem:[%s10721_s1 + $0x184] ss:$16 sps:$4 sm:$0xff]   ;;  %v7075_v59 = vld [vmem:[%s10721_s1 + $0x180] ss:$16 sps:$4 sm:$0xff]   ;;  %v7076_v60 = vld [vmem:[%s10721_s1 + $0x188] ss:$16 sps:$4 sm:$0xff]   ;;  %v830_v7 = vcombine.high %v222_v52, %v222_v52 }
  0x20   : > { %3814 = vmatprep.subr.bf16.mxu0 %v7029_v20  ;;  %4183 = vmatprep.subr.bf16.mxu1 %v7031_v21  ;;  %v837_v54 = vrot.slane %v222_v52, %v8165_v49  ;;  %v7077_v61 = vld [vmem:[%s10721_s1 + $0x1a4] ss:$16 sps:$4 sm:$0xff]   ;;  %v7079_v62 = vld [vmem:[%s10721_s1 + $0x1ac] ss:$16 sps:$4 sm:$0xff]   ;;  %v7081_v63 = vld [vmem:[%s10721_s1 + $0x1a0] ss:$16 sps:$4 sm:$0xff]  }
  0x21   : > { %v7082_v0 = vld [vmem:[%s10721_s1 + $0x1a8] ss:$16 sps:$4 sm:$0xff]   ;;  %v7083_v1 = vld [vmem:[%s10721_s1 + $0x1c4] ss:$16 sps:$4 sm:$0xff]   ;;  %v7085_v2 = vld [vmem:[%s10721_s1 + $0x1cc] ss:$16 sps:$4 sm:$0xff]   ;;  %v8236_v12 = vrot.slane %v830_v7, %v8165_v49 }
  0x22   : > { %v845_v58 = vcombine.high %v837_v54, %v837_v54  ;;  %v7087_v3 = vld [vmem:[%s10721_s1 + $0x1c0] ss:$16 sps:$4 sm:$0xff]   ;;  %v7088_v4 = vld [vmem:[%s10721_s1 + $0x1c8] ss:$16 sps:$4 sm:$0xff]   ;;  %v7089_v5 = vld [vmem:[%s10721_s1 + $0x1e4] ss:$16 sps:$4 sm:$0xff]  }
  0x23   : > { %3815 = vmatpush1.bf16.msra.mxu0 %v7033_v22  ;;  %4184 = vmatpush1.bf16.msra.mxu1 %v7034_v23  ;;  %v7091_v6 = vld [vmem:[%s10721_s1 + $0x1ec] ss:$16 sps:$4 sm:$0xff]   ;;  %v7093_v8 = vld [vmem:[%s10721_s1 + $0x1e0] ss:$16 sps:$4 sm:$0xff]   ;;  %v7094_v9 = vld [vmem:[%s10721_s1 + $0x1e8] ss:$16 sps:$4 sm:$0xff]   ;;  %v846_v17 = vcombine.high %v8236_v12, %v8236_v12 }
  0x24   : > { %3816 = vmatprep.subr.bf16.mxu0 %v7035_v24  ;;  %4185 = vmatprep.subr.bf16.mxu1 %v7037_v25  ;;  %v7098_v10 = vld [vmem:[%s10721_s1 + $0x204] ss:$16 sps:$4 sm:$0xff]   ;;  %v7101_v11 = vld [vmem:[%s10721_s1 + $0x20c] ss:$16 sps:$4 sm:$0xff]   ;;  %v7096_v13 = vld [vmem:[%s10721_s1 + $0x200] ss:$16 sps:$4 sm:$0xff]  }
  0x25   : > { %3836 = vmatprep.mubr.bf16.mxu0 %v845_v58  ;;  %4205 = vmatprep.mubr.bf16.mxu1 %v845_v58  ;;  %v7099_v14 = vld [vmem:[%s10721_s1 + $0x208] ss:$16 sps:$4 sm:$0xff]   ;;  %v7104_v15 = vld [vmem:[%s10721_s1 + $0x224] ss:$16 sps:$4 sm:$0xff]   ;;  %v7107_v16 = vld [vmem:[%s10721_s1 + $0x22c] ss:$16 sps:$4 sm:$0xff]  }
  0x26   : > { %v7102_v18 = vld [vmem:[%s10721_s1 + $0x220] ss:$16 sps:$4 sm:$0xff]   ;;  %v7105_v19 = vld [vmem:[%s10721_s1 + $0x228] ss:$16 sps:$4 sm:$0xff]   ;;  %v7110_v20 = vld [vmem:[%s10721_s1 + $0x244] ss:$16 sps:$4 sm:$0xff]  }
  0x27   : > { %3817 = vmatpush1.bf16.msra.mxu0 %v7039_v26  ;;  %4186 = vmatpush1.bf16.msra.mxu1 %v7040_v27  ;;  %v7113_v21 = vld [vmem:[%s10721_s1 + $0x24c] ss:$16 sps:$4 sm:$0xff]   ;;  %v7108_v22 = vld [vmem:[%s10721_s1 + $0x240] ss:$16 sps:$4 sm:$0xff]   ;;  %v7111_v23 = vld [vmem:[%s10721_s1 + $0x248] ss:$16 sps:$4 sm:$0xff]  }
  0x28   : > { %3818 = vmatprep.subr.bf16.mxu0 %v7041_v28  ;;  %4187 = vmatprep.subr.bf16.mxu1 %v7043_v29  ;;  %v7116_v24 = vld [vmem:[%s10721_s1 + $0x264] ss:$16 sps:$4 sm:$0xff]   ;;  %v7119_v25 = vld [vmem:[%s10721_s1 + $0x26c] ss:$16 sps:$4 sm:$0xff]   ;;  %v7114_v26 = vld [vmem:[%s10721_s1 + $0x260] ss:$16 sps:$4 sm:$0xff]  }
  0x29   : > { %v7117_v27 = vld [vmem:[%s10721_s1 + $0x268] ss:$16 sps:$4 sm:$0xff]   ;;  %v7122_v28 = vld [vmem:[%s10721_s1 + $0x284] ss:$16 sps:$4 sm:$0xff]   ;;  %v7125_v29 = vld [vmem:[%s10721_s1 + $0x28c] ss:$16 sps:$4 sm:$0xff]  }
  0x2a   : > { %v7134_v36 = vld [vmem:[%s10721_s1 + $0x2c4] ss:$16 sps:$4 sm:$0xff]   ;;  %v7137_v37 = vld [vmem:[%s10721_s1 + $0x2cc] ss:$16 sps:$4 sm:$0xff]   ;;  %v7132_v38 = vld [vmem:[%s10721_s1 + $0x2c0] ss:$16 sps:$4 sm:$0xff]  }
  0x2b   : > { %3819 = vmatpush1.bf16.msra.mxu0 %v7045_v30  ;;  %4188 = vmatpush1.bf16.msra.mxu1 %v7046_v31  ;;  %v7120_v30 = vld [vmem:[%s10721_s1 + $0x280] ss:$16 sps:$4 sm:$0xff]   ;;  %v7123_v31 = vld [vmem:[%s10721_s1 + $0x288] ss:$16 sps:$4 sm:$0xff]   ;;  %v7164_v58 = vld [vmem:[%s10721_s1 + $0x364] ss:$16 sps:$4 sm:$0xff]  }
  0x2c   : > { %3820 = vmatprep.subr.bf16.mxu0 %v7047_v32  ;;  %4189 = vmatprep.subr.bf16.mxu1 %v7049_v33  ;;  %v7128_v32 = vld [vmem:[%s10721_s1 + $0x2a4] ss:$16 sps:$4 sm:$0xff]   ;;  %v7131_v33 = vld [vmem:[%s10721_s1 + $0x2ac] ss:$16 sps:$4 sm:$0xff]   ;;  %v7138_v43 = vld [vmem:[%s10721_s1 + $0x2e0] ss:$16 sps:$4 sm:$0xff]  }
  0x2d   : > { %v7150_v52 = vld [vmem:[%s10721_s1 + $0x320] ss:$16 sps:$4 sm:$0xff]   ;;  %v7185_v7 = vld [vmem:[%s10721_s1 + $0x3cc] ss:$16 sps:$4 sm:$0xff]   ;;  %s215_s12 = sand.u32 1, %s7933_s19   ;;  %s6351_s13 = sshll.u32 %s7996_s22, 4 }
  0x2e   : > { %s216_s14 = scalar_lea.vmem [#allocation2], %s215_s12  ;;  %s10678_s25 = scalar_lea.hbm %s10725_s5, %s6351_s13 }
  0x2f   : > { %3821 = vmatpush1.bf16.msra.mxu0 %v7051_v34  ;;  %4190 = vmatpush1.bf16.msra.mxu1 %v7052_v35  ;;  %v7126_v34 = vld [vmem:[%s10721_s1 + $0x2a0] ss:$16 sps:$4 sm:$0xff]   ;;  %v7129_v35 = vld [vmem:[%s10721_s1 + $0x2a8] ss:$16 sps:$4 sm:$0xff]   ;;  %s5522_s15 = sshll.u32 %s216_s14, 4  ;;  %s5510_s30 = scalar_lea.sflag [#allocation3], %s215_s12  ;;  %s10680_s15 = int_to_ptr.vmem [resolvable:$true] %s5522_s15 }
  0x30   : > { %3822 = vmatprep.subr.bf16.mxu0 %v7053_v39  ;;  %4191 = vmatprep.subr.bf16.mxu1 %v7055_v40  ;;  %v7135_v39 = vld [vmem:[%s10721_s1 + $0x2c8] ss:$16 sps:$4 sm:$0xff]   ;;  %v7140_v40 = vld [vmem:[%s10721_s1 + $0x2e4] ss:$16 sps:$4 sm:$0xff]   ;;  %s7944_s22 = smov [#allocation2]  }
  0x31   : > { %s7883_s6 = sshll.u32 %s7944_s22, 4  ;;  %s7884_s6 = int_to_ptr.vmem [resolvable:$false] %s7883_s6 }
  0x32   : > { %s7885_s7 = scalar_lea.vmem %s7884_s6, 32  ;;  %p7886_p0 = scmp.lt.s32.totalorder %s10680_s15, %s7884_s6 }
  0x33   : > { %3823 = vmatpush1.bf16.msra.mxu0 %v7057_v41  ;;  %4192 = vmatpush1.bf16.msra.mxu1 %v7058_v44  ;;  %v7143_v41 = vld [vmem:[%s10721_s1 + $0x2ec] ss:$16 sps:$4 sm:$0xff]   ;;  %v7141_v44 = vld [vmem:[%s10721_s1 + $0x2e8] ss:$16 sps:$4 sm:$0xff]  }
  0x34   : > { %3824 = vmatprep.subr.bf16.mxu0 %v7059_v45  ;;  %4193 = vmatprep.subr.bf16.mxu1 %v7061_v46  ;;  %v7146_v45 = vld [vmem:[%s10721_s1 + $0x304] ss:$16 sps:$4 sm:$0xff]   ;;  %v7149_v46 = vld [vmem:[%s10721_s1 + $0x30c] ss:$16 sps:$4 sm:$0xff]  }
  0x37   : > { %3825 = vmatpush1.bf16.msra.mxu0 %v7063_v47  ;;  %4194 = vmatpush1.bf16.msra.mxu1 %v7064_v48  ;;  %v7144_v47 = vld [vmem:[%s10721_s1 + $0x300] ss:$16 sps:$4 sm:$0xff]   ;;  %v7147_v48 = vld [vmem:[%s10721_s1 + $0x308] ss:$16 sps:$4 sm:$0xff]  }
  0x38   : > { %3826 = vmatprep.subr.bf16.mxu0 %v7065_v50  ;;  %4195 = vmatprep.subr.bf16.mxu1 %v7067_v51  ;;  %v7152_v50 = vld [vmem:[%s10721_s1 + $0x324] ss:$16 sps:$4 sm:$0xff]   ;;  %v7155_v51 = vld [vmem:[%s10721_s1 + $0x32c] ss:$16 sps:$4 sm:$0xff]  }
  0x3b   : > { %3827 = vmatpush1.bf16.msra.mxu0 %v7069_v53  ;;  %4196 = vmatpush1.bf16.msra.mxu1 %v7070_v55  ;;  %v7153_v53 = vld [vmem:[%s10721_s1 + $0x328] ss:$16 sps:$4 sm:$0xff]   ;;  %v7161_v55 = vld [vmem:[%s10721_s1 + $0x34c] ss:$16 sps:$4 sm:$0xff]  }
  0x3c   : > { %3828 = vmatprep.subr.bf16.mxu0 %v7071_v56  ;;  %4197 = vmatprep.subr.bf16.mxu1 %v7073_v57  ;;  %v7156_v56 = vld [vmem:[%s10721_s1 + $0x340] ss:$16 sps:$4 sm:$0xff]   ;;  %v7159_v57 = vld [vmem:[%s10721_s1 + $0x348] ss:$16 sps:$4 sm:$0xff]  }
  0x3f   : > { %3829 = vmatpush1.bf16.msra.mxu0 %v7075_v59  ;;  %4198 = vmatpush1.bf16.msra.mxu1 %v7076_v60  ;;  %v7167_v59 = vld [vmem:[%s10721_s1 + $0x36c] ss:$16 sps:$4 sm:$0xff]   ;;  %v7162_v60 = vld [vmem:[%s10721_s1 + $0x360] ss:$16 sps:$4 sm:$0xff]  }
  0x40   : > { %3830 = vmatprep.subr.bf16.mxu0 %v7077_v61  ;;  %4199 = vmatprep.subr.bf16.mxu1 %v7079_v62  ;;  %v7165_v61 = vld [vmem:[%s10721_s1 + $0x368] ss:$16 sps:$4 sm:$0xff]   ;;  %v7170_v62 = vld [vmem:[%s10721_s1 + $0x384] ss:$16 sps:$4 sm:$0xff]  }
  0x43   : > { %3831 = vmatpush1.bf16.msra.mxu0 %v7081_v63  ;;  %4200 = vmatpush1.bf16.msra.mxu1 %v7082_v0  ;;  %v7173_v63 = vld [vmem:[%s10721_s1 + $0x38c] ss:$16 sps:$4 sm:$0xff]   ;;  %v7168_v0 = vld [vmem:[%s10721_s1 + $0x380] ss:$16 sps:$4 sm:$0xff]  }
  0x44   : > { %3832 = vmatprep.subr.bf16.mxu0 %v7083_v1  ;;  %4201 = vmatprep.subr.bf16.mxu1 %v7085_v2  ;;  %v7171_v1 = vld [vmem:[%s10721_s1 + $0x388] ss:$16 sps:$4 sm:$0xff]   ;;  %v7176_v2 = vld [vmem:[%s10721_s1 + $0x3a4] ss:$16 sps:$4 sm:$0xff]  }
  0x47   : > { %3833 = vmatpush1.bf16.msra.mxu0 %v7087_v3  ;;  %4202 = vmatpush1.bf16.msra.mxu1 %v7088_v4  ;;  %v7179_v3 = vld [vmem:[%s10721_s1 + $0x3ac] ss:$16 sps:$4 sm:$0xff]   ;;  %v7174_v4 = vld [vmem:[%s10721_s1 + $0x3a0] ss:$16 sps:$4 sm:$0xff]  }
  0x48   : > { %3834 = vmatprep.subr.bf16.mxu0 %v7089_v5  ;;  %4203 = vmatprep.subr.bf16.mxu1 %v7091_v6  ;;  %v7177_v5 = vld [vmem:[%s10721_s1 + $0x3a8] ss:$16 sps:$4 sm:$0xff]   ;;  %v7182_v6 = vld [vmem:[%s10721_s1 + $0x3c4] ss:$16 sps:$4 sm:$0xff]  }
  0x4b   : > { %3835 = vmatpush1.bf16.msra.mxu0 %v7093_v8  ;;  %4204 = vmatpush1.bf16.msra.mxu1 %v7094_v9  ;;  %v7180_v8 = vld [vmem:[%s10721_s1 + $0x3c0] ss:$16 sps:$4 sm:$0xff]   ;;  %v7183_v9 = vld [vmem:[%s10721_s1 + $0x3c8] ss:$16 sps:$4 sm:$0xff]  }
  0x4c   : > { %3845 = vmatprep.subr.bf16.mxu0 %v7098_v10  ;;  %4214 = vmatprep.subr.bf16.mxu1 %v7101_v11  ;;  %v7188_v10 = vld [vmem:[%s10721_s1 + $0x3e4] ss:$16 sps:$4 sm:$0xff]   ;;  %v7191_v11 = vld [vmem:[%s10721_s1 + $0x3ec] ss:$16 sps:$4 sm:$0xff]  }
  0x4e   : > { %3837 = vmatmul.mubr.bf16.vlgmr.msra.gmra.mrb[0].mxu0 %v837_v54  ;;  %4206 = vmatmul.mubr.bf16.vlgmr.msra.gmra.mrb[0].mxu1 %v837_v54  ;;  %v7158_v54 = vld [vmem:[%s10721_s1 + $0x344] ss:$16 sps:$4 sm:$0xff]  }
  0x4f   : > { %3846 = vmatpush1.bf16.msra.mxu0 %v7096_v13  ;;  %4215 = vmatpush1.bf16.msra.mxu1 %v7099_v14  ;;  %v7186_v13 = vld [vmem:[%s10721_s1 + $0x3e0] ss:$16 sps:$4 sm:$0xff]   ;;  %v7189_v14 = vld [vmem:[%s10721_s1 + $0x3e8] ss:$16 sps:$4 sm:$0xff]  }
  0x50   : > { %3847 = vmatprep.subr.bf16.mxu0 %v7104_v15  ;;  %4216 = vmatprep.subr.bf16.mxu1 %v7107_v16  ;;  %v7194_v15 = vld [vmem:[%s10721_s1 + $0x404] ss:$16 sps:$4 sm:$0xff]   ;;  %v7197_v16 = vld [vmem:[%s10721_s1 + $0x40c] ss:$16 sps:$4 sm:$0xff]  }
  0x51   : > { %3877 = vmatprep.mubr.bf16.mxu0 %v846_v17  ;;  %4246 = vmatprep.mubr.bf16.mxu1 %v846_v17  ;;  %v7192_v17 = vld [vmem:[%s10721_s1 + $0x400] ss:$16 sps:$4 sm:$0xff]  }
  0x53   : > { %3848 = vmatpush1.bf16.msra.mxu0 %v7102_v18  ;;  %4217 = vmatpush1.bf16.msra.mxu1 %v7105_v19  ;;  %v7195_v18 = vld [vmem:[%s10721_s1 + $0x408] ss:$16 sps:$4 sm:$0xff]  }
  0x54   : > { %3849 = vmatprep.subr.bf16.mxu0 %v7110_v20  ;;  %4218 = vmatprep.subr.bf16.mxu1 %v7113_v21  ;;  %v8439_v19 = vld [vmem:[%s8162_s17 + $0x8] sm:$0xff]  ;;  %v7200_v20 = vld [vmem:[%s10721_s1 + $0x424] ss:$16 sps:$4 sm:$0xff]  }
  0x55   : > { %v7203_v21 = vld [vmem:[%s10721_s1 + $0x42c] ss:$16 sps:$4 sm:$0xff]  }
  0x57   : > { %3850 = vmatpush1.bf16.msra.mxu0 %v7108_v22  ;;  %4219 = vmatpush1.bf16.msra.mxu1 %v7111_v23  ;;  %v8449_v22 = vrot.slane %v8439_v19, %v8165_v49 }
  0x58   : > { %3851 = vmatprep.subr.bf16.mxu0 %v7116_v24  ;;  %4220 = vmatprep.subr.bf16.mxu1 %v7119_v25  ;;  %v7198_v24 = vld [vmem:[%s10721_s1 + $0x420] ss:$16 sps:$4 sm:$0xff]   ;;  %v7201_v25 = vld [vmem:[%s10721_s1 + $0x428] ss:$16 sps:$4 sm:$0xff]  }
  0x59   : > { %v862_v23 = vcombine.high %v8449_v22, %v8449_v22 }
  0x5b   : > { %3852 = vmatpush1.bf16.msra.mxu0 %v7114_v26  ;;  %4221 = vmatpush1.bf16.msra.mxu1 %v7117_v27  ;;  %v7206_v26 = vld [vmem:[%s10721_s1 + $0x444] ss:$16 sps:$4 sm:$0xff]   ;;  %v7204_v27 = vld [vmem:[%s10721_s1 + $0x440] ss:$16 sps:$4 sm:$0xff]  }
  0x5c   : > { %3853 = vmatprep.subr.bf16.mxu0 %v7122_v28  ;;  %4222 = vmatprep.subr.bf16.mxu1 %v7125_v29  ;;  %v7207_v28 = vld [vmem:[%s10721_s1 + $0x448] ss:$16 sps:$4 sm:$0xff]   ;;  %v7212_v29 = vld [vmem:[%s10721_s1 + $0x464] ss:$16 sps:$4 sm:$0xff]  }
  0x5f   : > { %3854 = vmatpush1.bf16.msra.mxu0 %v7120_v30  ;;  %4223 = vmatpush1.bf16.msra.mxu1 %v7123_v31  ;;  %v7215_v30 = vld [vmem:[%s10721_s1 + $0x46c] ss:$16 sps:$4 sm:$0xff]   ;;  %v7210_v31 = vld [vmem:[%s10721_s1 + $0x460] ss:$16 sps:$4 sm:$0xff]  }
  0x60   : > { %3855 = vmatprep.subr.bf16.mxu0 %v7128_v32  ;;  %4224 = vmatprep.subr.bf16.mxu1 %v7131_v33  ;;  %v7213_v32 = vld [vmem:[%s10721_s1 + $0x468] ss:$16 sps:$4 sm:$0xff]   ;;  %v7218_v33 = vld [vmem:[%s10721_s1 + $0x484] ss:$16 sps:$4 sm:$0xff]  }
  0x63   : > { %3856 = vmatpush1.bf16.msra.mxu0 %v7126_v34  ;;  %4225 = vmatpush1.bf16.msra.mxu1 %v7129_v35  ;;  %v7221_v34 = vld [vmem:[%s10721_s1 + $0x48c] ss:$16 sps:$4 sm:$0xff]   ;;  %v7216_v35 = vld [vmem:[%s10721_s1 + $0x480] ss:$16 sps:$4 sm:$0xff]  }
  0x64   : > { %3857 = vmatprep.subr.bf16.mxu0 %v7134_v36  ;;  %4226 = vmatprep.subr.bf16.mxu1 %v7137_v37  ;;  %v7219_v36 = vld [vmem:[%s10721_s1 + $0x488] ss:$16 sps:$4 sm:$0xff]   ;;  %v7224_v37 = vld [vmem:[%s10721_s1 + $0x4a4] ss:$16 sps:$4 sm:$0xff]  }
  0x67   : > { %3858 = vmatpush1.bf16.msra.mxu0 %v7132_v38  ;;  %4227 = vmatpush1.bf16.msra.mxu1 %v7135_v39  ;;  %v7227_v38 = vld [vmem:[%s10721_s1 + $0x4ac] ss:$16 sps:$4 sm:$0xff]   ;;  %v7222_v39 = vld [vmem:[%s10721_s1 + $0x4a0] ss:$16 sps:$4 sm:$0xff]  }
  0x68   : > { %3859 = vmatprep.subr.bf16.mxu0 %v7140_v40  ;;  %4228 = vmatprep.subr.bf16.mxu1 %v7143_v41  ;;  %v7225_v40 = vld [vmem:[%s10721_s1 + $0x4a8] ss:$16 sps:$4 sm:$0xff]   ;;  %v7230_v41 = vld [vmem:[%s10721_s1 + $0x4c4] ss:$16 sps:$4 sm:$0xff]  }
  0x6b   : > { %3860 = vmatpush1.bf16.msra.mxu0 %v7138_v43  ;;  %4229 = vmatpush1.bf16.msra.mxu1 %v7141_v44  ;;  %v7233_v43 = vld [vmem:[%s10721_s1 + $0x4cc] ss:$16 sps:$4 sm:$0xff]   ;;  %v7228_v44 = vld [vmem:[%s10721_s1 + $0x4c0] ss:$16 sps:$4 sm:$0xff]  }
  0x6c   : > { %3861 = vmatprep.subr.bf16.mxu0 %v7146_v45  ;;  %4230 = vmatprep.subr.bf16.mxu1 %v7149_v46  ;;  %v7231_v45 = vld [vmem:[%s10721_s1 + $0x4c8] ss:$16 sps:$4 sm:$0xff]   ;;  %v7236_v46 = vld [vmem:[%s10721_s1 + $0x4e4] ss:$16 sps:$4 sm:$0xff]  }
  0x6f   : > { %3862 = vmatpush1.bf16.msra.mxu0 %v7144_v47  ;;  %4231 = vmatpush1.bf16.msra.mxu1 %v7147_v48  ;;  %v7239_v47 = vld [vmem:[%s10721_s1 + $0x4ec] ss:$16 sps:$4 sm:$0xff]   ;;  %v7234_v48 = vld [vmem:[%s10721_s1 + $0x4e0] ss:$16 sps:$4 sm:$0xff]  }
  0x70   : > { %3863 = vmatprep.subr.bf16.mxu0 %v7152_v50  ;;  %4232 = vmatprep.subr.bf16.mxu1 %v7155_v51  ;;  %v7237_v50 = vld [vmem:[%s10721_s1 + $0x4e8] ss:$16 sps:$4 sm:$0xff]   ;;  %v7242_v51 = vld [vmem:[%s10721_s1 + $0x504] ss:$16 sps:$4 sm:$0xff]  }
  0x73   : > { %3864 = vmatpush1.bf16.msra.mxu0 %v7150_v52  ;;  %4233 = vmatpush1.bf16.msra.mxu1 %v7153_v53  ;;  %v7245_v52 = vld [vmem:[%s10721_s1 + $0x50c] ss:$16 sps:$4 sm:$0xff]   ;;  %v7240_v53 = vld [vmem:[%s10721_s1 + $0x500] ss:$16 sps:$4 sm:$0xff]  }
  0x74   : > { %3865 = vmatprep.subr.bf16.mxu0 %v7158_v54  ;;  %4234 = vmatprep.subr.bf16.mxu1 %v7161_v55  ;;  %v7243_v54 = vld [vmem:[%s10721_s1 + $0x508] ss:$16 sps:$4 sm:$0xff]   ;;  %v7248_v55 = vld [vmem:[%s10721_s1 + $0x524] ss:$16 sps:$4 sm:$0xff]  }
  0x77   : > { %3866 = vmatpush1.bf16.msra.mxu0 %v7156_v56  ;;  %4235 = vmatpush1.bf16.msra.mxu1 %v7159_v57  ;;  %v7251_v56 = vld [vmem:[%s10721_s1 + $0x52c] ss:$16 sps:$4 sm:$0xff]   ;;  %v7246_v57 = vld [vmem:[%s10721_s1 + $0x520] ss:$16 sps:$4 sm:$0xff]  }
  0x78   : > { %3867 = vmatprep.subr.bf16.mxu0 %v7164_v58  ;;  %4236 = vmatprep.subr.bf16.mxu1 %v7167_v59  ;;  %v7249_v58 = vld [vmem:[%s10721_s1 + $0x528] ss:$16 sps:$4 sm:$0xff]   ;;  %v7254_v59 = vld [vmem:[%s10721_s1 + $0x544] ss:$16 sps:$4 sm:$0xff]  }
  0x7b   : > { %3868 = vmatpush1.bf16.msra.mxu0 %v7162_v60  ;;  %4237 = vmatpush1.bf16.msra.mxu1 %v7165_v61  ;;  %v7257_v60 = vld [vmem:[%s10721_s1 + $0x54c] ss:$16 sps:$4 sm:$0xff]   ;;  %v7252_v61 = vld [vmem:[%s10721_s1 + $0x540] ss:$16 sps:$4 sm:$0xff]  }
  0x7c   : > { %3869 = vmatprep.subr.bf16.mxu0 %v7170_v62  ;;  %4238 = vmatprep.subr.bf16.mxu1 %v7173_v63  ;;  %v7255_v62 = vld [vmem:[%s10721_s1 + $0x548] ss:$16 sps:$4 sm:$0xff]   ;;  %v7260_v63 = vld [vmem:[%s10721_s1 + $0x564] ss:$16 sps:$4 sm:$0xff]  }
  0x7f   : > { %3870 = vmatpush1.bf16.msra.mxu0 %v7168_v0  ;;  %4239 = vmatpush1.bf16.msra.mxu1 %v7171_v1  ;;  %v7263_v0 = vld [vmem:[%s10721_s1 + $0x56c] ss:$16 sps:$4 sm:$0xff]   ;;  %v7258_v1 = vld [vmem:[%s10721_s1 + $0x560] ss:$16 sps:$4 sm:$0xff]  }
  0x80   : > { %3871 = vmatprep.subr.bf16.mxu0 %v7176_v2  ;;  %4240 = vmatprep.subr.bf16.mxu1 %v7179_v3  ;;  %v7261_v2 = vld [vmem:[%s10721_s1 + $0x568] ss:$16 sps:$4 sm:$0xff]   ;;  %v7266_v3 = vld [vmem:[%s10721_s1 + $0x584] ss:$16 sps:$4 sm:$0xff]  }
  0x83   : > { %3872 = vmatpush1.bf16.msra.mxu0 %v7174_v4  ;;  %4241 = vmatpush1.bf16.msra.mxu1 %v7177_v5  ;;  %v7269_v4 = vld [vmem:[%s10721_s1 + $0x58c] ss:$16 sps:$4 sm:$0xff]   ;;  %v7264_v5 = vld [vmem:[%s10721_s1 + $0x580] ss:$16 sps:$4 sm:$0xff]  }
  0x84   : > { %3873 = vmatprep.subr.bf16.mxu0 %v7182_v6  ;;  %4242 = vmatprep.subr.bf16.mxu1 %v7185_v7  ;;  %v7267_v6 = vld [vmem:[%s10721_s1 + $0x588] ss:$16 sps:$4 sm:$0xff]   ;;  %v7272_v7 = vld [vmem:[%s10721_s1 + $0x5a4] ss:$16 sps:$4 sm:$0xff]  }
  0x87   : > { %3874 = vmatpush1.bf16.msra.mxu0 %v7180_v8  ;;  %4243 = vmatpush1.bf16.msra.mxu1 %v7183_v9  ;;  %v7275_v8 = vld [vmem:[%s10721_s1 + $0x5ac] ss:$16 sps:$4 sm:$0xff]   ;;  %v7270_v9 = vld [vmem:[%s10721_s1 + $0x5a0] ss:$16 sps:$4 sm:$0xff]  }
  0x88   : > { %3875 = vmatprep.subr.bf16.mxu0 %v7188_v10  ;;  %4244 = vmatprep.subr.bf16.mxu1 %v7191_v11  ;;  %v7273_v10 = vld [vmem:[%s10721_s1 + $0x5a8] ss:$16 sps:$4 sm:$0xff]   ;;  %v7278_v11 = vld [vmem:[%s10721_s1 + $0x5c4] ss:$16 sps:$4 sm:$0xff]  }
  0x8b   : > { %3876 = vmatpush1.bf16.msra.mxu0 %v7186_v13  ;;  %4245 = vmatpush1.bf16.msra.mxu1 %v7189_v14  ;;  %v7281_v13 = vld [vmem:[%s10721_s1 + $0x5cc] ss:$16 sps:$4 sm:$0xff]   ;;  %v7276_v14 = vld [vmem:[%s10721_s1 + $0x5c0] ss:$16 sps:$4 sm:$0xff]  }
  0x8c   : > { %3886 = vmatprep.subr.bf16.mxu0 %v7194_v15  ;;  %4255 = vmatprep.subr.bf16.mxu1 %v7197_v16  ;;  %v7279_v15 = vld [vmem:[%s10721_s1 + $0x5c8] ss:$16 sps:$4 sm:$0xff]   ;;  %v7284_v16 = vld [vmem:[%s10721_s1 + $0x5e4] ss:$16 sps:$4 sm:$0xff]  }
  0x8e   : > { %3878 = vmatmul.mubr.bf16.vlgmr.msra.gmra.mrb[0].mxu0 %v8236_v12  ;;  %4247 = vmatmul.mubr.bf16.vlgmr.msra.gmra.mrb[0].mxu1 %v8236_v12  ;;  %v7209_v12 = vld [vmem:[%s10721_s1 + $0x44c] ss:$16 sps:$4 sm:$0xff]  }
  0x8f   : > { %3887 = vmatpush1.bf16.msra.mxu0 %v7192_v17  ;;  %4256 = vmatpush1.bf16.msra.mxu1 %v7195_v18  ;;  %v7287_v17 = vld [vmem:[%s10721_s1 + $0x5ec] ss:$16 sps:$4 sm:$0xff]   ;;  %v847_v18 = vcombine.high %v8439_v19, %v8439_v19 }
  0x90   : > { %3888 = vmatprep.subr.bf16.mxu0 %v7200_v20  ;;  %4257 = vmatprep.subr.bf16.mxu1 %v7203_v21  ;;  %v7282_v20 = vld [vmem:[%s10721_s1 + $0x5e0] ss:$16 sps:$4 sm:$0xff]   ;;  %v7285_v21 = vld [vmem:[%s10721_s1 + $0x5e8] ss:$16 sps:$4 sm:$0xff]   ;;  %v7293_v19 = vld [vmem:[%s10721_s1 + $0x60c] ss:$16 sps:$4 sm:$0xff]  }
  0x91   : > { %3918 = vmatprep.mubr.bf16.mxu0 %v862_v23  ;;  %4287 = vmatprep.mubr.bf16.mxu1 %v862_v23  ;;  %v7290_v23 = vld [vmem:[%s10721_s1 + $0x604] ss:$16 sps:$4 sm:$0xff]  }
  0x93   : > { %3889 = vmatpush1.bf16.msra.mxu0 %v7198_v24  ;;  %4258 = vmatpush1.bf16.msra.mxu1 %v7201_v25  ;;  %v8638_v24 = vrot.slane %v847_v18, %v8165_v49  ;;  %v7288_v25 = vld [vmem:[%s10721_s1 + $0x600] ss:$16 sps:$4 sm:$0xff]   ;;  %v7377_v18 = vld [vmem:[%s10721_s1 + $0x7cc] ss:$16 sps:$4 sm:$0xff]  }
  0x94   : > { %3890 = vmatprep.subr.bf16.mxu0 %v7206_v26  ;;  %4259 = vmatprep.subr.bf16.mxu1 %v7209_v12  ;;  %v7291_v26 = vld [vmem:[%s10721_s1 + $0x608] ss:$16 sps:$4 sm:$0xff]   ;;  %v7296_v12 = vld [vmem:[%s10721_s1 + $0x624] ss:$16 sps:$4 sm:$0xff]  }
  0x97   : > { %3891 = vmatpush1.bf16.msra.mxu0 %v7204_v27  ;;  %4260 = vmatpush1.bf16.msra.mxu1 %v7207_v28  ;;  %v7299_v27 = vld [vmem:[%s10721_s1 + $0x62c] ss:$16 sps:$4 sm:$0xff]   ;;  %v863_v28 = vcombine.high %v8638_v24, %v8638_v24 }
  0x98   : > { %3892 = vmatprep.subr.bf16.mxu0 %v7212_v29  ;;  %4261 = vmatprep.subr.bf16.mxu1 %v7215_v30  ;;  %v7294_v29 = vld [vmem:[%s10721_s1 + $0x620] ss:$16 sps:$4 sm:$0xff]   ;;  %v7297_v30 = vld [vmem:[%s10721_s1 + $0x628] ss:$16 sps:$4 sm:$0xff]  }
  0x9b   : > { %3893 = vmatpush1.bf16.msra.mxu0 %v7210_v31  ;;  %4262 = vmatpush1.bf16.msra.mxu1 %v7213_v32  ;;  %v7302_v31 = vld [vmem:[%s10721_s1 + $0x644] ss:$16 sps:$4 sm:$0xff]   ;;  %v7300_v32 = vld [vmem:[%s10721_s1 + $0x640] ss:$16 sps:$4 sm:$0xff]  }
  0x9c   : > { %3894 = vmatprep.subr.bf16.mxu0 %v7218_v33  ;;  %4263 = vmatprep.subr.bf16.mxu1 %v7221_v34  ;;  %v7303_v33 = vld [vmem:[%s10721_s1 + $0x648] ss:$16 sps:$4 sm:$0xff]   ;;  %v7308_v34 = vld [vmem:[%s10721_s1 + $0x664] ss:$16 sps:$4 sm:$0xff]  }
  0x9f   : > { %3895 = vmatpush1.bf16.msra.mxu0 %v7216_v35  ;;  %4264 = vmatpush1.bf16.msra.mxu1 %v7219_v36  ;;  %v7311_v35 = vld [vmem:[%s10721_s1 + $0x66c] ss:$16 sps:$4 sm:$0xff]   ;;  %v7306_v36 = vld [vmem:[%s10721_s1 + $0x660] ss:$16 sps:$4 sm:$0xff]  }
  0xa0   : > { %3896 = vmatprep.subr.bf16.mxu0 %v7224_v37  ;;  %4265 = vmatprep.subr.bf16.mxu1 %v7227_v38  ;;  %v7309_v37 = vld [vmem:[%s10721_s1 + $0x668] ss:$16 sps:$4 sm:$0xff]   ;;  %v7314_v38 = vld [vmem:[%s10721_s1 + $0x684] ss:$16 sps:$4 sm:$0xff]  }
  0xa3   : > { %3897 = vmatpush1.bf16.msra.mxu0 %v7222_v39  ;;  %4266 = vmatpush1.bf16.msra.mxu1 %v7225_v40  ;;  %v7317_v39 = vld [vmem:[%s10721_s1 + $0x68c] ss:$16 sps:$4 sm:$0xff]   ;;  %v7312_v40 = vld [vmem:[%s10721_s1 + $0x680] ss:$16 sps:$4 sm:$0xff]  }
  0xa4   : > { %3898 = vmatprep.subr.bf16.mxu0 %v7230_v41  ;;  %4267 = vmatprep.subr.bf16.mxu1 %v7233_v43  ;;  %v7315_v41 = vld [vmem:[%s10721_s1 + $0x688] ss:$16 sps:$4 sm:$0xff]   ;;  %v7320_v43 = vld [vmem:[%s10721_s1 + $0x6a4] ss:$16 sps:$4 sm:$0xff]  }
  0xa7   : > { %3899 = vmatpush1.bf16.msra.mxu0 %v7228_v44  ;;  %4268 = vmatpush1.bf16.msra.mxu1 %v7231_v45  ;;  %v7323_v44 = vld [vmem:[%s10721_s1 + $0x6ac] ss:$16 sps:$4 sm:$0xff]   ;;  %v7318_v45 = vld [vmem:[%s10721_s1 + $0x6a0] ss:$16 sps:$4 sm:$0xff]  }
  0xa8   : > { %3900 = vmatprep.subr.bf16.mxu0 %v7236_v46  ;;  %4269 = vmatprep.subr.bf16.mxu1 %v7239_v47  ;;  %v7321_v46 = vld [vmem:[%s10721_s1 + $0x6a8] ss:$16 sps:$4 sm:$0xff]   ;;  %v7326_v47 = vld [vmem:[%s10721_s1 + $0x6c4] ss:$16 sps:$4 sm:$0xff]  }
  0xab   : > { %3901 = vmatpush1.bf16.msra.mxu0 %v7234_v48  ;;  %4270 = vmatpush1.bf16.msra.mxu1 %v7237_v50  ;;  %v7329_v48 = vld [vmem:[%s10721_s1 + $0x6cc] ss:$16 sps:$4 sm:$0xff]   ;;  %v7324_v50 = vld [vmem:[%s10721_s1 + $0x6c0] ss:$16 sps:$4 sm:$0xff]  }
  0xac   : > { %3902 = vmatprep.subr.bf16.mxu0 %v7242_v51  ;;  %4271 = vmatprep.subr.bf16.mxu1 %v7245_v52  ;;  %v7327_v51 = vld [vmem:[%s10721_s1 + $0x6c8] ss:$16 sps:$4 sm:$0xff]   ;;  %v7332_v52 = vld [vmem:[%s10721_s1 + $0x6e4] ss:$16 sps:$4 sm:$0xff]  }
  0xaf   : > { %3903 = vmatpush1.bf16.msra.mxu0 %v7240_v53  ;;  %4272 = vmatpush1.bf16.msra.mxu1 %v7243_v54  ;;  %v7335_v53 = vld [vmem:[%s10721_s1 + $0x6ec] ss:$16 sps:$4 sm:$0xff]   ;;  %v7330_v54 = vld [vmem:[%s10721_s1 + $0x6e0] ss:$16 sps:$4 sm:$0xff]  }
  0xb0   : > { %3904 = vmatprep.subr.bf16.mxu0 %v7248_v55  ;;  %4273 = vmatprep.subr.bf16.mxu1 %v7251_v56  ;;  %v7333_v55 = vld [vmem:[%s10721_s1 + $0x6e8] ss:$16 sps:$4 sm:$0xff]   ;;  %v7338_v56 = vld [vmem:[%s10721_s1 + $0x704] ss:$16 sps:$4 sm:$0xff]  }
  0xb3   : > { %3905 = vmatpush1.bf16.msra.mxu0 %v7246_v57  ;;  %4274 = vmatpush1.bf16.msra.mxu1 %v7249_v58  ;;  %v7341_v57 = vld [vmem:[%s10721_s1 + $0x70c] ss:$16 sps:$4 sm:$0xff]   ;;  %v7336_v58 = vld [vmem:[%s10721_s1 + $0x700] ss:$16 sps:$4 sm:$0xff]  }
  0xb4   : > { %3906 = vmatprep.subr.bf16.mxu0 %v7254_v59  ;;  %4275 = vmatprep.subr.bf16.mxu1 %v7257_v60  ;;  %v7339_v59 = vld [vmem:[%s10721_s1 + $0x708] ss:$16 sps:$4 sm:$0xff]   ;;  %v7344_v60 = vld [vmem:[%s10721_s1 + $0x724] ss:$16 sps:$4 sm:$0xff]  }
  0xb7   : > { %3907 = vmatpush1.bf16.msra.mxu0 %v7252_v61  ;;  %4276 = vmatpush1.bf16.msra.mxu1 %v7255_v62  ;;  %v7347_v61 = vld [vmem:[%s10721_s1 + $0x72c] ss:$16 sps:$4 sm:$0xff]   ;;  %v7342_v62 = vld [vmem:[%s10721_s1 + $0x720] ss:$16 sps:$4 sm:$0xff]  }
  0xb8   : > { %3908 = vmatprep.subr.bf16.mxu0 %v7260_v63  ;;  %4277 = vmatprep.subr.bf16.mxu1 %v7263_v0  ;;  %v7345_v63 = vld [vmem:[%s10721_s1 + $0x728] ss:$16 sps:$4 sm:$0xff]   ;;  %v7350_v0 = vld [vmem:[%s10721_s1 + $0x744] ss:$16 sps:$4 sm:$0xff]  }
  0xbb   : > { %3909 = vmatpush1.bf16.msra.mxu0 %v7258_v1  ;;  %4278 = vmatpush1.bf16.msra.mxu1 %v7261_v2  ;;  %v7353_v1 = vld [vmem:[%s10721_s1 + $0x74c] ss:$16 sps:$4 sm:$0xff]   ;;  %v7348_v2 = vld [vmem:[%s10721_s1 + $0x740] ss:$16 sps:$4 sm:$0xff]  }
  0xbc   : > { %3910 = vmatprep.subr.bf16.mxu0 %v7266_v3  ;;  %4279 = vmatprep.subr.bf16.mxu1 %v7269_v4  ;;  %v7351_v3 = vld [vmem:[%s10721_s1 + $0x748] ss:$16 sps:$4 sm:$0xff]   ;;  %v7356_v4 = vld [vmem:[%s10721_s1 + $0x764] ss:$16 sps:$4 sm:$0xff]  }
  0xbf   : > { %3911 = vmatpush1.bf16.msra.mxu0 %v7264_v5  ;;  %4280 = vmatpush1.bf16.msra.mxu1 %v7267_v6  ;;  %v7359_v5 = vld [vmem:[%s10721_s1 + $0x76c] ss:$16 sps:$4 sm:$0xff]   ;;  %v7354_v6 = vld [vmem:[%s10721_s1 + $0x760] ss:$16 sps:$4 sm:$0xff]  }
  0xc0   : > { %3912 = vmatprep.subr.bf16.mxu0 %v7272_v7  ;;  %4281 = vmatprep.subr.bf16.mxu1 %v7275_v8  ;;  %v7357_v7 = vld [vmem:[%s10721_s1 + $0x768] ss:$16 sps:$4 sm:$0xff]   ;;  %v7362_v8 = vld [vmem:[%s10721_s1 + $0x784] ss:$16 sps:$4 sm:$0xff]  }
  0xc3   : > { %3913 = vmatpush1.bf16.msra.mxu0 %v7270_v9  ;;  %4282 = vmatpush1.bf16.msra.mxu1 %v7273_v10  ;;  %v7365_v9 = vld [vmem:[%s10721_s1 + $0x78c] ss:$16 sps:$4 sm:$0xff]   ;;  %v7360_v10 = vld [vmem:[%s10721_s1 + $0x780] ss:$16 sps:$4 sm:$0xff]  }
  0xc4   : > { %3914 = vmatprep.subr.bf16.mxu0 %v7278_v11  ;;  %4283 = vmatprep.subr.bf16.mxu1 %v7281_v13  ;;  %v7363_v11 = vld [vmem:[%s10721_s1 + $0x788] ss:$16 sps:$4 sm:$0xff]   ;;  %v7368_v13 = vld [vmem:[%s10721_s1 + $0x7a4] ss:$16 sps:$4 sm:$0xff]  }
  0xc7   : > { %3915 = vmatpush1.bf16.msra.mxu0 %v7276_v14  ;;  %4284 = vmatpush1.bf16.msra.mxu1 %v7279_v15  ;;  %v7371_v14 = vld [vmem:[%s10721_s1 + $0x7ac] ss:$16 sps:$4 sm:$0xff]   ;;  %v7366_v15 = vld [vmem:[%s10721_s1 + $0x7a0] ss:$16 sps:$4 sm:$0xff]  }
  0xc8   : > { %3916 = vmatprep.subr.bf16.mxu0 %v7284_v16  ;;  %4285 = vmatprep.subr.bf16.mxu1 %v7287_v17  ;;  %v7369_v16 = vld [vmem:[%s10721_s1 + $0x7a8] ss:$16 sps:$4 sm:$0xff]   ;;  %v7374_v17 = vld [vmem:[%s10721_s1 + $0x7c4] ss:$16 sps:$4 sm:$0xff]  }
  0xcb   : > { %3917 = vmatpush1.bf16.msra.mxu0 %v7282_v20  ;;  %4286 = vmatpush1.bf16.msra.mxu1 %v7285_v21  ;;  %v7372_v20 = vld [vmem:[%s10721_s1 + $0x7c0] ss:$16 sps:$4 sm:$0xff]   ;;  %v7375_v21 = vld [vmem:[%s10721_s1 + $0x7c8] ss:$16 sps:$4 sm:$0xff]  }
  0xcc   : > { %3927 = vmatprep.subr.bf16.mxu0 %v7290_v23  ;;  %4296 = vmatprep.subr.bf16.mxu1 %v7293_v19  ;;  %v7380_v23 = vld [vmem:[%s10721_s1 + $0x7e4] ss:$16 sps:$4 sm:$0xff]   ;;  %v7383_v19 = vld [vmem:[%s10721_s1 + $0x7ec] ss:$16 sps:$4 sm:$0xff]  }
  0xce   : > { %3919 = vmatmul.mubr.bf16.vlgmr.msra.gmra.mrb[0].mxu0 %v8449_v22  ;;  %4288 = vmatmul.mubr.bf16.vlgmr.msra.gmra.mrb[0].mxu1 %v8449_v22  ;;  %v7305_v22 = vld [vmem:[%s10721_s1 + $0x64c] ss:$16 sps:$4 sm:$0xff]  }
  0xcf   : > { %3928 = vmatpush1.bf16.msra.mxu0 %v7288_v25  ;;  %4297 = vmatpush1.bf16.msra.mxu1 %v7291_v26  ;;  %v7378_v25 = vld [vmem:[%s10721_s1 + $0x7e0] ss:$16 sps:$4 sm:$0xff]  }
  0xd0   : > { %3929 = vmatprep.subr.bf16.mxu0 %v7296_v12  ;;  %4298 = vmatprep.subr.bf16.mxu1 %v7299_v27  ;;  %v8828_v26 = vld [vmem:[%s8162_s17 + $0x10] sm:$0xff]  ;;  %v7381_v12 = vld [vmem:[%s10721_s1 + $0x7e8] ss:$16 sps:$4 sm:$0xff]  }
  0xd1   : > { %3959 = vmatprep.mubr.bf16.mxu0 %v863_v28  ;;  %4328 = vmatprep.mubr.bf16.mxu1 %v863_v28  ;;  %v7387_v27 = vld [vmem:[%s10721_s1 + $0x804] ss:$16 sps:$4 sm:$0xff]   ;;  %v7390_v28 = vld [vmem:[%s10721_s1 + $0x80c] ss:$16 sps:$4 sm:$0xff]  }
  0xd3   : > { %3930 = vmatpush1.bf16.msra.mxu0 %v7294_v29  ;;  %4299 = vmatpush1.bf16.msra.mxu1 %v7297_v30  ;;  %v8841_v29 = vrot.slane %v8828_v26, %v8165_v49  ;;  %v7385_v30 = vld [vmem:[%s10721_s1 + $0x800] ss:$16 sps:$4 sm:$0xff]  }
  0xd4   : > { %3931 = vmatprep.subr.bf16.mxu0 %v7302_v31  ;;  %4300 = vmatprep.subr.bf16.mxu1 %v7305_v22  ;;  %v7388_v31 = vld [vmem:[%s10721_s1 + $0x808] ss:$16 sps:$4 sm:$0xff]   ;;  %v7393_v22 = vld [vmem:[%s10721_s1 + $0x824] ss:$16 sps:$4 sm:$0xff]  }
  0xd7   : > { %3932 = vmatpush1.bf16.msra.mxu0 %v7300_v32  ;;  %4301 = vmatpush1.bf16.msra.mxu1 %v7303_v33  ;;  %v7396_v32 = vld [vmem:[%s10721_s1 + $0x82c] ss:$16 sps:$4 sm:$0xff]   ;;  %v879_v33 = vcombine.high %v8841_v29, %v8841_v29 }
  0xd8   : > { %3933 = vmatprep.subr.bf16.mxu0 %v7308_v34  ;;  %4302 = vmatprep.subr.bf16.mxu1 %v7311_v35  ;;  %v7391_v34 = vld [vmem:[%s10721_s1 + $0x820] ss:$16 sps:$4 sm:$0xff]   ;;  %v7394_v35 = vld [vmem:[%s10721_s1 + $0x828] ss:$16 sps:$4 sm:$0xff]  }
  0xdb   : > { %3934 = vmatpush1.bf16.msra.mxu0 %v7306_v36  ;;  %4303 = vmatpush1.bf16.msra.mxu1 %v7309_v37  ;;  %v7399_v36 = vld [vmem:[%s10721_s1 + $0x844] ss:$16 sps:$4 sm:$0xff]   ;;  %v7397_v37 = vld [vmem:[%s10721_s1 + $0x840] ss:$16 sps:$4 sm:$0xff]  }
  0xdc   : > { %3935 = vmatprep.subr.bf16.mxu0 %v7314_v38  ;;  %4304 = vmatprep.subr.bf16.mxu1 %v7317_v39  ;;  %v7400_v38 = vld [vmem:[%s10721_s1 + $0x848] ss:$16 sps:$4 sm:$0xff]   ;;  %v7405_v39 = vld [vmem:[%s10721_s1 + $0x864] ss:$16 sps:$4 sm:$0xff]  }
  0xdf   : > { %3936 = vmatpush1.bf16.msra.mxu0 %v7312_v40  ;;  %4305 = vmatpush1.bf16.msra.mxu1 %v7315_v41  ;;  %v7408_v40 = vld [vmem:[%s10721_s1 + $0x86c] ss:$16 sps:$4 sm:$0xff]   ;;  %v7403_v41 = vld [vmem:[%s10721_s1 + $0x860] ss:$16 sps:$4 sm:$0xff]  }
  0xe0   : > { %3937 = vmatprep.subr.bf16.mxu0 %v7320_v43  ;;  %4306 = vmatprep.subr.bf16.mxu1 %v7323_v44  ;;  %v7406_v43 = vld [vmem:[%s10721_s1 + $0x868] ss:$16 sps:$4 sm:$0xff]   ;;  %v7411_v44 = vld [vmem:[%s10721_s1 + $0x884] ss:$16 sps:$4 sm:$0xff]  }
  0xe3   : > { %3938 = vmatpush1.bf16.msra.mxu0 %v7318_v45  ;;  %4307 = vmatpush1.bf16.msra.mxu1 %v7321_v46  ;;  %v7414_v45 = vld [vmem:[%s10721_s1 + $0x88c] ss:$16 sps:$4 sm:$0xff]   ;;  %v7409_v46 = vld [vmem:[%s10721_s1 + $0x880] ss:$16 sps:$4 sm:$0xff]  }
  0xe4   : > { %3939 = vmatprep.subr.bf16.mxu0 %v7326_v47  ;;  %4308 = vmatprep.subr.bf16.mxu1 %v7329_v48  ;;  %v7412_v47 = vld [vmem:[%s10721_s1 + $0x888] ss:$16 sps:$4 sm:$0xff]   ;;  %v7417_v48 = vld [vmem:[%s10721_s1 + $0x8a4] ss:$16 sps:$4 sm:$0xff]  }
  0xe7   : > { %3940 = vmatpush1.bf16.msra.mxu0 %v7324_v50  ;;  %4309 = vmatpush1.bf16.msra.mxu1 %v7327_v51  ;;  %v7420_v50 = vld [vmem:[%s10721_s1 + $0x8ac] ss:$16 sps:$4 sm:$0xff]   ;;  %v7415_v51 = vld [vmem:[%s10721_s1 + $0x8a0] ss:$16 sps:$4 sm:$0xff]  }
  0xe8   : > { %3941 = vmatprep.subr.bf16.mxu0 %v7332_v52  ;;  %4310 = vmatprep.subr.bf16.mxu1 %v7335_v53  ;;  %v7418_v52 = vld [vmem:[%s10721_s1 + $0x8a8] ss:$16 sps:$4 sm:$0xff]   ;;  %v7423_v53 = vld [vmem:[%s10721_s1 + $0x8c4] ss:$16 sps:$4 sm:$0xff]  }
  0xeb   : > { %3942 = vmatpush1.bf16.msra.mxu0 %v7330_v54  ;;  %4311 = vmatpush1.bf16.msra.mxu1 %v7333_v55  ;;  %v7426_v54 = vld [vmem:[%s10721_s1 + $0x8cc] ss:$16 sps:$4 sm:$0xff]   ;;  %v7421_v55 = vld [vmem:[%s10721_s1 + $0x8c0] ss:$16 sps:$4 sm:$0xff]  }
  0xec   : > { %3943 = vmatprep.subr.bf16.mxu0 %v7338_v56  ;;  %4312 = vmatprep.subr.bf16.mxu1 %v7341_v57  ;;  %v7424_v56 = vld [vmem:[%s10721_s1 + $0x8c8] ss:$16 sps:$4 sm:$0xff]   ;;  %v7429_v57 = vld [vmem:[%s10721_s1 + $0x8e4] ss:$16 sps:$4 sm:$0xff]  }
  0xef   : > { %3944 = vmatpush1.bf16.msra.mxu0 %v7336_v58  ;;  %4313 = vmatpush1.bf16.msra.mxu1 %v7339_v59  ;;  %v7432_v58 = vld [vmem:[%s10721_s1 + $0x8ec] ss:$16 sps:$4 sm:$0xff]   ;;  %v7427_v59 = vld [vmem:[%s10721_s1 + $0x8e0] ss:$16 sps:$4 sm:$0xff]  }
  0xf0   : > { %3945 = vmatprep.subr.bf16.mxu0 %v7344_v60  ;;  %4314 = vmatprep.subr.bf16.mxu1 %v7347_v61  ;;  %v7430_v60 = vld [vmem:[%s10721_s1 + $0x8e8] ss:$16 sps:$4 sm:$0xff]   ;;  %v7435_v61 = vld [vmem:[%s10721_s1 + $0x904] ss:$16 sps:$4 sm:$0xff]  }
  0xf3   : > { %3946 = vmatpush1.bf16.msra.mxu0 %v7342_v62  ;;  %4315 = vmatpush1.bf16.msra.mxu1 %v7345_v63  ;;  %v7438_v62 = vld [vmem:[%s10721_s1 + $0x90c] ss:$16 sps:$4 sm:$0xff]   ;;  %v7433_v63 = vld [vmem:[%s10721_s1 + $0x900] ss:$16 sps:$4 sm:$0xff]  }
  0xf4   : > { %3947 = vmatprep.subr.bf16.mxu0 %v7350_v0  ;;  %4316 = vmatprep.subr.bf16.mxu1 %v7353_v1  ;;  %v7436_v0 = vld [vmem:[%s10721_s1 + $0x908] ss:$16 sps:$4 sm:$0xff]   ;;  %v7441_v1 = vld [vmem:[%s10721_s1 + $0x924] ss:$16 sps:$4 sm:$0xff]  }
  0xf7   : > { %3948 = vmatpush1.bf16.msra.mxu0 %v7348_v2  ;;  %4317 = vmatpush1.bf16.msra.mxu1 %v7351_v3  ;;  %v7444_v2 = vld [vmem:[%s10721_s1 + $0x92c] ss:$16 sps:$4 sm:$0xff]   ;;  %v7439_v3 = vld [vmem:[%s10721_s1 + $0x920] ss:$16 sps:$4 sm:$0xff]  }
  0xf8   : > { %3949 = vmatprep.subr.bf16.mxu0 %v7356_v4  ;;  %4318 = vmatprep.subr.bf16.mxu1 %v7359_v5  ;;  %v7442_v4 = vld [vmem:[%s10721_s1 + $0x928] ss:$16 sps:$4 sm:$0xff]   ;;  %v7447_v5 = vld [vmem:[%s10721_s1 + $0x944] ss:$16 sps:$4 sm:$0xff]  }
  0xfb   : > { %3950 = vmatpush1.bf16.msra.mxu0 %v7354_v6  ;;  %4319 = vmatpush1.bf16.msra.mxu1 %v7357_v7  ;;  %v7450_v6 = vld [vmem:[%s10721_s1 + $0x94c] ss:$16 sps:$4 sm:$0xff]   ;;  %v7445_v7 = vld [vmem:[%s10721_s1 + $0x940] ss:$16 sps:$4 sm:$0xff]  }
  0xfc   : > { %3951 = vmatprep.subr.bf16.mxu0 %v7362_v8  ;;  %4320 = vmatprep.subr.bf16.mxu1 %v7365_v9  ;;  %v7448_v8 = vld [vmem:[%s10721_s1 + $0x948] ss:$16 sps:$4 sm:$0xff]   ;;  %v7453_v9 = vld [vmem:[%s10721_s1 + $0x964] ss:$16 sps:$4 sm:$0xff]  }
  0xff   : > { %3952 = vmatpush1.bf16.msra.mxu0 %v7360_v10  ;;  %4321 = vmatpush1.bf16.msra.mxu1 %v7363_v11  ;;  %v7456_v10 = vld [vmem:[%s10721_s1 + $0x96c] ss:$16 sps:$4 sm:$0xff]   ;;  %v7451_v11 = vld [vmem:[%s10721_s1 + $0x960] ss:$16 sps:$4 sm:$0xff]  }
 0x100   : > { %3953 = vmatprep.subr.bf16.mxu0 %v7368_v13  ;;  %4322 = vmatprep.subr.bf16.mxu1 %v7371_v14  ;;  %v7454_v13 = vld [vmem:[%s10721_s1 + $0x968] ss:$16 sps:$4 sm:$0xff]   ;;  %v7459_v14 = vld [vmem:[%s10721_s1 + $0x984] ss:$16 sps:$4 sm:$0xff]  }
 0x103   : > { %3954 = vmatpush1.bf16.msra.mxu0 %v7366_v15  ;;  %4323 = vmatpush1.bf16.msra.mxu1 %v7369_v16  ;;  %v7462_v15 = vld [vmem:[%s10721_s1 + $0x98c] ss:$16 sps:$4 sm:$0xff]   ;;  %v7457_v16 = vld [vmem:[%s10721_s1 + $0x980] ss:$16 sps:$4 sm:$0xff]  }
 0x104   : > { %3955 = vmatprep.subr.bf16.mxu0 %v7374_v17  ;;  %4324 = vmatprep.subr.bf16.mxu1 %v7377_v18  ;;  %v7460_v17 = vld [vmem:[%s10721_s1 + $0x988] ss:$16 sps:$4 sm:$0xff]   ;;  %v7465_v18 = vld [vmem:[%s10721_s1 + $0x9a4] ss:$16 sps:$4 sm:$0xff]  }
 0x107   : > { %3956 = vmatpush1.bf16.msra.mxu0 %v7372_v20  ;;  %4325 = vmatpush1.bf16.msra.mxu1 %v7375_v21  ;;  %v7468_v20 = vld [vmem:[%s10721_s1 + $0x9ac] ss:$16 sps:$4 sm:$0xff]   ;;  %v7463_v21 = vld [vmem:[%s10721_s1 + $0x9a0] ss:$16 sps:$4 sm:$0xff]  }
 0x108   : > { %3957 = vmatprep.subr.bf16.mxu0 %v7380_v23  ;;  %4326 = vmatprep.subr.bf16.mxu1 %v7383_v19  ;;  %v7466_v23 = vld [vmem:[%s10721_s1 + $0x9a8] ss:$16 sps:$4 sm:$0xff]   ;;  %v7471_v19 = vld [vmem:[%s10721_s1 + $0x9c4] ss:$16 sps:$4 sm:$0xff]  }
 0x10b   : > { %3958 = vmatpush1.bf16.msra.mxu0 %v7378_v25  ;;  %4327 = vmatpush1.bf16.msra.mxu1 %v7381_v12  ;;  %v7474_v25 = vld [vmem:[%s10721_s1 + $0x9cc] ss:$16 sps:$4 sm:$0xff]   ;;  %v7469_v12 = vld [vmem:[%s10721_s1 + $0x9c0] ss:$16 sps:$4 sm:$0xff]  }
 0x10c   : > { %3968 = vmatprep.subr.bf16.mxu0 %v7387_v27  ;;  %4337 = vmatprep.subr.bf16.mxu1 %v7390_v28  ;;  %v7472_v27 = vld [vmem:[%s10721_s1 + $0x9c8] ss:$16 sps:$4 sm:$0xff]   ;;  %v7477_v28 = vld [vmem:[%s10721_s1 + $0x9e4] ss:$16 sps:$4 sm:$0xff]  }
 0x10e   : > { %3960 = vmatmul.mubr.bf16.vlgmr.msra.gmra.mrb[0].mxu0 %v8638_v24  ;;  %4329 = vmatmul.mubr.bf16.vlgmr.msra.gmra.mrb[0].mxu1 %v8638_v24  ;;  %v7402_v24 = vld [vmem:[%s10721_s1 + $0x84c] ss:$16 sps:$4 sm:$0xff]  }
 0x10f   : > { %3969 = vmatpush1.bf16.msra.mxu0 %v7385_v30  ;;  %4338 = vmatpush1.bf16.msra.mxu1 %v7388_v31  ;;  %v7480_v30 = vld [vmem:[%s10721_s1 + $0x9ec] ss:$16 sps:$4 sm:$0xff]   ;;  %v864_v31 = vcombine.high %v8828_v26, %v8828_v26 }
 0x110   : > { %3970 = vmatprep.subr.bf16.mxu0 %v7393_v22  ;;  %4339 = vmatprep.subr.bf16.mxu1 %v7396_v32  ;;  %v7475_v22 = vld [vmem:[%s10721_s1 + $0x9e0] ss:$16 sps:$4 sm:$0xff]   ;;  %v7478_v32 = vld [vmem:[%s10721_s1 + $0x9e8] ss:$16 sps:$4 sm:$0xff]   ;;  %v7486_v26 = vld [vmem:[%s10721_s1 + $0xa0c] ss:$16 sps:$4 sm:$0xff]  }
 0x111   : > { %4000 = vmatprep.mubr.bf16.mxu0 %v879_v33  ;;  %4369 = vmatprep.mubr.bf16.mxu1 %v879_v33  ;;  %v7483_v33 = vld [vmem:[%s10721_s1 + $0xa04] ss:$16 sps:$4 sm:$0xff]  }
 0x113   : > { %3971 = vmatpush1.bf16.msra.mxu0 %v7391_v34  ;;  %4340 = vmatpush1.bf16.msra.mxu1 %v7394_v35  ;;  %v9042_v34 = vrot.slane %v864_v31, %v8165_v49  ;;  %v7481_v35 = vld [vmem:[%s10721_s1 + $0xa00] ss:$16 sps:$4 sm:$0xff]   ;;  %v7570_v31 = vld [vmem:[%s10721_s1 + $0xbcc] ss:$16 sps:$4 sm:$0xff]  }
 0x114   : > { %3972 = vmatprep.subr.bf16.mxu0 %v7399_v36  ;;  %4341 = vmatprep.subr.bf16.mxu1 %v7402_v24  ;;  %v7484_v36 = vld [vmem:[%s10721_s1 + $0xa08] ss:$16 sps:$4 sm:$0xff]   ;;  %v7489_v24 = vld [vmem:[%s10721_s1 + $0xa24] ss:$16 sps:$4 sm:$0xff]  }
 0x117   : > { %3973 = vmatpush1.bf16.msra.mxu0 %v7397_v37  ;;  %4342 = vmatpush1.bf16.msra.mxu1 %v7400_v38  ;;  %v7492_v37 = vld [vmem:[%s10721_s1 + $0xa2c] ss:$16 sps:$4 sm:$0xff]   ;;  %v880_v38 = vcombine.high %v9042_v34, %v9042_v34 }
 0x118   : > { %3974 = vmatprep.subr.bf16.mxu0 %v7405_v39  ;;  %4343 = vmatprep.subr.bf16.mxu1 %v7408_v40  ;;  %v7487_v39 = vld [vmem:[%s10721_s1 + $0xa20] ss:$16 sps:$4 sm:$0xff]   ;;  %v7490_v40 = vld [vmem:[%s10721_s1 + $0xa28] ss:$16 sps:$4 sm:$0xff]  }
 0x11b   : > { %3975 = vmatpush1.bf16.msra.mxu0 %v7403_v41  ;;  %4344 = vmatpush1.bf16.msra.mxu1 %v7406_v43  ;;  %v7495_v41 = vld [vmem:[%s10721_s1 + $0xa44] ss:$16 sps:$4 sm:$0xff]   ;;  %v7493_v43 = vld [vmem:[%s10721_s1 + $0xa40] ss:$16 sps:$4 sm:$0xff]  }
 0x11c   : > { %3976 = vmatprep.subr.bf16.mxu0 %v7411_v44  ;;  %4345 = vmatprep.subr.bf16.mxu1 %v7414_v45  ;;  %v7496_v44 = vld [vmem:[%s10721_s1 + $0xa48] ss:$16 sps:$4 sm:$0xff]   ;;  %v7501_v45 = vld [vmem:[%s10721_s1 + $0xa64] ss:$16 sps:$4 sm:$0xff]  }
 0x11f   : > { %3977 = vmatpush1.bf16.msra.mxu0 %v7409_v46  ;;  %4346 = vmatpush1.bf16.msra.mxu1 %v7412_v47  ;;  %v7504_v46 = vld [vmem:[%s10721_s1 + $0xa6c] ss:$16 sps:$4 sm:$0xff]   ;;  %v7499_v47 = vld [vmem:[%s10721_s1 + $0xa60] ss:$16 sps:$4 sm:$0xff]  }
 0x120   : > { %3978 = vmatprep.subr.bf16.mxu0 %v7417_v48  ;;  %4347 = vmatprep.subr.bf16.mxu1 %v7420_v50  ;;  %v7502_v48 = vld [vmem:[%s10721_s1 + $0xa68] ss:$16 sps:$4 sm:$0xff]   ;;  %v7507_v50 = vld [vmem:[%s10721_s1 + $0xa84] ss:$16 sps:$4 sm:$0xff]  }
 0x123   : > { %3979 = vmatpush1.bf16.msra.mxu0 %v7415_v51  ;;  %4348 = vmatpush1.bf16.msra.mxu1 %v7418_v52  ;;  %v7510_v51 = vld [vmem:[%s10721_s1 + $0xa8c] ss:$16 sps:$4 sm:$0xff]   ;;  %v7505_v52 = vld [vmem:[%s10721_s1 + $0xa80] ss:$16 sps:$4 sm:$0xff]  }
 0x124   : > { %3980 = vmatprep.subr.bf16.mxu0 %v7423_v53  ;;  %4349 = vmatprep.subr.bf16.mxu1 %v7426_v54  ;;  %v7508_v53 = vld [vmem:[%s10721_s1 + $0xa88] ss:$16 sps:$4 sm:$0xff]   ;;  %v7513_v54 = vld [vmem:[%s10721_s1 + $0xaa4] ss:$16 sps:$4 sm:$0xff]  }
 0x127   : > { %3981 = vmatpush1.bf16.msra.mxu0 %v7421_v55  ;;  %4350 = vmatpush1.bf16.msra.mxu1 %v7424_v56  ;;  %v7516_v55 = vld [vmem:[%s10721_s1 + $0xaac] ss:$16 sps:$4 sm:$0xff]   ;;  %v7511_v56 = vld [vmem:[%s10721_s1 + $0xaa0] ss:$16 sps:$4 sm:$0xff]  }
 0x128   : > { %3982 = vmatprep.subr.bf16.mxu0 %v7429_v57  ;;  %4351 = vmatprep.subr.bf16.mxu1 %v7432_v58  ;;  %v7514_v57 = vld [vmem:[%s10721_s1 + $0xaa8] ss:$16 sps:$4 sm:$0xff]   ;;  %v7519_v58 = vld [vmem:[%s10721_s1 + $0xac4] ss:$16 sps:$4 sm:$0xff]  }
 0x12b   : > { %3983 = vmatpush1.bf16.msra.mxu0 %v7427_v59  ;;  %4352 = vmatpush1.bf16.msra.mxu1 %v7430_v60  ;;  %v7522_v59 = vld [vmem:[%s10721_s1 + $0xacc] ss:$16 sps:$4 sm:$0xff]   ;;  %v7517_v60 = vld [vmem:[%s10721_s1 + $0xac0] ss:$16 sps:$4 sm:$0xff]  }
 0x12c   : > { %3984 = vmatprep.subr.bf16.mxu0 %v7435_v61  ;;  %4353 = vmatprep.subr.bf16.mxu1 %v7438_v62  ;;  %v7520_v61 = vld [vmem:[%s10721_s1 + $0xac8] ss:$16 sps:$4 sm:$0xff]   ;;  %v7525_v62 = vld [vmem:[%s10721_s1 + $0xae4] ss:$16 sps:$4 sm:$0xff]  }
 0x12f   : > { %3985 = vmatpush1.bf16.msra.mxu0 %v7433_v63  ;;  %4354 = vmatpush1.bf16.msra.mxu1 %v7436_v0  ;;  %v7528_v63 = vld [vmem:[%s10721_s1 + $0xaec] ss:$16 sps:$4 sm:$0xff]   ;;  %v7523_v0 = vld [vmem:[%s10721_s1 + $0xae0] ss:$16 sps:$4 sm:$0xff]  }
 0x130   : > { %3986 = vmatprep.subr.bf16.mxu0 %v7441_v1  ;;  %4355 = vmatprep.subr.bf16.mxu1 %v7444_v2  ;;  %v7526_v1 = vld [vmem:[%s10721_s1 + $0xae8] ss:$16 sps:$4 sm:$0xff]   ;;  %v7531_v2 = vld [vmem:[%s10721_s1 + $0xb04] ss:$16 sps:$4 sm:$0xff]  }
 0x133   : > { %3987 = vmatpush1.bf16.msra.mxu0 %v7439_v3  ;;  %4356 = vmatpush1.bf16.msra.mxu1 %v7442_v4  ;;  %v7534_v3 = vld [vmem:[%s10721_s1 + $0xb0c] ss:$16 sps:$4 sm:$0xff]   ;;  %v7529_v4 = vld [vmem:[%s10721_s1 + $0xb00] ss:$16 sps:$4 sm:$0xff]  }
 0x134   : > { %3988 = vmatprep.subr.bf16.mxu0 %v7447_v5  ;;  %4357 = vmatprep.subr.bf16.mxu1 %v7450_v6  ;;  %v7532_v5 = vld [vmem:[%s10721_s1 + $0xb08] ss:$16 sps:$4 sm:$0xff]   ;;  %v7537_v6 = vld [vmem:[%s10721_s1 + $0xb24] ss:$16 sps:$4 sm:$0xff]  }
 0x137   : > { %3989 = vmatpush1.bf16.msra.mxu0 %v7445_v7  ;;  %4358 = vmatpush1.bf16.msra.mxu1 %v7448_v8  ;;  %v7540_v7 = vld [vmem:[%s10721_s1 + $0xb2c] ss:$16 sps:$4 sm:$0xff]   ;;  %v7535_v8 = vld [vmem:[%s10721_s1 + $0xb20] ss:$16 sps:$4 sm:$0xff]  }
 0x138   : > { %3990 = vmatprep.subr.bf16.mxu0 %v7453_v9  ;;  %4359 = vmatprep.subr.bf16.mxu1 %v7456_v10  ;;  %v7538_v9 = vld [vmem:[%s10721_s1 + $0xb28] ss:$16 sps:$4 sm:$0xff]   ;;  %v7543_v10 = vld [vmem:[%s10721_s1 + $0xb44] ss:$16 sps:$4 sm:$0xff]  }
 0x13b   : > { %3991 = vmatpush1.bf16.msra.mxu0 %v7451_v11  ;;  %4360 = vmatpush1.bf16.msra.mxu1 %v7454_v13  ;;  %v7546_v11 = vld [vmem:[%s10721_s1 + $0xb4c] ss:$16 sps:$4 sm:$0xff]   ;;  %v7541_v13 = vld [vmem:[%s10721_s1 + $0xb40] ss:$16 sps:$4 sm:$0xff]  }
 0x13c   : > { %3992 = vmatprep.subr.bf16.mxu0 %v7459_v14  ;;  %4361 = vmatprep.subr.bf16.mxu1 %v7462_v15  ;;  %v7544_v14 = vld [vmem:[%s10721_s1 + $0xb48] ss:$16 sps:$4 sm:$0xff]   ;;  %v7549_v15 = vld [vmem:[%s10721_s1 + $0xb64] ss:$16 sps:$4 sm:$0xff]  }
 0x13f   : > { %3993 = vmatpush1.bf16.msra.mxu0 %v7457_v16  ;;  %4362 = vmatpush1.bf16.msra.mxu1 %v7460_v17  ;;  %v7552_v16 = vld [vmem:[%s10721_s1 + $0xb6c] ss:$16 sps:$4 sm:$0xff]   ;;  %v7547_v17 = vld [vmem:[%s10721_s1 + $0xb60] ss:$16 sps:$4 sm:$0xff]  }
 0x140   : > { %3994 = vmatprep.subr.bf16.mxu0 %v7465_v18  ;;  %4363 = vmatprep.subr.bf16.mxu1 %v7468_v20  ;;  %v7550_v18 = vld [vmem:[%s10721_s1 + $0xb68] ss:$16 sps:$4 sm:$0xff]   ;;  %v7555_v20 = vld [vmem:[%s10721_s1 + $0xb84] ss:$16 sps:$4 sm:$0xff]  }
 0x143   : > { %3995 = vmatpush1.bf16.msra.mxu0 %v7463_v21  ;;  %4364 = vmatpush1.bf16.msra.mxu1 %v7466_v23  ;;  %v7558_v21 = vld [vmem:[%s10721_s1 + $0xb8c] ss:$16 sps:$4 sm:$0xff]   ;;  %v7553_v23 = vld [vmem:[%s10721_s1 + $0xb80] ss:$16 sps:$4 sm:$0xff]  }
 0x144   : > { %3996 = vmatprep.subr.bf16.mxu0 %v7471_v19  ;;  %4365 = vmatprep.subr.bf16.mxu1 %v7474_v25  ;;  %v7556_v19 = vld [vmem:[%s10721_s1 + $0xb88] ss:$16 sps:$4 sm:$0xff]   ;;  %v7561_v25 = vld [vmem:[%s10721_s1 + $0xba4] ss:$16 sps:$4 sm:$0xff]  }
 0x147   : > { %3997 = vmatpush1.bf16.msra.mxu0 %v7469_v12  ;;  %4366 = vmatpush1.bf16.msra.mxu1 %v7472_v27  ;;  %v7564_v12 = vld [vmem:[%s10721_s1 + $0xbac] ss:$16 sps:$4 sm:$0xff]   ;;  %v7559_v27 = vld [vmem:[%s10721_s1 + $0xba0] ss:$16 sps:$4 sm:$0xff]  }
 0x148   : > { %3998 = vmatprep.subr.bf16.mxu0 %v7477_v28  ;;  %4367 = vmatprep.subr.bf16.mxu1 %v7480_v30  ;;  %v7562_v28 = vld [vmem:[%s10721_s1 + $0xba8] ss:$16 sps:$4 sm:$0xff]   ;;  %v7567_v30 = vld [vmem:[%s10721_s1 + $0xbc4] ss:$16 sps:$4 sm:$0xff]  }
 0x14b   : > { %3999 = vmatpush1.bf16.msra.mxu0 %v7475_v22  ;;  %4368 = vmatpush1.bf16.msra.mxu1 %v7478_v32  ;;  %v7565_v22 = vld [vmem:[%s10721_s1 + $0xbc0] ss:$16 sps:$4 sm:$0xff]   ;;  %v7568_v32 = vld [vmem:[%s10721_s1 + $0xbc8] ss:$16 sps:$4 sm:$0xff]  }
 0x14c   : > { %4009 = vmatprep.subr.bf16.mxu0 %v7483_v33  ;;  %4378 = vmatprep.subr.bf16.mxu1 %v7486_v26  ;;  %v7573_v33 = vld [vmem:[%s10721_s1 + $0xbe4] ss:$16 sps:$4 sm:$0xff]   ;;  %v7576_v26 = vld [vmem:[%s10721_s1 + $0xbec] ss:$16 sps:$4 sm:$0xff]  }
 0x14e   : > { %4001 = vmatmul.mubr.bf16.vlgmr.msra.gmra.mrb[0].mxu0 %v8841_v29  ;;  %4370 = vmatmul.mubr.bf16.vlgmr.msra.gmra.mrb[0].mxu1 %v8841_v29  ;;  %v7498_v29 = vld [vmem:[%s10721_s1 + $0xa4c] ss:$16 sps:$4 sm:$0xff]  }
 0x14f   : > { %4010 = vmatpush1.bf16.msra.mxu0 %v7481_v35  ;;  %4379 = vmatpush1.bf16.msra.mxu1 %v7484_v36  ;;  %v9229_v35 = vld [vmem:[%s8162_s17 + $0x18] sm:$0xff]  ;;  %v7571_v36 = vld [vmem:[%s10721_s1 + $0xbe0] ss:$16 sps:$4 sm:$0xff]  }
 0x150   : > { %4011 = vmatprep.subr.bf16.mxu0 %v7489_v24  ;;  %4380 = vmatprep.subr.bf16.mxu1 %v7492_v37  ;;  %v7574_v24 = vld [vmem:[%s10721_s1 + $0xbe8] ss:$16 sps:$4 sm:$0xff]   ;;  %v7580_v37 = vld [vmem:[%s10721_s1 + $0xc04] ss:$16 sps:$4 sm:$0xff]  }
 0x151   : > { %4041 = vmatprep.mubr.bf16.mxu0 %v880_v38  ;;  %4410 = vmatprep.mubr.bf16.mxu1 %v880_v38  ;;  %v7583_v38 = vld [vmem:[%s10721_s1 + $0xc0c] ss:$16 sps:$4 sm:$0xff]  }
 0x153   : > { %4012 = vmatpush1.bf16.msra.mxu0 %v7487_v39  ;;  %4381 = vmatpush1.bf16.msra.mxu1 %v7490_v40  ;;  %v9245_v39 = vrot.slane %v9229_v35, %v8165_v49  ;;  %v7578_v40 = vld [vmem:[%s10721_s1 + $0xc00] ss:$16 sps:$4 sm:$0xff]  }
 0x154   : > { %4013 = vmatprep.subr.bf16.mxu0 %v7495_v41  ;;  %4382 = vmatprep.subr.bf16.mxu1 %v7498_v29  ;;  %v7581_v41 = vld [vmem:[%s10721_s1 + $0xc08] ss:$16 sps:$4 sm:$0xff]   ;;  %v7586_v29 = vld [vmem:[%s10721_s1 + $0xc24] ss:$16 sps:$4 sm:$0xff]  }
 0x157   : > { %4014 = vmatpush1.bf16.msra.mxu0 %v7493_v43  ;;  %4383 = vmatpush1.bf16.msra.mxu1 %v7496_v44  ;;  %v7589_v43 = vld [vmem:[%s10721_s1 + $0xc2c] ss:$16 sps:$4 sm:$0xff]   ;;  %v896_v44 = vcombine.high %v9245_v39, %v9245_v39 }
 0x158   : > { %4015 = vmatprep.subr.bf16.mxu0 %v7501_v45  ;;  %4384 = vmatprep.subr.bf16.mxu1 %v7504_v46  ;;  %v7584_v45 = vld [vmem:[%s10721_s1 + $0xc20] ss:$16 sps:$4 sm:$0xff]   ;;  %v7587_v46 = vld [vmem:[%s10721_s1 + $0xc28] ss:$16 sps:$4 sm:$0xff]  }
 0x15b   : > { %4016 = vmatpush1.bf16.msra.mxu0 %v7499_v47  ;;  %4385 = vmatpush1.bf16.msra.mxu1 %v7502_v48  ;;  %v7592_v47 = vld [vmem:[%s10721_s1 + $0xc44] ss:$16 sps:$4 sm:$0xff]   ;;  %v7590_v48 = vld [vmem:[%s10721_s1 + $0xc40] ss:$16 sps:$4 sm:$0xff]  }
 0x15c   : > { %4017 = vmatprep.subr.bf16.mxu0 %v7507_v50  ;;  %4386 = vmatprep.subr.bf16.mxu1 %v7510_v51  ;;  %v7593_v50 = vld [vmem:[%s10721_s1 + $0xc48] ss:$16 sps:$4 sm:$0xff]   ;;  %v7598_v51 = vld [vmem:[%s10721_s1 + $0xc64] ss:$16 sps:$4 sm:$0xff]  }
 0x15f   : > { %4018 = vmatpush1.bf16.msra.mxu0 %v7505_v52  ;;  %4387 = vmatpush1.bf16.msra.mxu1 %v7508_v53  ;;  %v7601_v52 = vld [vmem:[%s10721_s1 + $0xc6c] ss:$16 sps:$4 sm:$0xff]   ;;  %v7596_v53 = vld [vmem:[%s10721_s1 + $0xc60] ss:$16 sps:$4 sm:$0xff]  }
 0x160   : > { %4019 = vmatprep.subr.bf16.mxu0 %v7513_v54  ;;  %4388 = vmatprep.subr.bf16.mxu1 %v7516_v55  ;;  %v7599_v54 = vld [vmem:[%s10721_s1 + $0xc68] ss:$16 sps:$4 sm:$0xff]   ;;  %v7604_v55 = vld [vmem:[%s10721_s1 + $0xc84] ss:$16 sps:$4 sm:$0xff]  }
 0x163   : > { %4020 = vmatpush1.bf16.msra.mxu0 %v7511_v56  ;;  %4389 = vmatpush1.bf16.msra.mxu1 %v7514_v57  ;;  %v7607_v56 = vld [vmem:[%s10721_s1 + $0xc8c] ss:$16 sps:$4 sm:$0xff]   ;;  %v7602_v57 = vld [vmem:[%s10721_s1 + $0xc80] ss:$16 sps:$4 sm:$0xff]  }
 0x164   : > { %4021 = vmatprep.subr.bf16.mxu0 %v7519_v58  ;;  %4390 = vmatprep.subr.bf16.mxu1 %v7522_v59  ;;  %v7605_v58 = vld [vmem:[%s10721_s1 + $0xc88] ss:$16 sps:$4 sm:$0xff]   ;;  %v7610_v59 = vld [vmem:[%s10721_s1 + $0xca4] ss:$16 sps:$4 sm:$0xff]  }
 0x167   : > { %4022 = vmatpush1.bf16.msra.mxu0 %v7517_v60  ;;  %4391 = vmatpush1.bf16.msra.mxu1 %v7520_v61  ;;  %v7613_v60 = vld [vmem:[%s10721_s1 + $0xcac] ss:$16 sps:$4 sm:$0xff]   ;;  %v7608_v61 = vld [vmem:[%s10721_s1 + $0xca0] ss:$16 sps:$4 sm:$0xff]  }
 0x168   : > { %4023 = vmatprep.subr.bf16.mxu0 %v7525_v62  ;;  %4392 = vmatprep.subr.bf16.mxu1 %v7528_v63  ;;  %v7611_v62 = vld [vmem:[%s10721_s1 + $0xca8] ss:$16 sps:$4 sm:$0xff]   ;;  %v7616_v63 = vld [vmem:[%s10721_s1 + $0xcc4] ss:$16 sps:$4 sm:$0xff]  }
 0x16b   : > { %4024 = vmatpush1.bf16.msra.mxu0 %v7523_v0  ;;  %4393 = vmatpush1.bf16.msra.mxu1 %v7526_v1  ;;  %v7619_v0 = vld [vmem:[%s10721_s1 + $0xccc] ss:$16 sps:$4 sm:$0xff]   ;;  %v7614_v1 = vld [vmem:[%s10721_s1 + $0xcc0] ss:$16 sps:$4 sm:$0xff]  }
 0x16c   : > { %4025 = vmatprep.subr.bf16.mxu0 %v7531_v2  ;;  %4394 = vmatprep.subr.bf16.mxu1 %v7534_v3  ;;  %v7617_v2 = vld [vmem:[%s10721_s1 + $0xcc8] ss:$16 sps:$4 sm:$0xff]   ;;  %v7622_v3 = vld [vmem:[%s10721_s1 + $0xce4] ss:$16 sps:$4 sm:$0xff]  }
 0x16f   : > { %4026 = vmatpush1.bf16.msra.mxu0 %v7529_v4  ;;  %4395 = vmatpush1.bf16.msra.mxu1 %v7532_v5  ;;  %v7625_v4 = vld [vmem:[%s10721_s1 + $0xcec] ss:$16 sps:$4 sm:$0xff]   ;;  %v7620_v5 = vld [vmem:[%s10721_s1 + $0xce0] ss:$16 sps:$4 sm:$0xff]  }
 0x170   : > { %4027 = vmatprep.subr.bf16.mxu0 %v7537_v6  ;;  %4396 = vmatprep.subr.bf16.mxu1 %v7540_v7  ;;  %v7623_v6 = vld [vmem:[%s10721_s1 + $0xce8] ss:$16 sps:$4 sm:$0xff]   ;;  %v7628_v7 = vld [vmem:[%s10721_s1 + $0xd04] ss:$16 sps:$4 sm:$0xff]  }
 0x173   : > { %4028 = vmatpush1.bf16.msra.mxu0 %v7535_v8  ;;  %4397 = vmatpush1.bf16.msra.mxu1 %v7538_v9  ;;  %v7631_v8 = vld [vmem:[%s10721_s1 + $0xd0c] ss:$16 sps:$4 sm:$0xff]   ;;  %v7626_v9 = vld [vmem:[%s10721_s1 + $0xd00] ss:$16 sps:$4 sm:$0xff]  }
 0x174   : > { %4029 = vmatprep.subr.bf16.mxu0 %v7543_v10  ;;  %4398 = vmatprep.subr.bf16.mxu1 %v7546_v11  ;;  %v7629_v10 = vld [vmem:[%s10721_s1 + $0xd08] ss:$16 sps:$4 sm:$0xff]   ;;  %v7634_v11 = vld [vmem:[%s10721_s1 + $0xd24] ss:$16 sps:$4 sm:$0xff]  }
 0x177   : > { %4030 = vmatpush1.bf16.msra.mxu0 %v7541_v13  ;;  %4399 = vmatpush1.bf16.msra.mxu1 %v7544_v14  ;;  %v7637_v13 = vld [vmem:[%s10721_s1 + $0xd2c] ss:$16 sps:$4 sm:$0xff]   ;;  %v7632_v14 = vld [vmem:[%s10721_s1 + $0xd20] ss:$16 sps:$4 sm:$0xff]  }
 0x178   : > { %4031 = vmatprep.subr.bf16.mxu0 %v7549_v15  ;;  %4400 = vmatprep.subr.bf16.mxu1 %v7552_v16  ;;  %v7635_v15 = vld [vmem:[%s10721_s1 + $0xd28] ss:$16 sps:$4 sm:$0xff]   ;;  %v7640_v16 = vld [vmem:[%s10721_s1 + $0xd44] ss:$16 sps:$4 sm:$0xff]  }
 0x17b   : > { %4032 = vmatpush1.bf16.msra.mxu0 %v7547_v17  ;;  %4401 = vmatpush1.bf16.msra.mxu1 %v7550_v18  ;;  %v7643_v17 = vld [vmem:[%s10721_s1 + $0xd4c] ss:$16 sps:$4 sm:$0xff]   ;;  %v7638_v18 = vld [vmem:[%s10721_s1 + $0xd40] ss:$16 sps:$4 sm:$0xff]  }
 0x17c   : > { %4033 = vmatprep.subr.bf16.mxu0 %v7555_v20  ;;  %4402 = vmatprep.subr.bf16.mxu1 %v7558_v21  ;;  %v7641_v20 = vld [vmem:[%s10721_s1 + $0xd48] ss:$16 sps:$4 sm:$0xff]   ;;  %v7646_v21 = vld [vmem:[%s10721_s1 + $0xd64] ss:$16 sps:$4 sm:$0xff]  }
 0x17f   : > { %4034 = vmatpush1.bf16.msra.mxu0 %v7553_v23  ;;  %4403 = vmatpush1.bf16.msra.mxu1 %v7556_v19  ;;  %v7649_v23 = vld [vmem:[%s10721_s1 + $0xd6c] ss:$16 sps:$4 sm:$0xff]   ;;  %v7644_v19 = vld [vmem:[%s10721_s1 + $0xd60] ss:$16 sps:$4 sm:$0xff]  }
 0x180   : > { %4035 = vmatprep.subr.bf16.mxu0 %v7561_v25  ;;  %4404 = vmatprep.subr.bf16.mxu1 %v7564_v12  ;;  %v7647_v25 = vld [vmem:[%s10721_s1 + $0xd68] ss:$16 sps:$4 sm:$0xff]   ;;  %v7652_v12 = vld [vmem:[%s10721_s1 + $0xd84] ss:$16 sps:$4 sm:$0xff]  }
 0x183   : > { %4036 = vmatpush1.bf16.msra.mxu0 %v7559_v27  ;;  %4405 = vmatpush1.bf16.msra.mxu1 %v7562_v28  ;;  %v7655_v27 = vld [vmem:[%s10721_s1 + $0xd8c] ss:$16 sps:$4 sm:$0xff]   ;;  %v7650_v28 = vld [vmem:[%s10721_s1 + $0xd80] ss:$16 sps:$4 sm:$0xff]  }
 0x184   : > { %4037 = vmatprep.subr.bf16.mxu0 %v7567_v30  ;;  %4406 = vmatprep.subr.bf16.mxu1 %v7570_v31  ;;  %v7653_v30 = vld [vmem:[%s10721_s1 + $0xd88] ss:$16 sps:$4 sm:$0xff]   ;;  %v7658_v31 = vld [vmem:[%s10721_s1 + $0xda4] ss:$16 sps:$4 sm:$0xff]  }
 0x187   : > { %4038 = vmatpush1.bf16.msra.mxu0 %v7565_v22  ;;  %4407 = vmatpush1.bf16.msra.mxu1 %v7568_v32  ;;  %v7661_v22 = vld [vmem:[%s10721_s1 + $0xdac] ss:$16 sps:$4 sm:$0xff]   ;;  %v7656_v32 = vld [vmem:[%s10721_s1 + $0xda0] ss:$16 sps:$4 sm:$0xff]  }
 0x188   : > { %4039 = vmatprep.subr.bf16.mxu0 %v7573_v33  ;;  %4408 = vmatprep.subr.bf16.mxu1 %v7576_v26  ;;  %v7659_v33 = vld [vmem:[%s10721_s1 + $0xda8] ss:$16 sps:$4 sm:$0xff]   ;;  %v7664_v26 = vld [vmem:[%s10721_s1 + $0xdc4] ss:$16 sps:$4 sm:$0xff]  }
 0x18b   : > { %4040 = vmatpush1.bf16.msra.mxu0 %v7571_v36  ;;  %4409 = vmatpush1.bf16.msra.mxu1 %v7574_v24  ;;  %v7667_v36 = vld [vmem:[%s10721_s1 + $0xdcc] ss:$16 sps:$4 sm:$0xff]   ;;  %v7662_v24 = vld [vmem:[%s10721_s1 + $0xdc0] ss:$16 sps:$4 sm:$0xff]  }
 0x18c   : > { %4050 = vmatprep.subr.bf16.mxu0 %v7580_v37  ;;  %4419 = vmatprep.subr.bf16.mxu1 %v7583_v38  ;;  %v7665_v37 = vld [vmem:[%s10721_s1 + $0xdc8] ss:$16 sps:$4 sm:$0xff]   ;;  %v7670_v38 = vld [vmem:[%s10721_s1 + $0xde4] ss:$16 sps:$4 sm:$0xff]  }
 0x18e   : > { %4042 = vmatmul.mubr.bf16.vlgmr.msra.gmra.mrb[0].mxu0 %v9042_v34  ;;  %4411 = vmatmul.mubr.bf16.vlgmr.msra.gmra.mrb[0].mxu1 %v9042_v34  ;;  %v7595_v34 = vld [vmem:[%s10721_s1 + $0xc4c] ss:$16 sps:$4 sm:$0xff]  }
 0x18f   : > { %4051 = vmatpush1.bf16.msra.mxu0 %v7578_v40  ;;  %4420 = vmatpush1.bf16.msra.mxu1 %v7581_v41  ;;  %v7673_v40 = vld [vmem:[%s10721_s1 + $0xdec] ss:$16 sps:$4 sm:$0xff]   ;;  %v881_v41 = vcombine.high %v9229_v35, %v9229_v35 }
 0x190   : > { %4052 = vmatprep.subr.bf16.mxu0 %v7586_v29  ;;  %4421 = vmatprep.subr.bf16.mxu1 %v7589_v43  ;;  %v7668_v29 = vld [vmem:[%s10721_s1 + $0xde0] ss:$16 sps:$4 sm:$0xff]   ;;  %v7671_v43 = vld [vmem:[%s10721_s1 + $0xde8] ss:$16 sps:$4 sm:$0xff]   ;;  %v7679_v35 = vld [vmem:[%s10721_s1 + $0xe0c] ss:$16 sps:$4 sm:$0xff]  }
 0x191   : > { %4082 = vmatprep.mubr.bf16.mxu0 %v896_v44  ;;  %4451 = vmatprep.mubr.bf16.mxu1 %v896_v44  ;;  %v7676_v44 = vld [vmem:[%s10721_s1 + $0xe04] ss:$16 sps:$4 sm:$0xff]  }
 0x193   : > { %4053 = vmatpush1.bf16.msra.mxu0 %v7584_v45  ;;  %4422 = vmatpush1.bf16.msra.mxu1 %v7587_v46  ;;  %v9446_v45 = vrot.slane %v881_v41, %v8165_v49  ;;  %v7674_v46 = vld [vmem:[%s10721_s1 + $0xe00] ss:$16 sps:$4 sm:$0xff]   ;;  %v7685_v49 = vld [vmem:[%s10721_s1 + $0xe2c] ss:$16 sps:$4 sm:$0xff]  }
 0x194   : > { %4054 = vmatprep.subr.bf16.mxu0 %v7592_v47  ;;  %4423 = vmatprep.subr.bf16.mxu1 %v7595_v34  ;;  %v7677_v47 = vld [vmem:[%s10721_s1 + $0xe08] ss:$16 sps:$4 sm:$0xff]   ;;  %v7682_v34 = vld [vmem:[%s10721_s1 + $0xe24] ss:$16 sps:$4 sm:$0xff]   ;;  %v7758_v41 = vld [vmem:[%s10721_s1 + $0xfc0] ss:$16 sps:$4 sm:$0xff]  }
 0x197   : > { %4055 = vmatpush1.bf16.msra.mxu0 %v7590_v48  ;;  %4424 = vmatpush1.bf16.msra.mxu1 %v7593_v50  ;;  %v897_v48 = vcombine.high %v9446_v45, %v9446_v45  ;;  %v7680_v50 = vld [vmem:[%s10721_s1 + $0xe20] ss:$16 sps:$4 sm:$0xff]  }
 0x198   : > { %4056 = vmatprep.subr.bf16.mxu0 %v7598_v51  ;;  %4425 = vmatprep.subr.bf16.mxu1 %v7601_v52  ;;  %v7683_v51 = vld [vmem:[%s10721_s1 + $0xe28] ss:$16 sps:$4 sm:$0xff]   ;;  %v7688_v52 = vld [vmem:[%s10721_s1 + $0xe44] ss:$16 sps:$4 sm:$0xff]  }
 0x19b   : > { %4057 = vmatpush1.bf16.msra.mxu0 %v7596_v53  ;;  %4426 = vmatpush1.bf16.msra.mxu1 %v7599_v54  ;;  %v7686_v53 = vld [vmem:[%s10721_s1 + $0xe40] ss:$16 sps:$4 sm:$0xff]   ;;  %v7689_v54 = vld [vmem:[%s10721_s1 + $0xe48] ss:$16 sps:$4 sm:$0xff]  }
 0x19c   : > { %4058 = vmatprep.subr.bf16.mxu0 %v7604_v55  ;;  %4427 = vmatprep.subr.bf16.mxu1 %v7607_v56  ;;  %v7694_v55 = vld [vmem:[%s10721_s1 + $0xe64] ss:$16 sps:$4 sm:$0xff]   ;;  %v7697_v56 = vld [vmem:[%s10721_s1 + $0xe6c] ss:$16 sps:$4 sm:$0xff]  }
 0x19f   : > { %4059 = vmatpush1.bf16.msra.mxu0 %v7602_v57  ;;  %4428 = vmatpush1.bf16.msra.mxu1 %v7605_v58  ;;  %v7692_v57 = vld [vmem:[%s10721_s1 + $0xe60] ss:$16 sps:$4 sm:$0xff]   ;;  %v7695_v58 = vld [vmem:[%s10721_s1 + $0xe68] ss:$16 sps:$4 sm:$0xff]  }
 0x1a0   : > { %4060 = vmatprep.subr.bf16.mxu0 %v7610_v59  ;;  %4429 = vmatprep.subr.bf16.mxu1 %v7613_v60  ;;  %v7700_v59 = vld [vmem:[%s10721_s1 + $0xe84] ss:$16 sps:$4 sm:$0xff]   ;;  %v7703_v60 = vld [vmem:[%s10721_s1 + $0xe8c] ss:$16 sps:$4 sm:$0xff]  }
 0x1a3   : > { %4061 = vmatpush1.bf16.msra.mxu0 %v7608_v61  ;;  %4430 = vmatpush1.bf16.msra.mxu1 %v7611_v62  ;;  %v7698_v61 = vld [vmem:[%s10721_s1 + $0xe80] ss:$16 sps:$4 sm:$0xff]   ;;  %v7701_v62 = vld [vmem:[%s10721_s1 + $0xe88] ss:$16 sps:$4 sm:$0xff]  }
 0x1a4   : > { %4062 = vmatprep.subr.bf16.mxu0 %v7616_v63  ;;  %4431 = vmatprep.subr.bf16.mxu1 %v7619_v0  ;;  %v7706_v63 = vld [vmem:[%s10721_s1 + $0xea4] ss:$16 sps:$4 sm:$0xff]   ;;  %v7709_v0 = vld [vmem:[%s10721_s1 + $0xeac] ss:$16 sps:$4 sm:$0xff]  }
 0x1a7   : > { %4063 = vmatpush1.bf16.msra.mxu0 %v7614_v1  ;;  %4432 = vmatpush1.bf16.msra.mxu1 %v7617_v2  ;;  %v7704_v1 = vld [vmem:[%s10721_s1 + $0xea0] ss:$16 sps:$4 sm:$0xff]   ;;  %v7707_v2 = vld [vmem:[%s10721_s1 + $0xea8] ss:$16 sps:$4 sm:$0xff]  }
 0x1a8   : > { %4064 = vmatprep.subr.bf16.mxu0 %v7622_v3  ;;  %4433 = vmatprep.subr.bf16.mxu1 %v7625_v4  ;;  %v7712_v3 = vld [vmem:[%s10721_s1 + $0xec4] ss:$16 sps:$4 sm:$0xff]   ;;  %v7715_v4 = vld [vmem:[%s10721_s1 + $0xecc] ss:$16 sps:$4 sm:$0xff]  }
 0x1ab   : > { %4065 = vmatpush1.bf16.msra.mxu0 %v7620_v5  ;;  %4434 = vmatpush1.bf16.msra.mxu1 %v7623_v6  ;;  %v7710_v5 = vld [vmem:[%s10721_s1 + $0xec0] ss:$16 sps:$4 sm:$0xff]   ;;  %v7713_v6 = vld [vmem:[%s10721_s1 + $0xec8] ss:$16 sps:$4 sm:$0xff]  }
 0x1ac   : > { %4066 = vmatprep.subr.bf16.mxu0 %v7628_v7  ;;  %4435 = vmatprep.subr.bf16.mxu1 %v7631_v8  ;;  %v7718_v7 = vld [vmem:[%s10721_s1 + $0xee4] ss:$16 sps:$4 sm:$0xff]   ;;  %v7721_v8 = vld [vmem:[%s10721_s1 + $0xeec] ss:$16 sps:$4 sm:$0xff]  }
 0x1af   : > { %4067 = vmatpush1.bf16.msra.mxu0 %v7626_v9  ;;  %4436 = vmatpush1.bf16.msra.mxu1 %v7629_v10  ;;  %v7716_v9 = vld [vmem:[%s10721_s1 + $0xee0] ss:$16 sps:$4 sm:$0xff]   ;;  %v7719_v10 = vld [vmem:[%s10721_s1 + $0xee8] ss:$16 sps:$4 sm:$0xff]  }
 0x1b0   : > { %4068 = vmatprep.subr.bf16.mxu0 %v7634_v11  ;;  %4437 = vmatprep.subr.bf16.mxu1 %v7637_v13  ;;  %v7724_v11 = vld [vmem:[%s10721_s1 + $0xf04] ss:$16 sps:$4 sm:$0xff]   ;;  %v7727_v13 = vld [vmem:[%s10721_s1 + $0xf0c] ss:$16 sps:$4 sm:$0xff]  }
 0x1b3   : > { %4069 = vmatpush1.bf16.msra.mxu0 %v7632_v14  ;;  %4438 = vmatpush1.bf16.msra.mxu1 %v7635_v15  ;;  %v7722_v14 = vld [vmem:[%s10721_s1 + $0xf00] ss:$16 sps:$4 sm:$0xff]   ;;  %v7725_v15 = vld [vmem:[%s10721_s1 + $0xf08] ss:$16 sps:$4 sm:$0xff]  }
 0x1b4   : > { %4070 = vmatprep.subr.bf16.mxu0 %v7640_v16  ;;  %4439 = vmatprep.subr.bf16.mxu1 %v7643_v17  ;;  %v7730_v16 = vld [vmem:[%s10721_s1 + $0xf24] ss:$16 sps:$4 sm:$0xff]   ;;  %v7733_v17 = vld [vmem:[%s10721_s1 + $0xf2c] ss:$16 sps:$4 sm:$0xff]  }
 0x1b7   : > { %4071 = vmatpush1.bf16.msra.mxu0 %v7638_v18  ;;  %4440 = vmatpush1.bf16.msra.mxu1 %v7641_v20  ;;  %v7728_v18 = vld [vmem:[%s10721_s1 + $0xf20] ss:$16 sps:$4 sm:$0xff]   ;;  %v7731_v20 = vld [vmem:[%s10721_s1 + $0xf28] ss:$16 sps:$4 sm:$0xff]  }
 0x1b8   : > { %4072 = vmatprep.subr.bf16.mxu0 %v7646_v21  ;;  %4441 = vmatprep.subr.bf16.mxu1 %v7649_v23  ;;  %v7736_v21 = vld [vmem:[%s10721_s1 + $0xf44] ss:$16 sps:$4 sm:$0xff]   ;;  %v7739_v23 = vld [vmem:[%s10721_s1 + $0xf4c] ss:$16 sps:$4 sm:$0xff]  }
 0x1bb   : > { %4073 = vmatpush1.bf16.msra.mxu0 %v7644_v19  ;;  %4442 = vmatpush1.bf16.msra.mxu1 %v7647_v25  ;;  %v7734_v19 = vld [vmem:[%s10721_s1 + $0xf40] ss:$16 sps:$4 sm:$0xff]   ;;  %v7737_v25 = vld [vmem:[%s10721_s1 + $0xf48] ss:$16 sps:$4 sm:$0xff]  }
 0x1bc   : > { %4074 = vmatprep.subr.bf16.mxu0 %v7652_v12  ;;  %4443 = vmatprep.subr.bf16.mxu1 %v7655_v27  ;;  %v7742_v12 = vld [vmem:[%s10721_s1 + $0xf64] ss:$16 sps:$4 sm:$0xff]   ;;  %v7745_v27 = vld [vmem:[%s10721_s1 + $0xf6c] ss:$16 sps:$4 sm:$0xff]  }
 0x1bf   : > { %4075 = vmatpush1.bf16.msra.mxu0 %v7650_v28  ;;  %4444 = vmatpush1.bf16.msra.mxu1 %v7653_v30  ;;  %v7740_v28 = vld [vmem:[%s10721_s1 + $0xf60] ss:$16 sps:$4 sm:$0xff]   ;;  %v7743_v30 = vld [vmem:[%s10721_s1 + $0xf68] ss:$16 sps:$4 sm:$0xff]  }
 0x1c0   : > { %4076 = vmatprep.subr.bf16.mxu0 %v7658_v31  ;;  %4445 = vmatprep.subr.bf16.mxu1 %v7661_v22  ;;  %v7748_v31 = vld [vmem:[%s10721_s1 + $0xf84] ss:$16 sps:$4 sm:$0xff]   ;;  %v7751_v22 = vld [vmem:[%s10721_s1 + $0xf8c] ss:$16 sps:$4 sm:$0xff]  }
 0x1c3   : > { %4077 = vmatpush1.bf16.msra.mxu0 %v7656_v32  ;;  %4446 = vmatpush1.bf16.msra.mxu1 %v7659_v33  ;;  %v7746_v32 = vld [vmem:[%s10721_s1 + $0xf80] ss:$16 sps:$4 sm:$0xff]   ;;  %v7749_v33 = vld [vmem:[%s10721_s1 + $0xf88] ss:$16 sps:$4 sm:$0xff]  }
 0x1c4   : > { %4078 = vmatprep.subr.bf16.mxu0 %v7664_v26  ;;  %4447 = vmatprep.subr.bf16.mxu1 %v7667_v36  ;;  %v7754_v26 = vld [vmem:[%s10721_s1 + $0xfa4] ss:$16 sps:$4 sm:$0xff]   ;;  %v7757_v36 = vld [vmem:[%s10721_s1 + $0xfac] ss:$16 sps:$4 sm:$0xff]  }
 0x1c7   : > { %4079 = vmatpush1.bf16.msra.mxu0 %v7662_v24  ;;  %4448 = vmatpush1.bf16.msra.mxu1 %v7665_v37  ;;  %v7752_v24 = vld [vmem:[%s10721_s1 + $0xfa0] ss:$16 sps:$4 sm:$0xff]   ;;  %v7755_v37 = vld [vmem:[%s10721_s1 + $0xfa8] ss:$16 sps:$4 sm:$0xff]  }
 0x1c8   : > { %4080 = vmatprep.subr.bf16.mxu0 %v7670_v38  ;;  %4449 = vmatprep.subr.bf16.mxu1 %v7673_v40  ;;  %v7760_v38 = vld [vmem:[%s10721_s1 + $0xfc4] ss:$16 sps:$4 sm:$0xff]   ;;  %v7763_v40 = vld [vmem:[%s10721_s1 + $0xfcc] ss:$16 sps:$4 sm:$0xff]  }
 0x1cb   : > { %4081 = vmatpush1.bf16.msra.mxu0 %v7668_v29  ;;  %4450 = vmatpush1.bf16.msra.mxu1 %v7671_v43  ;;  %v7761_v29 = vld [vmem:[%s10721_s1 + $0xfc8] ss:$16 sps:$4 sm:$0xff]   ;;  %v7766_v43 = vld [vmem:[%s10721_s1 + $0xfe4] ss:$16 sps:$4 sm:$0xff]  }
 0x1cc   : > { %4091 = vmatprep.subr.bf16.mxu0 %v7676_v44  ;;  %4460 = vmatprep.subr.bf16.mxu1 %v7679_v35  ;;  %v7769_v44 = vld [vmem:[%s10721_s1 + $0xfec] ss:$16 sps:$4 sm:$0xff]   ;;  %v7764_v35 = vld [vmem:[%s10721_s1 + $0xfe0] ss:$16 sps:$4 sm:$0xff]  }
 0x1ce   : > { %4083 = vmatmul.mubr.bf16.vlgmr.msra.gmra.mrb[0].mxu0 %v9245_v39  ;;  %4452 = vmatmul.mubr.bf16.vlgmr.msra.gmra.mrb[0].mxu1 %v9245_v39  ;;  %v7691_v39 = vld [vmem:[%s10721_s1 + $0xe4c] ss:$16 sps:$4 sm:$0xff]  }
 0x1cf   : > { %4092 = vmatpush1.bf16.msra.mxu0 %v7674_v46  ;;  %4461 = vmatpush1.bf16.msra.mxu1 %v7677_v47  ;;  %v7767_v46 = vld [vmem:[%s10721_s1 + $0xfe8] ss:$16 sps:$4 sm:$0xff]   ;;  %v7773_v47 = vld [vmem:[%s10721_s1 + $0x1004] ss:$16 sps:$4 sm:$0xff]  }
 0x1d0   : > { %4093 = vmatprep.subr.bf16.mxu0 %v7682_v34  ;;  %4462 = vmatprep.subr.bf16.mxu1 %v7685_v49  ;;  %v7776_v34 = vld [vmem:[%s10721_s1 + $0x100c] ss:$16 sps:$4 sm:$0xff]   ;;  %v9645_v49 = vld.sshfl [vmem:[%s8162_s17 + $0x20] sm:$0x33 pattern:$0x76325410] }
 0x1d1   : > { %4123 = vmatprep.mubr.bf16.mxu0 %v897_v48  ;;  %4492 = vmatprep.mubr.bf16.mxu1 %v897_v48  ;;  %v7771_v48 = vld [vmem:[%s10721_s1 + $0x1000] ss:$16 sps:$4 sm:$0xff]   ;;  %s7879_s17 = scalar_lea.vmem %s10680_s15, 16 }
 0x1d2   : > { %p7880_p11 = scmp.ne.s32.totalorder %s10680_s15, %s7879_s17  ;;  %p7887_p1 = scmp.lt.s32.totalorder %s7885_s7, %s7879_s17 }
 0x1d3   : > { %4094 = vmatpush1.bf16.msra.mxu0 %v7680_v50  ;;  %4463 = vmatpush1.bf16.msra.mxu1 %v7683_v51  ;;  %v7774_v50 = vld [vmem:[%s10721_s1 + $0x1008] ss:$16 sps:$4 sm:$0xff]   ;;  %v7779_v51 = vld [vmem:[%s10721_s1 + $0x1024] ss:$16 sps:$4 sm:$0xff]  }
 0x1d4   : > { %4095 = vmatprep.subr.bf16.mxu0 %v7688_v52  ;;  %4464 = vmatprep.subr.bf16.mxu1 %v7691_v39  ;;  %v7782_v52 = vld [vmem:[%s10721_s1 + $0x102c] ss:$16 sps:$4 sm:$0xff]   ;;  %v905_v39 = vcombine.high %v9645_v49, %v9645_v49  ;;  %p7881_p12 = pnand %p7880_p11, %p8013_p5  ;;  %p7888_p2 = por %p7887_p1, %p7886_p0 }
 0x1d6   : > { %p7882_p13 = pneg %p7881_p12 }
 0x1d7   : > { %4096 = vmatpush1.bf16.msra.mxu0 %v7686_v53  ;;  %4465 = vmatpush1.bf16.msra.mxu1 %v7689_v54  ;;  %v7777_v53 = vld [vmem:[%s10721_s1 + $0x1020] ss:$16 sps:$4 sm:$0xff]   ;;  %v7780_v54 = vld [vmem:[%s10721_s1 + $0x1028] ss:$16 sps:$4 sm:$0xff]  }
 0x1d8   : > { %4097 = vmatprep.subr.bf16.mxu0 %v7694_v55  ;;  %4466 = vmatprep.subr.bf16.mxu1 %v7697_v56  ;;  %v7785_v55 = vld [vmem:[%s10721_s1 + $0x1044] ss:$16 sps:$4 sm:$0xff]   ;;  %v7783_v56 = vld [vmem:[%s10721_s1 + $0x1040] ss:$16 sps:$4 sm:$0xff]   ;;  %p7889_p3 = pnand %p7888_p2, %p7882_p13 }
 0x1db   : > { %4098 = vmatpush1.bf16.msra.mxu0 %v7692_v57  ;;  %4467 = vmatpush1.bf16.msra.mxu1 %v7695_v58  ;;  %v7786_v57 = vld [vmem:[%s10721_s1 + $0x1048] ss:$16 sps:$4 sm:$0xff]   ;;  %v7791_v58 = vld [vmem:[%s10721_s1 + $0x1064] ss:$16 sps:$4 sm:$0xff]  }
 0x1dc   : > { %4099 = vmatprep.subr.bf16.mxu0 %v7700_v59  ;;  %4468 = vmatprep.subr.bf16.mxu1 %v7703_v60  ;;  %v7794_v59 = vld [vmem:[%s10721_s1 + $0x106c] ss:$16 sps:$4 sm:$0xff]   ;;  %v7789_v60 = vld [vmem:[%s10721_s1 + $0x1060] ss:$16 sps:$4 sm:$0xff]  }
 0x1df   : > { %4100 = vmatpush1.bf16.msra.mxu0 %v7698_v61  ;;  %4469 = vmatpush1.bf16.msra.mxu1 %v7701_v62  ;;  %v7792_v61 = vld [vmem:[%s10721_s1 + $0x1068] ss:$16 sps:$4 sm:$0xff]   ;;  %v7797_v62 = vld [vmem:[%s10721_s1 + $0x1084] ss:$16 sps:$4 sm:$0xff]  }
 0x1e0   : > { %4101 = vmatprep.subr.bf16.mxu0 %v7706_v63  ;;  %4470 = vmatprep.subr.bf16.mxu1 %v7709_v0  ;;  %v7800_v63 = vld [vmem:[%s10721_s1 + $0x108c] ss:$16 sps:$4 sm:$0xff]   ;;  %v7795_v0 = vld [vmem:[%s10721_s1 + $0x1080] ss:$16 sps:$4 sm:$0xff]  }
 0x1e3   : > { %4102 = vmatpush1.bf16.msra.mxu0 %v7704_v1  ;;  %4471 = vmatpush1.bf16.msra.mxu1 %v7707_v2  ;;  %v7798_v1 = vld [vmem:[%s10721_s1 + $0x1088] ss:$16 sps:$4 sm:$0xff]   ;;  %v7803_v2 = vld [vmem:[%s10721_s1 + $0x10a4] ss:$16 sps:$4 sm:$0xff]  }
 0x1e4   : > { %4103 = vmatprep.subr.bf16.mxu0 %v7712_v3  ;;  %4472 = vmatprep.subr.bf16.mxu1 %v7715_v4  ;;  %v7806_v3 = vld [vmem:[%s10721_s1 + $0x10ac] ss:$16 sps:$4 sm:$0xff]   ;;  %v7801_v4 = vld [vmem:[%s10721_s1 + $0x10a0] ss:$16 sps:$4 sm:$0xff]  }
 0x1e7   : > { %4104 = vmatpush1.bf16.msra.mxu0 %v7710_v5  ;;  %4473 = vmatpush1.bf16.msra.mxu1 %v7713_v6  ;;  %v7804_v5 = vld [vmem:[%s10721_s1 + $0x10a8] ss:$16 sps:$4 sm:$0xff]   ;;  %v7809_v6 = vld [vmem:[%s10721_s1 + $0x10c4] ss:$16 sps:$4 sm:$0xff]  }
 0x1e8   : > { %4105 = vmatprep.subr.bf16.mxu0 %v7718_v7  ;;  %4474 = vmatprep.subr.bf16.mxu1 %v7721_v8  ;;  %v7812_v7 = vld [vmem:[%s10721_s1 + $0x10cc] ss:$16 sps:$4 sm:$0xff]   ;;  %v7807_v8 = vld [vmem:[%s10721_s1 + $0x10c0] ss:$16 sps:$4 sm:$0xff]  }
 0x1eb   : > { %4106 = vmatpush1.bf16.msra.mxu0 %v7716_v9  ;;  %4475 = vmatpush1.bf16.msra.mxu1 %v7719_v10  ;;  %v7810_v9 = vld [vmem:[%s10721_s1 + $0x10c8] ss:$16 sps:$4 sm:$0xff]   ;;  %v7815_v10 = vld [vmem:[%s10721_s1 + $0x10e4] ss:$16 sps:$4 sm:$0xff]  }
 0x1ec   : > { %4107 = vmatprep.subr.bf16.mxu0 %v7724_v11  ;;  %4476 = vmatprep.subr.bf16.mxu1 %v7727_v13  ;;  %v7818_v11 = vld [vmem:[%s10721_s1 + $0x10ec] ss:$16 sps:$4 sm:$0xff]   ;;  %v7813_v13 = vld [vmem:[%s10721_s1 + $0x10e0] ss:$16 sps:$4 sm:$0xff]  }
 0x1ef   : > { %4108 = vmatpush1.bf16.msra.mxu0 %v7722_v14  ;;  %4477 = vmatpush1.bf16.msra.mxu1 %v7725_v15  ;;  %v7816_v14 = vld [vmem:[%s10721_s1 + $0x10e8] ss:$16 sps:$4 sm:$0xff]   ;;  %v7821_v15 = vld [vmem:[%s10721_s1 + $0x1104] ss:$16 sps:$4 sm:$0xff]  }
 0x1f0   : > { %4109 = vmatprep.subr.bf16.mxu0 %v7730_v16  ;;  %4478 = vmatprep.subr.bf16.mxu1 %v7733_v17  ;;  %v7824_v16 = vld [vmem:[%s10721_s1 + $0x110c] ss:$16 sps:$4 sm:$0xff]   ;;  %v7819_v17 = vld [vmem:[%s10721_s1 + $0x1100] ss:$16 sps:$4 sm:$0xff]  }
 0x1f3   : > { %4110 = vmatpush1.bf16.msra.mxu0 %v7728_v18  ;;  %4479 = vmatpush1.bf16.msra.mxu1 %v7731_v20  ;;  %v7822_v18 = vld [vmem:[%s10721_s1 + $0x1108] ss:$16 sps:$4 sm:$0xff]   ;;  %v7827_v20 = vld [vmem:[%s10721_s1 + $0x1124] ss:$16 sps:$4 sm:$0xff]  }
 0x1f4   : > { %4111 = vmatprep.subr.bf16.mxu0 %v7736_v21  ;;  %4480 = vmatprep.subr.bf16.mxu1 %v7739_v23  ;;  %v7830_v21 = vld [vmem:[%s10721_s1 + $0x112c] ss:$16 sps:$4 sm:$0xff]   ;;  %v7825_v23 = vld [vmem:[%s10721_s1 + $0x1120] ss:$16 sps:$4 sm:$0xff]  }
 0x1f7   : > { %4112 = vmatpush1.bf16.msra.mxu0 %v7734_v19  ;;  %4481 = vmatpush1.bf16.msra.mxu1 %v7737_v25  ;;  %v7828_v19 = vld [vmem:[%s10721_s1 + $0x1128] ss:$16 sps:$4 sm:$0xff]   ;;  %v7833_v25 = vld [vmem:[%s10721_s1 + $0x1144] ss:$16 sps:$4 sm:$0xff]  }
 0x1f8   : > { %4113 = vmatprep.subr.bf16.mxu0 %v7742_v12  ;;  %4482 = vmatprep.subr.bf16.mxu1 %v7745_v27  ;;  %v7836_v12 = vld [vmem:[%s10721_s1 + $0x114c] ss:$16 sps:$4 sm:$0xff]   ;;  %v7831_v27 = vld [vmem:[%s10721_s1 + $0x1140] ss:$16 sps:$4 sm:$0xff]  }
 0x1fb   : > { %4114 = vmatpush1.bf16.msra.mxu0 %v7740_v28  ;;  %4483 = vmatpush1.bf16.msra.mxu1 %v7743_v30  ;;  %v7834_v28 = vld [vmem:[%s10721_s1 + $0x1148] ss:$16 sps:$4 sm:$0xff]   ;;  %v7839_v30 = vld [vmem:[%s10721_s1 + $0x1164] ss:$16 sps:$4 sm:$0xff]  }
 0x1fc   : > { %4115 = vmatprep.subr.bf16.mxu0 %v7748_v31  ;;  %4484 = vmatprep.subr.bf16.mxu1 %v7751_v22  ;;  %v7842_v31 = vld [vmem:[%s10721_s1 + $0x116c] ss:$16 sps:$4 sm:$0xff]   ;;  %v7837_v22 = vld [vmem:[%s10721_s1 + $0x1160] ss:$16 sps:$4 sm:$0xff]  }
 0x1ff   : > { %4116 = vmatpush1.bf16.msra.mxu0 %v7746_v32  ;;  %4485 = vmatpush1.bf16.msra.mxu1 %v7749_v33  ;;  %v7840_v32 = vld [vmem:[%s10721_s1 + $0x1168] ss:$16 sps:$4 sm:$0xff]   ;;  %v7845_v33 = vld [vmem:[%s10721_s1 + $0x1184] ss:$16 sps:$4 sm:$0xff]  }
 0x200   : > { %4117 = vmatprep.subr.bf16.mxu0 %v7754_v26  ;;  %4486 = vmatprep.subr.bf16.mxu1 %v7757_v36  ;;  %v7848_v26 = vld [vmem:[%s10721_s1 + $0x118c] ss:$16 sps:$4 sm:$0xff]   ;;  %v7843_v36 = vld [vmem:[%s10721_s1 + $0x1180] ss:$16 sps:$4 sm:$0xff]  }
 0x203   : > { %4118 = vmatpush1.bf16.msra.mxu0 %v7752_v24  ;;  %4487 = vmatpush1.bf16.msra.mxu1 %v7755_v37  ;;  %v7846_v24 = vld [vmem:[%s10721_s1 + $0x1188] ss:$16 sps:$4 sm:$0xff]   ;;  %v7851_v37 = vld [vmem:[%s10721_s1 + $0x11a4] ss:$16 sps:$4 sm:$0xff]  }
 0x204   : > { %4119 = vmatprep.subr.bf16.mxu0 %v7760_v38  ;;  %4488 = vmatprep.subr.bf16.mxu1 %v7763_v40  ;;  %v7854_v38 = vld [vmem:[%s10721_s1 + $0x11ac] ss:$16 sps:$4 sm:$0xff]   ;;  %v7849_v40 = vld [vmem:[%s10721_s1 + $0x11a0] ss:$16 sps:$4 sm:$0xff]  }
 0x207   : > { %4120 = vmatpush1.bf16.msra.mxu0 %v7758_v41  ;;  %4489 = vmatpush1.bf16.msra.mxu1 %v7761_v29  ;;  %v7852_v41 = vld [vmem:[%s10721_s1 + $0x11a8] ss:$16 sps:$4 sm:$0xff]   ;;  %v7857_v29 = vld [vmem:[%s10721_s1 + $0x11c4] ss:$16 sps:$4 sm:$0xff]  }
 0x208   : > { %4121 = vmatprep.subr.bf16.mxu0 %v7766_v43  ;;  %4490 = vmatprep.subr.bf16.mxu1 %v7769_v44  ;;  %v7860_v43 = vld [vmem:[%s10721_s1 + $0x11cc] ss:$16 sps:$4 sm:$0xff]   ;;  %v7855_v44 = vld [vmem:[%s10721_s1 + $0x11c0] ss:$16 sps:$4 sm:$0xff]  }
 0x20b   : > { %4122 = vmatpush1.bf16.msra.mxu0 %v7764_v35  ;;  %4491 = vmatpush1.bf16.msra.mxu1 %v7767_v46  ;;  %v7858_v35 = vld [vmem:[%s10721_s1 + $0x11c8] ss:$16 sps:$4 sm:$0xff]   ;;  %v7863_v46 = vld [vmem:[%s10721_s1 + $0x11e4] ss:$16 sps:$4 sm:$0xff]  }
 0x20c   : > { %4132 = vmatprep.subr.bf16.mxu0 %v7773_v47  ;;  %4501 = vmatprep.subr.bf16.mxu1 %v7776_v34  ;;  %v7866_v47 = vld [vmem:[%s10721_s1 + $0x11ec] ss:$16 sps:$4 sm:$0xff]   ;;  %v7861_v34 = vld [vmem:[%s10721_s1 + $0x11e0] ss:$16 sps:$4 sm:$0xff]  }
 0x20e   : > { %4124 = vmatmul.mubr.bf16.vlgmr.msra.gmra.mrb[0].mxu0 %v9446_v45  ;;  %4493 = vmatmul.mubr.bf16.vlgmr.msra.gmra.mrb[0].mxu1 %v9446_v45  ;;  %v7788_v45 = vld [vmem:[%s10721_s1 + $0x104c] ss:$16 sps:$4 sm:$0xff]  }
 0x20f   : > { %4133 = vmatpush1.bf16.msra.mxu0 %v7771_v48  ;;  %4502 = vmatpush1.bf16.msra.mxu1 %v7774_v50  ;;  %v7864_v48 = vld [vmem:[%s10721_s1 + $0x11e8] ss:$16 sps:$4 sm:$0xff]   ;;  %v4661_v50 = vld [vmem:[%s10723_s3 + $0x80] sm:$0xff] }
 0x210   : > { %4134 = vmatprep.subr.bf16.mxu0 %v7779_v51  ;;  %4503 = vmatprep.subr.bf16.mxu1 %v7782_v52  ;;  %v4662_v51 = vld [vmem:[%s10723_s3 + $0x88] sm:$0xff]  ;;  %v4693_v52 = vld [vmem:[%s10723_s3 + $0x180] sm:$0xff] }
 0x211   : > { %4164 = vmatprep.mubr.bf16.mxu0 %v905_v39  ;;  %4533 = vmatprep.mubr.bf16.mxu1 %v905_v39  ;;  %v6634_v39 = vpack.c.bf16 %v4662_v51, %v4661_v50  ;;  %v4704_v51 = vld [vmem:[%s10723_s3 + $0x1d8] sm:$0xff] }
 0x213   : > { %4135 = vmatpush1.bf16.msra.mxu0 %v7777_v53  ;;  %4504 = vmatpush1.bf16.msra.mxu1 %v7780_v54  ;;  %v4694_v53 = vld [vmem:[%s10723_s3 + $0x188] sm:$0xff] }
 0x214   : > { %4136 = vmatprep.subr.bf16.mxu0 %v7785_v55  ;;  %4505 = vmatprep.subr.bf16.mxu1 %v7788_v45  ;;  %v4646_v54 = vld [vmem:[%s10723_s3 + $0x8] sm:$0xff]  ;;  %v6666_v55 = vpack.c.bf16 %v4694_v53, %v4693_v52  ;;  %v4655_v52 = vld [vmem:[%s10723_s3 + $0x50] sm:$0xff] }
 0x217   : > { %4137 = vmatpush1.bf16.msra.mxu0 %v7783_v56  ;;  %4506 = vmatpush1.bf16.msra.mxu1 %v7786_v57  ;;  %v4677_v56 = vld [vmem:[%s10723_s3 + $0x100] sm:$0xff]  ;;  %v4678_v57 = vld [vmem:[%s10723_s3 + $0x108] sm:$0xff] }
 0x218   : > { %4138 = vmatprep.subr.bf16.mxu0 %v7791_v58  ;;  %4507 = vmatprep.subr.bf16.mxu1 %v7794_v59  ;;  %v6668_v58 = vpack.c.bf16 %v4678_v57, %v4677_v56  ;;  %v4663_v59 = vld [vmem:[%s10723_s3 + $0x90] sm:$0xff]  ;;  %v4674_v57 = vld [vmem:[%s10723_s3 + $0xe8] sm:$0xff] }
 0x21b   : > { %4139 = vmatpush1.bf16.msra.mxu0 %v7789_v60  ;;  %4508 = vmatpush1.bf16.msra.mxu1 %v7792_v61  ;;  %v4664_v60 = vld [vmem:[%s10723_s3 + $0x98] sm:$0xff]  ;;  %v4695_v61 = vld [vmem:[%s10723_s3 + $0x190] sm:$0xff] }
 0x21c   : > { %4140 = vmatprep.subr.bf16.mxu0 %v7797_v62  ;;  %4509 = vmatprep.subr.bf16.mxu1 %v7800_v63  ;;  %v6638_v62 = vpack.c.bf16 %v4664_v60, %v4663_v59  ;;  %v4696_v63 = vld [vmem:[%s10723_s3 + $0x198] sm:$0xff]  ;;  %v4706_v59 = vld [vmem:[%s10723_s3 + $0x1e8] sm:$0xff] }
 0x21f   : > { %4141 = vmatpush1.bf16.msra.mxu0 %v7795_v0  ;;  %4510 = vmatpush1.bf16.msra.mxu1 %v7798_v1  ;;  %v4647_v0 = vld [vmem:[%s10723_s3 + $0x10] sm:$0xff]  ;;  %v4648_v1 = vld [vmem:[%s10723_s3 + $0x18] sm:$0xff] }
 0x220   : > { %4142 = vmatprep.subr.bf16.mxu0 %v7803_v2  ;;  %4511 = vmatprep.subr.bf16.mxu1 %v7806_v3  ;;  %v6670_v2 = vpack.c.bf16 %v4696_v63, %v4695_v61  ;;  %v6640_v3 = vpack.c.bf16 %v4648_v1, %v4647_v0  ;;  %v4658_v63 = vld [vmem:[%s10723_s3 + $0x68] sm:$0xff]  ;;  %v4689_v0 = vld [vmem:[%s10723_s3 + $0x160] sm:$0xff] }
 0x223   : > { %4143 = vmatpush1.bf16.msra.mxu0 %v7801_v4  ;;  %4512 = vmatpush1.bf16.msra.mxu1 %v7804_v5  ;;  %v4679_v4 = vld [vmem:[%s10723_s3 + $0x110] sm:$0xff]  ;;  %v4680_v5 = vld [vmem:[%s10723_s3 + $0x118] sm:$0xff] }
 0x224   : > { %4144 = vmatprep.subr.bf16.mxu0 %v7809_v6  ;;  %4513 = vmatprep.subr.bf16.mxu1 %v7812_v7  ;;  %v6672_v6 = vpack.c.bf16 %v4680_v5, %v4679_v4  ;;  %v4665_v7 = vld [vmem:[%s10723_s3 + $0xa0] sm:$0xff]  ;;  %v4676_v4 = vld [vmem:[%s10723_s3 + $0xf8] sm:$0xff] }
 0x227   : > { %4145 = vmatpush1.bf16.msra.mxu0 %v7807_v8  ;;  %4514 = vmatpush1.bf16.msra.mxu1 %v7810_v9  ;;  %v4666_v8 = vld [vmem:[%s10723_s3 + $0xa8] sm:$0xff]  ;;  %v4697_v9 = vld [vmem:[%s10723_s3 + $0x1a0] sm:$0xff] }
 0x228   : > { %4146 = vmatprep.subr.bf16.mxu0 %v7815_v10  ;;  %4515 = vmatprep.subr.bf16.mxu1 %v7818_v11  ;;  %v6642_v10 = vpack.c.bf16 %v4666_v8, %v4665_v7  ;;  %v4698_v11 = vld [vmem:[%s10723_s3 + $0x1a8] sm:$0xff]  ;;  %v4707_v7 = vld [vmem:[%s10723_s3 + $0x1f0] sm:$0xff]  ;;  %v4708_v8 = vld [vmem:[%s10723_s3 + $0x1f8] sm:$0xff] }
 0x22b   : > { %4147 = vmatpush1.bf16.msra.mxu0 %v7813_v13  ;;  %4516 = vmatpush1.bf16.msra.mxu1 %v7816_v14  ;;  %v4649_v13 = vld [vmem:[%s10723_s3 + $0x20] sm:$0xff]  ;;  %v4650_v14 = vld [vmem:[%s10723_s3 + $0x28] sm:$0xff] }
 0x22c   : > { %4148 = vmatprep.subr.bf16.mxu0 %v7821_v15  ;;  %4517 = vmatprep.subr.bf16.mxu1 %v7824_v16  ;;  %v6674_v15 = vpack.c.bf16 %v4698_v11, %v4697_v9  ;;  %v6644_v16 = vpack.c.bf16 %v4650_v14, %v4649_v13  ;;  %v4659_v9 = vld [vmem:[%s10723_s3 + $0x70] sm:$0xff]  ;;  %v4660_v11 = vld [vmem:[%s10723_s3 + $0x78] sm:$0xff] }
 0x22d   : > { %v4691_v13 = vld [vmem:[%s10723_s3 + $0x170] sm:$0xff]  ;;  %v4692_v14 = vld [vmem:[%s10723_s3 + $0x178] sm:$0xff] }
 0x22f   : > { %4149 = vmatpush1.bf16.msra.mxu0 %v7819_v17  ;;  %4518 = vmatpush1.bf16.msra.mxu1 %v7822_v18  ;;  %v4681_v17 = vld [vmem:[%s10723_s3 + $0x120] sm:$0xff]  ;;  %v4682_v18 = vld [vmem:[%s10723_s3 + $0x128] sm:$0xff] }
 0x230   : > { %4150 = vmatprep.subr.bf16.mxu0 %v7827_v20  ;;  %4519 = vmatprep.subr.bf16.mxu1 %v7830_v21  ;;  %v6676_v20 = vpack.c.bf16 %v4682_v18, %v4681_v17  ;;  %v4667_v21 = vld [vmem:[%s10723_s3 + $0xb0] sm:$0xff]  ;;  %v6175_v17 = vld [vmem:[%s10723_s3 + $0x280] sm:$0xff]  ;;  %v6176_v18 = vld [vmem:[%s10723_s3 + $0x288] sm:$0xff] }
 0x233   : > { %4151 = vmatpush1.bf16.msra.mxu0 %v7825_v23  ;;  %4520 = vmatpush1.bf16.msra.mxu1 %v7828_v19  ;;  %v4668_v23 = vld [vmem:[%s10723_s3 + $0xb8] sm:$0xff]  ;;  %v4699_v19 = vld [vmem:[%s10723_s3 + $0x1b0] sm:$0xff] }
 0x234   : > { %4152 = vmatprep.subr.bf16.mxu0 %v7833_v25  ;;  %4521 = vmatprep.subr.bf16.mxu1 %v7836_v12  ;;  %v6646_v25 = vpack.c.bf16 %v4668_v23, %v4667_v21  ;;  %v4700_v12 = vld [vmem:[%s10723_s3 + $0x1b8] sm:$0xff]  ;;  %v6698_v21 = vpack.c.bf16 %v6176_v18, %v6175_v17  ;;  %v6208_v23 = vld [vmem:[%s10723_s3 + $0x388] sm:$0xff] }
 0x237   : > { %4153 = vmatpush1.bf16.msra.mxu0 %v7831_v27  ;;  %4522 = vmatpush1.bf16.msra.mxu1 %v7834_v28  ;;  %v4651_v27 = vld [vmem:[%s10723_s3 + $0x30] sm:$0xff]  ;;  %v4652_v28 = vld [vmem:[%s10723_s3 + $0x38] sm:$0xff] }
 0x238   : > { %4154 = vmatprep.subr.bf16.mxu0 %v7839_v30  ;;  %4523 = vmatprep.subr.bf16.mxu1 %v7842_v31  ;;  %v6678_v30 = vpack.c.bf16 %v4700_v12, %v4699_v19  ;;  %v6648_v31 = vpack.c.bf16 %v4652_v28, %v4651_v27  ;;  %v815_v12 = vsub.s32 2, %v8142_v42  ;;  %v803_v27 = vld [vmem:[%s10722_s2] sm:$0xf]  ;;  %v811_v28 = vsub.s32 1, %v8142_v42 }
 0x23b   : > { %4155 = vmatpush1.bf16.msra.mxu0 %v7837_v22  ;;  %4524 = vmatpush1.bf16.msra.mxu1 %v7840_v32  ;;  %v4683_v22 = vld [vmem:[%s10723_s3 + $0x130] sm:$0xff]  ;;  %v4684_v32 = vld [vmem:[%s10723_s3 + $0x138] sm:$0xff] }
 0x23c   : > { %4156 = vmatprep.subr.bf16.mxu0 %v7845_v33  ;;  %4525 = vmatprep.subr.bf16.mxu1 %v7848_v26  ;;  %v6680_v33 = vpack.c.bf16 %v4684_v32, %v4683_v22  ;;  %v4669_v26 = vld [vmem:[%s10723_s3 + $0xc0] sm:$0xff]  ;;  %v816_v22 = vrot.slane %v803_v27, %v815_v12  ;;  %v812_v32 = vrot.slane %v803_v27, %v811_v28 }
 0x23f   : > { %4157 = vmatpush1.bf16.msra.mxu0 %v7843_v36  ;;  %4526 = vmatpush1.bf16.msra.mxu1 %v7846_v24  ;;  %v4670_v36 = vld [vmem:[%s10723_s3 + $0xc8] sm:$0xff]  ;;  %v4701_v24 = vld [vmem:[%s10723_s3 + $0x1c0] sm:$0xff] }
 0x240   : > { %4158 = vmatprep.subr.bf16.mxu0 %v7851_v37  ;;  %4527 = vmatprep.subr.bf16.mxu1 %v7854_v38  ;;  %v6650_v37 = vpack.c.bf16 %v4670_v36, %v4669_v26  ;;  %v4702_v38 = vld [vmem:[%s10723_s3 + $0x1c8] sm:$0xff] }
 0x243   : > { %4159 = vmatpush1.bf16.msra.mxu0 %v7849_v40  ;;  %4528 = vmatpush1.bf16.msra.mxu1 %v7852_v41  ;;  %v4653_v40 = vld [vmem:[%s10723_s3 + $0x40] sm:$0xff]  ;;  %v4654_v41 = vld [vmem:[%s10723_s3 + $0x48] sm:$0xff] }
 0x244   : > { %4160 = vmatprep.subr.bf16.mxu0 %v7857_v29  ;;  %4529 = vmatprep.subr.bf16.mxu1 %v7860_v43  ;;  %v6682_v29 = vpack.c.bf16 %v4702_v38, %v4701_v24  ;;  %v6652_v43 = vpack.c.bf16 %v4654_v41, %v4653_v40 }
 0x247   : > { %4161 = vmatpush1.bf16.msra.mxu0 %v7855_v44  ;;  %4530 = vmatpush1.bf16.msra.mxu1 %v7858_v35  ;;  %v4685_v44 = vld [vmem:[%s10723_s3 + $0x140] sm:$0xff]  ;;  %v4686_v35 = vld [vmem:[%s10723_s3 + $0x148] sm:$0xff] }
 0x248   : > { %4162 = vmatprep.subr.bf16.mxu0 %v7863_v46  ;;  %4531 = vmatprep.subr.bf16.mxu1 %v7866_v47  ;;  %v6684_v46 = vpack.c.bf16 %v4686_v35, %v4685_v44  ;;  %v4671_v47 = vld [vmem:[%s10723_s3 + $0xd0] sm:$0xff] }
 0x24b   : > { %4163 = vmatpush1.bf16.msra.mxu0 %v7861_v34  ;;  %4532 = vmatpush1.bf16.msra.mxu1 %v7864_v48  ;;  %v4672_v34 = vld [vmem:[%s10723_s3 + $0xd8] sm:$0xff]  ;;  %v4703_v48 = vld [vmem:[%s10723_s3 + $0x1d0] sm:$0xff] }
 0x24c   : > { %6635 = vmatprep.subr.bf16.mxu0 %v6634_v39  ;;  %6667 = vmatprep.subr.bf16.mxu1 %v6666_v55  ;;  %v6654_v50 = vpack.c.bf16 %v4672_v34, %v4671_v47  ;;  %v4656_v39 = vld [vmem:[%s10723_s3 + $0x58] sm:$0xff]  ;;  %v6686_v53 = vpack.c.bf16 %v4704_v51, %v4703_v48 }
 0x24d   : > { %v4688_v55 = vld [vmem:[%s10723_s3 + $0x158] sm:$0xff] }
 0x24e   : > { %4165 = vmatmul.mubr.bf16.vlgmr.msra.gmra.mrb[0].mxu0 %v9645_v49  ;;  %4534 = vmatmul.mubr.bf16.vlgmr.msra.gmra.mrb[0].mxu1 %v9645_v49  ;;  %v4645_v49 = vld [vmem:[%s10723_s3] sm:$0xff] }
 0x24f   : > { %v6636_v45 = vpack.c.bf16 %v4646_v54, %v4645_v49  ;;  %6669 = vmatpush3.bf16.msra.mxu1 %v6668_v58  ;;  %v6656_v49 = vpack.c.bf16 %v4656_v39, %v4655_v52  ;;  %v4687_v54 = vld [vmem:[%s10723_s3 + $0x150] sm:$0xff]  ;;  %v4705_v58 = vld [vmem:[%s10723_s3 + $0x1e0] sm:$0xff] }
 0x250   : > { %6671 = vmatprep.subr.bf16.mxu1 %v6670_v2  ;;  %v6688_v56 = vpack.c.bf16 %v4688_v55, %v4687_v54  ;;  %v6690_v61 = vpack.c.bf16 %v4706_v59, %v4705_v58  ;;  %v4690_v2 = vld [vmem:[%s10723_s3 + $0x168] sm:$0xff] }
 0x251   : > { %6637 = vmatpush3.bf16.msra.mxu0 %v6636_v45  ;;  %v4673_v45 = vld [vmem:[%s10723_s3 + $0xe0] sm:$0xff]  ;;  %v6692_v5 = vpack.c.bf16 %v4690_v2, %v4689_v0 }
 0x252   : > { %6639 = vmatprep.subr.bf16.mxu0 %v6638_v62  ;;  %v6658_v60 = vpack.c.bf16 %v4674_v57, %v4673_v45  ;;  %v4657_v62 = vld [vmem:[%s10723_s3 + $0x60] sm:$0xff] }
 0x253   : > { %6673 = vmatpush3.bf16.msra.mxu1 %v6672_v6  ;;  %v6660_v1 = vpack.c.bf16 %v4658_v63, %v4657_v62 }
 0x254   : > { %6675 = vmatprep.subr.bf16.mxu1 %v6674_v15  ;;  %v6664_v15 = vpack.c.bf16 %v4660_v11, %v4659_v9 }
 0x255   : > { %6641 = vmatpush3.bf16.msra.mxu0 %v6640_v3  ;;  %v4675_v3 = vld [vmem:[%s10723_s3 + $0xf0] sm:$0xff] }
 0x256   : > { %6643 = vmatprep.subr.bf16.mxu0 %v6642_v10  ;;  %v6662_v6 = vpack.c.bf16 %v4676_v4, %v4675_v3  ;;  %v6694_v10 = vpack.c.bf16 %v4708_v8, %v4707_v7 }
 0x257   : > { %6677 = vmatpush3.bf16.msra.mxu1 %v6676_v20  ;;  %v6207_v20 = vld [vmem:[%s10723_s3 + $0x380] sm:$0xff] }
 0x258   : > { %6679 = vmatprep.subr.bf16.mxu1 %v6678_v30  ;;  %v6730_v19 = vpack.c.bf16 %v6208_v23, %v6207_v20  ;;  %v819_v30 = vsub.s32 3, %v8142_v42 }
 0x259   : > { %6645 = vmatpush3.bf16.msra.mxu0 %v6644_v16  ;;  %v6696_v16 = vpack.c.bf16 %v4692_v14, %v4691_v13 }
 0x25a   : > { %6647 = vmatprep.subr.bf16.mxu0 %v6646_v25  ;;  %v807_v25 = vsub.s32 0, %v8142_v42 }
 0x25b   : > { %6681 = vmatpush3.bf16.msra.mxu1 %v6680_v33  ;;  %v820_v33 = vrot.slane %v803_v27, %v819_v30 }
 0x25c   : > { %6683 = vmatprep.subr.bf16.mxu1 %v6682_v29 }
 0x25d   : > { %6649 = vmatpush3.bf16.msra.mxu0 %v6648_v31  ;;  %v808_v31 = vrot.slane %v803_v27, %v807_v25 }
 0x25e   : > { %6651 = vmatprep.subr.bf16.mxu0 %v6650_v37 }
 0x25f   : > { %6685 = vmatpush3.bf16.msra.mxu1 %v6684_v46 }
 0x260   : > { %6687 = vmatprep.subr.bf16.mxu1 %v6686_v53 }
 0x261   : > { %6653 = vmatpush3.bf16.msra.mxu0 %v6652_v43 }
 0x262   : > { %6655 = vmatprep.subr.bf16.mxu0 %v6654_v50 }
 0x263   : > { %6689 = vmatpush3.bf16.msra.mxu1 %v6688_v56 }
 0x264   : > { %6691 = vmatprep.subr.bf16.mxu1 %v6690_v61 }
 0x265   : > { %6657 = vmatpush3.bf16.msra.mxu0 %v6656_v49 }
 0x266   : > { %6659 = vmatprep.subr.bf16.mxu0 %v6658_v60 }
 0x267   : > { %6693 = vmatpush3.bf16.msra.mxu1 %v6692_v5 }
 0x268   : > { %6695 = vmatprep.subr.bf16.mxu1 %v6694_v10 }
 0x269   : > { %6661 = vmatpush3.bf16.msra.mxu0 %v6660_v1 }
 0x26a   : > { %6663 = vmatprep.subr.bf16.mxu0 %v6662_v6 }
 0x26b   : > { %6697 = vmatpush3.bf16.msra.mxu1 %v6696_v16 }
 0x26c   : > { %6731 = vmatprep.subr.bf16.mxu1 %v6730_v19 }
 0x26d   : > { %6665 = vmatpush3.bf16.msra.mxu0 %v6664_v15 }
 0x26e   : > { %6699 = vmatprep.subr.bf16.mxu0 %v6698_v21 }
 0x321   : > { %v4166_v26 = vpop.f32.mrb[0].mxu0  ;;  %v4535_v36 = vpop.f32.mrb[0].mxu1 }
 0x322   : > { %v6890_v24 = vadd.f32 %v4166_v26, %v808_v31  ;;  %v6892_v37 = vadd.f32 %v4535_v36, %v816_v22  ;;  %v4168_v38 = vpop.f32.mrb[1].mxu0  ;;  %v4537_v40 = vpop.f32.mrb[1].mxu1 }
 0x323   : > { %v6891_v41 = vadd.f32 %v4168_v38, %v812_v32  ;;  %v6893_v29 = vadd.f32 %v4537_v40, %v820_v33  ;;  %v4170_v43 = vpop.f32.mrb[2].mxu0  ;;  %v4539_v44 = vpop.f32.mrb[2].mxu1 }
 0x324   : > { %v4542_v35 = vmul.f32 0.2, %v6890_v24  ;;  %v4544_v46 = vmul.f32 0.2, %v6892_v37  ;;  %v4171_v47 = vpop.f32.mrb[3].mxu0  ;;  %v4540_v34 = vpop.f32.mrb[3].mxu1 }
 0x325   : > { %v4543_v42 = vmul.f32 0.2, %v6891_v41  ;;  %v4545_v48 = vmul.f32 0.2, %v6893_v29 }
 0x326   : > { %v10050_v50 = vmax.f32 %v6890_v24, %v4542_v35  ;;  %v10052_v51 = vmax.f32 %v6892_v37, %v4544_v46 }
 0x327   : > { %v10054_v52 = vmax.f32 %v6891_v41, %v4543_v42  ;;  %v10056_v39 = vmax.f32 %v6893_v29, %v4545_v48 }
 0x328   : > { %v4551_v53 = vsel %vm4550_vm0, %v10050_v50, 0.0  ;;  %v4584_v49 = vmul.f32 %v10050_v50, %v10050_v50  ;;  %v4565_v54 = vsel %vm4550_vm0, %v10052_v51, 0.0  ;;  %v4586_v55 = vmul.f32 %v10052_v51, %v10052_v51 }
 0x329   : > { %v4552_v45 = vrot.slane %v4551_v53, 4  ;;  %v4566_v56 = vrot.slane %v4565_v54, 4  ;;  %v4558_v57 = vsel %vm4550_vm0, %v10054_v52, 0.0  ;;  %v4585_v58 = vmul.f32 %v10054_v52, %v10054_v52 }
 0x32a   : > { %v4588_v59 = vsel %vm4550_vm0, %v4584_v49, 0.0  ;;  %v4602_v60 = vsel %vm4550_vm0, %v4586_v55, 0.0  ;;  %v4559_v61 = vrot.slane %v4558_v57, 4  ;;  %v4572_v62 = vsel %vm4550_vm0, %v10056_v39, 0.0 }
 0x32b   : > { %v4553_v63 = vadd.f32 %v4552_v45, %v4551_v53  ;;  %v4589_v0 = vrot.slane %v4588_v59, 4  ;;  %v4567_v1 = vadd.f32 %v4566_v56, %v4565_v54  ;;  %v4603_v2 = vrot.slane %v4602_v60, 4 }
 0x32c   : > { %v4560_v3 = vadd.f32 %v4559_v61, %v4558_v57  ;;  %v4595_v4 = vsel %vm4550_vm0, %v4585_v58, 0.0  ;;  %v4573_v5 = vrot.slane %v4572_v62, 4  ;;  %v4587_v6 = vmul.f32 %v10056_v39, %v10056_v39 }
 0x32d   : > { %v4554_v7 = vrot.slane %v4553_v63, 2  ;;  %v4590_v8 = vadd.f32 %v4589_v0, %v4588_v59  ;;  %v4568_v9 = vrot.slane %v4567_v1, 2  ;;  %v4604_v10 = vadd.f32 %v4603_v2, %v4602_v60 }
 0x32e   : > { %v4561_v11 = vrot.slane %v4560_v3, 2  ;;  %v4596_v13 = vrot.slane %v4595_v4, 4  ;;  %v4574_v14 = vadd.f32 %v4573_v5, %v4572_v62  ;;  %v4609_v15 = vsel %vm4550_vm0, %v4587_v6, 0.0 }
 0x32f   : > { %v4555_v16 = vadd.f32 %v4554_v7, %v4553_v63  ;;  %v4591_v17 = vrot.slane %v4590_v8, 2  ;;  %v4569_v18 = vadd.f32 %v4568_v9, %v4567_v1  ;;  %v4605_v20 = vrot.slane %v4604_v10, 2  ;;  %v6159_v7 = vld [vmem:[%s10723_s3 + $0x200] sm:$0xff] }
 0x330   : > { %v4562_v21 = vadd.f32 %v4561_v11, %v4560_v3  ;;  %v4597_v23 = vadd.f32 %v4596_v13, %v4595_v4  ;;  %v4575_v19 = vrot.slane %v4574_v14, 2  ;;  %v4610_v25 = vrot.slane %v4609_v15, 4  ;;  %v6177_v11 = vld [vmem:[%s10723_s3 + $0x290] sm:$0xff]  ;;  %v6178_v13 = vld [vmem:[%s10723_s3 + $0x298] sm:$0xff] }
 0x331   : > { %v4556_v12 = vrot.slane %v4555_v16, 1  ;;  %v4592_v27 = vadd.f32 %v4591_v17, %v4590_v8  ;;  %v4570_v28 = vrot.slane %v4569_v18, 1  ;;  %v4606_v30 = vadd.f32 %v4605_v20, %v4604_v10  ;;  %v6160_v8 = vld [vmem:[%s10723_s3 + $0x208] sm:$0xff]  ;;  %v6209_v20 = vld [vmem:[%s10723_s3 + $0x390] sm:$0xff] }
 0x332   : > { %v4563_v31 = vrot.slane %v4562_v21, 1  ;;  %v4598_v22 = vrot.slane %v4597_v23, 2  ;;  %v4576_v32 = vadd.f32 %v4575_v19, %v4574_v14  ;;  %v4611_v33 = vadd.f32 %v4610_v25, %v4609_v15  ;;  %v6210_v25 = vld [vmem:[%s10723_s3 + $0x398] sm:$0xff] }
 0x333   : > { %v4557_v26 = vadd.f32 %v4556_v12, %v4555_v16  ;;  %v4593_v36 = vrot.slane %v4592_v27, 1  ;;  %v4571_v24 = vadd.f32 %v4570_v28, %v4569_v18  ;;  %v4607_v37 = vrot.slane %v4606_v30, 1  ;;  %v6191_v18 = vld [vmem:[%s10723_s3 + $0x300] sm:$0xff]  ;;  %v6161_v12 = vld [vmem:[%s10723_s3 + $0x210] sm:$0xff] }
 0x334   : > { %v4564_v38 = vadd.f32 %v4563_v31, %v4562_v21  ;;  %v4599_v40 = vadd.f32 %v4598_v22, %v4597_v23  ;;  %v4577_v41 = vrot.slane %v4576_v32, 1  ;;  %v4612_v29 = vrot.slane %v4611_v33, 2  ;;  %v6179_v31 = vld [vmem:[%s10723_s3 + $0x2a0] sm:$0xff]  ;;  %v6180_v22 = vld [vmem:[%s10723_s3 + $0x2a8] sm:$0xff] }
 0x335   : > { %v4580_v43 = vmul.f32 0.25, %v4557_v26  ;;  %v4594_v44 = vadd.f32 %v4593_v36, %v4592_v27  ;;  %v4582_v35 = vmul.f32 0.25, %v4571_v24  ;;  %v4608_v46 = vadd.f32 %v4607_v37, %v4606_v30  ;;  %v6162_v27 = vld [vmem:[%s10723_s3 + $0x218] sm:$0xff]  ;;  %v6193_v24 = vld [vmem:[%s10723_s3 + $0x310] sm:$0xff] }
 0x336   : > { %v4581_v47 = vmul.f32 0.25, %v4564_v38  ;;  %v4600_v34 = vrot.slane %v4599_v40, 1  ;;  %v4578_v42 = vadd.f32 %v4577_v41, %v4576_v32  ;;  %v4613_v48 = vadd.f32 %v4612_v29, %v4611_v33  ;;  %v6194_v37 = vld [vmem:[%s10723_s3 + $0x318] sm:$0xff]  ;;  %v6211_v38 = vld [vmem:[%s10723_s3 + $0x3a0] sm:$0xff]  ;;  %v6212_v29 = vld [vmem:[%s10723_s3 + $0x3a8] sm:$0xff] }
 0x337   : > { %v4616_v53 = vmul.f32 0.25, %v4594_v44  ;;  %v4620_v49 = vmul.f32 %v4580_v43, %v4580_v43  ;;  %v4618_v54 = vmul.f32 0.25, %v4608_v46  ;;  %v4622_v55 = vmul.f32 %v4582_v35, %v4582_v35  ;;  %v6164_v44 = vld [vmem:[%s10723_s3 + $0x228] sm:$0xff]  ;;  %v6182_v46 = vld [vmem:[%s10723_s3 + $0x2b8] sm:$0xff] }
 0x338   : > { %v4601_v45 = vadd.f32 %v4600_v34, %v4599_v40  ;;  %v4621_v56 = vmul.f32 %v4581_v47, %v4581_v47  ;;  %v4583_v58 = vmul.f32 0.25, %v4578_v42  ;;  %v4614_v59 = vrot.slane %v4613_v48, 1 }
 0x339   : > { %v4624_v57 = vsub.f32 %v4616_v53, %v4620_v49  ;;  %v4626_v60 = vsub.f32 %v4618_v54, %v4622_v55  ;;  %v4629_v10 = vsub.f32 %v10054_v52, %v4581_v47  ;;  %v4628_v15 = vsub.f32 %v10050_v50, %v4580_v43  ;;  %v6192_v52 = vld [vmem:[%s10723_s3 + $0x308] sm:$0xff]  ;;  %v6163_v43 = vld [vmem:[%s10723_s3 + $0x220] sm:$0xff]  ;;  %v6213_v49 = vld [vmem:[%s10723_s3 + $0x3b0] sm:$0xff] }
 0x33a   : > { %v4617_v61 = vmul.f32 0.25, %v4601_v45  ;;  %v4615_v63 = vadd.f32 %v4614_v59, %v4613_v48  ;;  %v4623_v0 = vmul.f32 %v4583_v58, %v4583_v58  ;;  %v6700_v17 = vpack.c.bf16 %v6160_v8, %v6159_v7  ;;  %v6195_v48 = vld [vmem:[%s10723_s3 + $0x320] sm:$0xff]  ;;  %v6196_v53 = vld [vmem:[%s10723_s3 + $0x328] sm:$0xff]  ;;  %v6214_v55 = vld [vmem:[%s10723_s3 + $0x3b8] sm:$0xff] }
 0x33b   : > { %v4632_v62 = vadd.f32 1e-05, %v4624_v57  ;;  %v4634_v3 = vadd.f32 1e-05, %v4626_v60  ;;  %v4631_v23 = vsub.f32 %v10056_v39, %v4583_v58  ;;  %v6702_v50 = vpack.c.bf16 %v6178_v13, %v6177_v11  ;;  %v6165_v45 = vld [vmem:[%s10723_s3 + $0x230] sm:$0xff]  ;;  %v6183_v57 = vld [vmem:[%s10723_s3 + $0x2c0] sm:$0xff] }
 0x33c   : > { %v4625_v1 = vsub.f32 %v4617_v61, %v4621_v56  ;;  %v4619_v2 = vmul.f32 0.25, %v4615_v63  ;;  %v4630_v30 = vsub.f32 %v10052_v51, %v4582_v35  ;;  %v6732_v33 = vpack.c.bf16 %v6192_v52, %v6191_v18  ;;  %v6181_v35 = vld [vmem:[%s10723_s3 + $0x2b0] sm:$0xff]  ;;  %v6166_v56 = vld [vmem:[%s10723_s3 + $0x238] sm:$0xff]  ;;  %v6184_v58 = vld [vmem:[%s10723_s3 + $0x2c8] sm:$0xff] }
 0x33d   : > { %7867 = vrsqrt.f32 %v4632_v62  ;;  %v6734_v51 = vpack.c.bf16 %v6210_v25, %v6209_v20  ;;  %v6704_v36 = vpack.c.bf16 %v6162_v27, %v6161_v12  ;;  %v6706_v41 = vpack.c.bf16 %v6180_v22, %v6179_v31  ;;  %v6197_v62 = vld [vmem:[%s10723_s3 + $0x330] sm:$0xff]  ;;  %v6198_v63 = vld [vmem:[%s10723_s3 + $0x338] sm:$0xff]  ;;  %v6200_v11 = vld [vmem:[%s10723_s3 + $0x348] sm:$0xff] }
 0x33e   : > { %v4633_v4 = vadd.f32 1e-05, %v4625_v1  ;;  %v4627_v5 = vsub.f32 %v4619_v2, %v4623_v0  ;;  %v6736_v47 = vpack.c.bf16 %v6194_v37, %v6193_v24  ;;  %v6738_v34 = vpack.c.bf16 %v6212_v29, %v6211_v38  ;;  %v6215_v0 = vld [vmem:[%s10723_s3 + $0x3c0] sm:$0xff]  ;;  %v6216_v2 = vld [vmem:[%s10723_s3 + $0x3c8] sm:$0xff]  ;;  %v6217_v13 = vld [vmem:[%s10723_s3 + $0x3d0] sm:$0xff] }
 0x33f   : > { %v6708_v42 = vpack.c.bf16 %v6164_v44, %v6163_v43  ;;  %v6710_v54 = vpack.c.bf16 %v6182_v46, %v6181_v35  ;;  %v6740_v59 = vpack.c.bf16 %v6196_v53, %v6195_v48  ;;  %v6742_v60 = vpack.c.bf16 %v6214_v55, %v6213_v49  ;;  %v6170_v18 = vld [vmem:[%s10723_s3 + $0x258] sm:$0xff]  ;;  %v6187_v52 = vld [vmem:[%s10723_s3 + $0x2e0] sm:$0xff]  ;;  %v6188_v20 = vld [vmem:[%s10723_s3 + $0x2e8] sm:$0xff] }
 0x340   : > { %7869 = vrsqrt.f32 %v4633_v4  ;;  %v4635_v6 = vadd.f32 1e-05, %v4627_v5  ;;  %v6712_v61 = vpack.c.bf16 %v6166_v56, %v6165_v45  ;;  %v6714_v1 = vpack.c.bf16 %v6184_v58, %v6183_v57  ;;  %v6168_v4 = vld [vmem:[%s10723_s3 + $0x248] sm:$0xff]  ;;  %v6185_v5 = vld [vmem:[%s10723_s3 + $0x2d0] sm:$0xff]  ;;  %v6202_v12 = vld [vmem:[%s10723_s3 + $0x358] sm:$0xff] }
 0x341   : > { %7871 = vrsqrt.f32 %v4634_v3  ;;  %v6167_v3 = vld [vmem:[%s10723_s3 + $0x240] sm:$0xff]  ;;  %v6744_v7 = vpack.c.bf16 %v6198_v63, %v6197_v62  ;;  %v6746_v8 = vpack.c.bf16 %v6216_v2, %v6215_v0  ;;  %v6201_v25 = vld [vmem:[%s10723_s3 + $0x350] sm:$0xff]  ;;  %v6172_v31 = vld [vmem:[%s10723_s3 + $0x268] sm:$0xff] }
 0x342   : > { %7873 = vrsqrt.f32 %v4635_v6  ;;  %v6186_v6 = vld [vmem:[%s10723_s3 + $0x2d8] sm:$0xff]  ;;  %v6219_v27 = vld [vmem:[%s10723_s3 + $0x3e0] sm:$0xff]  ;;  %v6189_v22 = vld [vmem:[%s10723_s3 + $0x2f0] sm:$0xff] }
 0x343   : > { %v6203_v37 = vld [vmem:[%s10723_s3 + $0x360] sm:$0xff]  ;;  %v6204_v38 = vld [vmem:[%s10723_s3 + $0x368] sm:$0xff]  ;;  %v6222_v29 = vld [vmem:[%s10723_s3 + $0x3f8] sm:$0xff] }
 0x344   : > { %v6173_v43 = vld [vmem:[%s10723_s3 + $0x270] sm:$0xff]  ;;  %v6174_v44 = vld [vmem:[%s10723_s3 + $0x278] sm:$0xff]  ;;  %v6239_v35 = vld [vmem:[%s10723_s3 + $0x480] sm:$0xff] }
 0x345   : > { %v6240_v46 = vld [vmem:[%s10723_s3 + $0x488] sm:$0xff]  ;;  %v6205_v48 = vld [vmem:[%s10723_s3 + $0x370] sm:$0xff]  ;;  %v6206_v53 = vld [vmem:[%s10723_s3 + $0x378] sm:$0xff] }
 0x346   : > { %v6271_v49 = vld [vmem:[%s10723_s3 + $0x580] sm:$0xff]  ;;  %v6272_v55 = vld [vmem:[%s10723_s3 + $0x588] sm:$0xff]  ;;  %v6241_v57 = vld [vmem:[%s10723_s3 + $0x490] sm:$0xff] }
 0x347   : > { %v7868_v9 = vpop.eup %7867  ;;  %v6223_v45 = vld [vmem:[%s10723_s3 + $0x400] sm:$0xff]  ;;  %v6224_v56 = vld [vmem:[%s10723_s3 + $0x408] sm:$0xff]  ;;  %v6242_v58 = vld [vmem:[%s10723_s3 + $0x498] sm:$0xff] }
 0x348   : > { %v10104_v19 = vmul.f32 %v7868_v9, %v4628_v15  ;;  %v6716_v9 = vpack.c.bf16 %v6168_v4, %v6167_v3  ;;  %v6218_v15 = vld [vmem:[%s10723_s3 + $0x3d8] sm:$0xff]  ;;  %v6255_v62 = vld [vmem:[%s10723_s3 + $0x500] sm:$0xff]  ;;  %v6256_v63 = vld [vmem:[%s10723_s3 + $0x508] sm:$0xff]  ;;  %v6766_v2 = vpack.c.bf16 %v6242_v58, %v6241_v57 }
 0x349   : > { %v6273_v0 = vld [vmem:[%s10723_s3 + $0x590] sm:$0xff]  ;;  %v6274_v3 = vld [vmem:[%s10723_s3 + $0x598] sm:$0xff] }
 0x34a   : > { %v7870_v14 = vpop.eup %7869  ;;  %v6225_v4 = vld [vmem:[%s10723_s3 + $0x410] sm:$0xff]  ;;  %v6282_v58 = vld [vmem:[%s10723_s3 + $0x5d8] sm:$0xff] }
 0x34b   : > { %v10092_v16 = vmul.f32 %v7870_v14, %v4629_v10  ;;  %v7872_v21 = vpop.eup %7871  ;;  %v6199_v10 = vld [vmem:[%s10723_s3 + $0x340] sm:$0xff]  ;;  %v6718_v14 = vpack.c.bf16 %v6186_v6, %v6185_v5  ;;  %v6226_v5 = vld [vmem:[%s10723_s3 + $0x418] sm:$0xff] }
 0x34c   : > { %v7874_v28 = vpop.eup %7873  ;;  %v10127_v26 = vmul.f32 %v7872_v21, %v4630_v30  ;;  %v6748_v21 = vpack.c.bf16 %v6200_v11, %v6199_v10  ;;  %v6220_v30 = vld [vmem:[%s10723_s3 + $0x3e8] sm:$0xff]  ;;  %v6243_v6 = vld [vmem:[%s10723_s3 + $0x4a0] sm:$0xff]  ;;  %v6798_v11 = vpack.c.bf16 %v6274_v3, %v6273_v0  ;;  %v6266_v3 = vld [vmem:[%s10723_s3 + $0x558] sm:$0xff] }
 0x34d   : > { %4773 = vmatprep.mubr.f32.mxu0 %v10092_v16  ;;  %v4920_v39 = vrot.slane %v10092_v16, 1  ;;  %v10124_v32 = vmul.f32 %v7874_v28, %v4631_v23  ;;  %v6750_v23 = vpack.c.bf16 %v6218_v15, %v6217_v13  ;;  %v6722_v28 = vpack.c.bf16 %v6188_v20, %v6187_v52  ;;  %v6258_v15 = vld [vmem:[%s10723_s3 + $0x518] sm:$0xff]  ;;  %v6276_v20 = vld [vmem:[%s10723_s3 + $0x5a8] sm:$0xff] }
 0x34e   : > { %4774 = vmatmul.mubr.f32.vlgmr.msra.gmra.mrb[4].mxu0 %v10104_v19  ;;  %v4921_v10 = vrot.slane %v10127_v26, 1  ;;  %v6768_v13 = vpack.c.bf16 %v6226_v5, %v6225_v4  ;;  %v6283_v4 = vld [vmem:[%s10723_s3 + $0x5e0] sm:$0xff] }
 0x34f   : > { %6701 = vmatpush3.bf16.msra.mxu0 %v6700_v17  ;;  %4991 = vmatprep.mubr.f32.mxu0 %v4920_v39  ;;  %v4922_v40 = vrot.slane %v10124_v32, 1  ;;  %v6169_v17 = vld [vmem:[%s10723_s3 + $0x250] sm:$0xff]  ;;  %v6171_v39 = vld [vmem:[%s10723_s3 + $0x260] sm:$0xff] }
 0x350   : > { %4843 = vmatprep.mubr.f32.mxu1 %v10124_v32  ;;  %6703 = vmatprep.subr.bf16.mxu0 %v6702_v50  ;;  %v6720_v50 = vpack.c.bf16 %v6170_v18, %v6169_v17  ;;  %v6724_v24 = vpack.c.bf16 %v6172_v31, %v6171_v39  ;;  %v6275_v17 = vld [vmem:[%s10723_s3 + $0x5a0] sm:$0xff]  ;;  %v5136_v18 = vrot.slane %v10124_v32, 2  ;;  %v6260_v39 = vld [vmem:[%s10723_s3 + $0x528] sm:$0xff]  ;;  %v6277_v31 = vld [vmem:[%s10723_s3 + $0x5b0] sm:$0xff] }
 0x351   : > { %4844 = vmatmul.mubr.f32.vlgmr.msra.gmra.mrb[4].mxu1 %v10127_v26 }
 0x352   : > { %6733 = vmatpush3.bf16.msra.mxu1 %v6732_v33  ;;  %5061 = vmatprep.mubr.f32.mxu1 %v4922_v40  ;;  %v6190_v33 = vld [vmem:[%s10723_s3 + $0x2f8] sm:$0xff]  ;;  %v6221_v40 = vld [vmem:[%s10723_s3 + $0x3f0] sm:$0xff] }
 0x353   : > { %6735 = vmatprep.subr.bf16.mxu1 %v6734_v51  ;;  %6705 = vmatpush3.bf16.msra.mxu0 %v6704_v36  ;;  %v6752_v51 = vpack.c.bf16 %v6202_v12, %v6201_v25  ;;  %v6754_v36 = vpack.c.bf16 %v6220_v30, %v6219_v27  ;;  %v6246_v25 = vld [vmem:[%s10723_s3 + $0x4b8] sm:$0xff]  ;;  %v6802_v27 = vpack.c.bf16 %v6276_v20, %v6275_v17  ;;  %v6259_v30 = vld [vmem:[%s10723_s3 + $0x520] sm:$0xff]  ;;  %v6268_v17 = vld [vmem:[%s10723_s3 + $0x568] sm:$0xff] }
 0x354   : > { %6707 = vmatprep.subr.bf16.mxu0 %v6706_v41  ;;  %v6726_v41 = vpack.c.bf16 %v6190_v33, %v6189_v22  ;;  %v6278_v33 = vld [vmem:[%s10723_s3 + $0x5b8] sm:$0xff] }
 0x355   : > { %v6286_v20 = vld [vmem:[%s10723_s3 + $0x5f8] sm:$0xff] }
 0x356   : > { %6737 = vmatpush3.bf16.msra.mxu1 %v6736_v47  ;;  %v6756_v47 = vpack.c.bf16 %v6204_v38, %v6203_v37  ;;  %v6248_v37 = vld [vmem:[%s10723_s3 + $0x4c8] sm:$0xff]  ;;  %v6804_v38 = vpack.c.bf16 %v6260_v39, %v6259_v30  ;;  %v6269_v30 = vld [vmem:[%s10723_s3 + $0x570] sm:$0xff]  ;;  %v6270_v39 = vld [vmem:[%s10723_s3 + $0x578] sm:$0xff] }
 0x357   : > { %6739 = vmatprep.subr.bf16.mxu1 %v6738_v34  ;;  %6709 = vmatpush3.bf16.msra.mxu0 %v6708_v42  ;;  %v6758_v34 = vpack.c.bf16 %v6222_v29, %v6221_v40  ;;  %v6728_v42 = vpack.c.bf16 %v6174_v44, %v6173_v43  ;;  %v6806_v40 = vpack.c.bf16 %v6278_v33, %v6277_v31  ;;  %v6261_v29 = vld [vmem:[%s10723_s3 + $0x530] sm:$0xff]  ;;  %v6262_v43 = vld [vmem:[%s10723_s3 + $0x538] sm:$0xff]  ;;  %v6279_v44 = vld [vmem:[%s10723_s3 + $0x5c0] sm:$0xff] }
 0x358   : > { %6711 = vmatprep.subr.bf16.mxu0 %v6710_v54  ;;  %v6762_v54 = vpack.c.bf16 %v6240_v46, %v6239_v35  ;;  %v6280_v46 = vld [vmem:[%s10723_s3 + $0x5c8] sm:$0xff]  ;;  %v6335_v31 = vld [vmem:[%s10723_s3 + $0x780] sm:$0xff] }
 0x359   : > { %v6336_v33 = vld [vmem:[%s10723_s3 + $0x788] sm:$0xff] }
 0x35a   : > { %6741 = vmatpush3.bf16.msra.mxu1 %v6740_v59  ;;  %v6760_v59 = vpack.c.bf16 %v6206_v53, %v6205_v48  ;;  %v6250_v48 = vld [vmem:[%s10723_s3 + $0x4d8] sm:$0xff]  ;;  %v6808_v53 = vpack.c.bf16 %v6262_v43, %v6261_v29  ;;  %v6319_v29 = vld [vmem:[%s10723_s3 + $0x700] sm:$0xff]  ;;  %v6320_v43 = vld [vmem:[%s10723_s3 + $0x708] sm:$0xff] }
 0x35b   : > { %6743 = vmatprep.subr.bf16.mxu1 %v6742_v60  ;;  %6713 = vmatpush3.bf16.msra.mxu0 %v6712_v61  ;;  %v6794_v60 = vpack.c.bf16 %v6272_v55, %v6271_v49  ;;  %v6764_v61 = vpack.c.bf16 %v6224_v56, %v6223_v45  ;;  %v6810_v49 = vpack.c.bf16 %v6280_v46, %v6279_v44  ;;  %v6263_v55 = vld [vmem:[%s10723_s3 + $0x540] sm:$0xff]  ;;  %v6264_v45 = vld [vmem:[%s10723_s3 + $0x548] sm:$0xff]  ;;  %v6281_v56 = vld [vmem:[%s10723_s3 + $0x5d0] sm:$0xff] }
 0x35c   : > { %6715 = vmatprep.subr.bf16.mxu0 %v6714_v1  ;;  %v4919_v1 = vrot.slane %v10104_v19, 1  ;;  %v6814_v0 = vpack.c.bf16 %v6282_v58, %v6281_v56  ;;  %v6337_v44 = vld [vmem:[%s10723_s3 + $0x790] sm:$0xff]  ;;  %v6322_v58 = vld [vmem:[%s10723_s3 + $0x718] sm:$0xff] }
 0x35e   : > { %6745 = vmatpush3.bf16.msra.mxu1 %v6744_v7  ;;  %v6244_v7 = vld [vmem:[%s10723_s3 + $0x4a8] sm:$0xff] }
 0x35f   : > { %6747 = vmatprep.subr.bf16.mxu1 %v6746_v8  ;;  %6717 = vmatpush3.bf16.msra.mxu0 %v6716_v9  ;;  %v5134_v8 = vrot.slane %v10092_v16, 2  ;;  %v6796_v9 = vpack.c.bf16 %v6256_v63, %v6255_v62  ;;  %v6770_v52 = vpack.c.bf16 %v6244_v7, %v6243_v6  ;;  %v6252_v62 = vld [vmem:[%s10723_s3 + $0x4e8] sm:$0xff]  ;;  %v6812_v63 = vpack.c.bf16 %v6264_v45, %v6263_v55  ;;  %v6235_v7 = vld [vmem:[%s10723_s3 + $0x460] sm:$0xff] }
 0x360   : > { %6719 = vmatprep.subr.bf16.mxu0 %v6718_v14  ;;  %v6257_v14 = vld [vmem:[%s10723_s3 + $0x510] sm:$0xff]  ;;  %v6284_v6 = vld [vmem:[%s10723_s3 + $0x5e8] sm:$0xff]  ;;  %v5135_v55 = vrot.slane %v10127_v26, 2 }
 0x361   : > { %v6800_v12 = vpack.c.bf16 %v6258_v15, %v6257_v14  ;;  %v6267_v15 = vld [vmem:[%s10723_s3 + $0x560] sm:$0xff] }
 0x362   : > { %6749 = vmatpush3.bf16.msra.mxu1 %v6748_v21  ;;  %v6227_v21 = vld [vmem:[%s10723_s3 + $0x420] sm:$0xff] }
 0x363   : > { %6751 = vmatprep.subr.bf16.mxu1 %v6750_v23  ;;  %6721 = vmatpush3.bf16.msra.mxu0 %v6720_v50  ;;  %v6228_v23 = vld [vmem:[%s10723_s3 + $0x428] sm:$0xff]  ;;  %v6245_v50 = vld [vmem:[%s10723_s3 + $0x4b0] sm:$0xff] }
 0x364   : > { %6723 = vmatprep.subr.bf16.mxu0 %v6722_v28  ;;  %v6772_v28 = vpack.c.bf16 %v6228_v23, %v6227_v21  ;;  %v6774_v22 = vpack.c.bf16 %v6246_v25, %v6245_v50  ;;  %v6237_v21 = vld [vmem:[%s10723_s3 + $0x470] sm:$0xff]  ;;  %v6238_v23 = vld [vmem:[%s10723_s3 + $0x478] sm:$0xff]  ;;  %v6303_v50 = vld [vmem:[%s10723_s3 + $0x680] sm:$0xff] }
 0x365   : > { %v6304_v25 = vld [vmem:[%s10723_s3 + $0x688] sm:$0xff] }
 0x366   : > { %6753 = vmatpush3.bf16.msra.mxu1 %v6752_v51  ;;  %v6229_v51 = vld [vmem:[%s10723_s3 + $0x430] sm:$0xff] }
 0x367   : > { %6755 = vmatprep.subr.bf16.mxu1 %v6754_v36  ;;  %6725 = vmatpush3.bf16.msra.mxu0 %v6724_v24  ;;  %v6230_v36 = vld [vmem:[%s10723_s3 + $0x438] sm:$0xff]  ;;  %v6247_v24 = vld [vmem:[%s10723_s3 + $0x4c0] sm:$0xff] }
 0x368   : > { %6727 = vmatprep.subr.bf16.mxu0 %v6726_v41  ;;  %v6776_v41 = vpack.c.bf16 %v6230_v36, %v6229_v51  ;;  %v6778_v35 = vpack.c.bf16 %v6248_v37, %v6247_v24  ;;  %v6287_v51 = vld [vmem:[%s10723_s3 + $0x600] sm:$0xff]  ;;  %v6288_v36 = vld [vmem:[%s10723_s3 + $0x608] sm:$0xff]  ;;  %v6305_v24 = vld [vmem:[%s10723_s3 + $0x690] sm:$0xff] }
 0x369   : > { %v6306_v37 = vld [vmem:[%s10723_s3 + $0x698] sm:$0xff] }
 0x36a   : > { %6757 = vmatpush3.bf16.msra.mxu1 %v6756_v47  ;;  %v6231_v47 = vld [vmem:[%s10723_s3 + $0x440] sm:$0xff]  ;;  %v6830_v46 = vpack.c.bf16 %v6306_v37, %v6305_v24  ;;  %v6297_v24 = vld [vmem:[%s10723_s3 + $0x650] sm:$0xff]  ;;  %v6298_v37 = vld [vmem:[%s10723_s3 + $0x658] sm:$0xff] }
 0x36b   : > { %6759 = vmatprep.subr.bf16.mxu1 %v6758_v34  ;;  %6729 = vmatpush3.bf16.msra.mxu0 %v6728_v42  ;;  %v6232_v34 = vld [vmem:[%s10723_s3 + $0x448] sm:$0xff]  ;;  %v6249_v42 = vld [vmem:[%s10723_s3 + $0x4d0] sm:$0xff] }
 0x36c   : > { %6763 = vmatprep.subr.bf16.mxu0 %v6762_v54  ;;  %v6780_v54 = vpack.c.bf16 %v6232_v34, %v6231_v47  ;;  %v6782_v57 = vpack.c.bf16 %v6250_v48, %v6249_v42  ;;  %v6338_v47 = vld [vmem:[%s10723_s3 + $0x798] sm:$0xff]  ;;  %v6289_v34 = vld [vmem:[%s10723_s3 + $0x610] sm:$0xff]  ;;  %v6307_v48 = vld [vmem:[%s10723_s3 + $0x6a0] sm:$0xff] }
 0x36d   : > { %v6290_v42 = vld [vmem:[%s10723_s3 + $0x618] sm:$0xff]  ;;  %v6862_v45 = vpack.c.bf16 %v6338_v47, %v6337_v44  ;;  %v6329_v44 = vld [vmem:[%s10723_s3 + $0x750] sm:$0xff] }
 0x36e   : > { %6761 = vmatpush3.bf16.msra.mxu1 %v6760_v59  ;;  %4992 = vmatmul.mubr.f32.vlgmr.msra.gmra.mrb[6].mxu0 %v4919_v1  ;;  %v6233_v59 = vld [vmem:[%s10723_s3 + $0x450] sm:$0xff]  ;;  %v6832_v56 = vpack.c.bf16 %v6290_v42, %v6289_v34  ;;  %v6348_v34 = vld [vmem:[%s10723_s3 + $0x7e8] sm:$0xff]  ;;  %v6299_v42 = vld [vmem:[%s10723_s3 + $0x660] sm:$0xff] }
 0x36f   : > { %6795 = vmatprep.subr.bf16.mxu1 %v6794_v60  ;;  %6765 = vmatpush3.bf16.msra.mxu0 %v6764_v61  ;;  %v6234_v60 = vld [vmem:[%s10723_s3 + $0x458] sm:$0xff]  ;;  %v6251_v61 = vld [vmem:[%s10723_s3 + $0x4e0] sm:$0xff] }
 0x370   : > { %5205 = vmatprep.mubr.f32.mxu0 %v5134_v8  ;;  %6767 = vmatprep.subr.bf16.mxu0 %v6766_v2  ;;  %v6784_v1 = vpack.c.bf16 %v6234_v60, %v6233_v59  ;;  %v6265_v2 = vld [vmem:[%s10723_s3 + $0x550] sm:$0xff]  ;;  %v6786_v5 = vpack.c.bf16 %v6252_v62, %v6251_v61  ;;  %v6236_v8 = vld [vmem:[%s10723_s3 + $0x468] sm:$0xff]  ;;  %v6339_v59 = vld [vmem:[%s10723_s3 + $0x7a0] sm:$0xff] }
 0x371   : > { %5062 = vmatmul.mubr.f32.vlgmr.msra.gmra.mrb[6].mxu1 %v4921_v10  ;;  %v6254_v10 = vld [vmem:[%s10723_s3 + $0x4f8] sm:$0xff]  ;;  %v6788_v14 = vpack.c.bf16 %v6236_v8, %v6235_v7  ;;  %v6340_v61 = vld [vmem:[%s10723_s3 + $0x7a8] sm:$0xff]  ;;  %v6291_v62 = vld [vmem:[%s10723_s3 + $0x620] sm:$0xff] }
 0x372   : > { %6797 = vmatpush3.bf16.msra.mxu1 %v6796_v9  ;;  %5275 = vmatprep.mubr.f32.mxu1 %v5136_v18  ;;  %v6253_v9 = vld [vmem:[%s10723_s3 + $0x4f0] sm:$0xff]  ;;  %v6342_v8 = vld [vmem:[%s10723_s3 + $0x7b8] sm:$0xff] }
 0x373   : > { %6799 = vmatprep.subr.bf16.mxu1 %v6798_v11  ;;  %6769 = vmatpush3.bf16.msra.mxu0 %v6768_v13  ;;  %v6816_v11 = vpack.c.bf16 %v6266_v3, %v6265_v2  ;;  %v6818_v13 = vpack.c.bf16 %v6284_v6, %v6283_v4  ;;  %v6285_v18 = vld [vmem:[%s10723_s3 + $0x5f0] sm:$0xff]  ;;  %v6866_v2 = vpack.c.bf16 %v6340_v61, %v6339_v59  ;;  %v6323_v4 = vld [vmem:[%s10723_s3 + $0x720] sm:$0xff]  ;;  %v6302_v61 = vld [vmem:[%s10723_s3 + $0x678] sm:$0xff] }
 0x374   : > { %6771 = vmatprep.subr.bf16.mxu0 %v6770_v52  ;;  %v6790_v52 = vpack.c.bf16 %v6254_v10, %v6253_v9  ;;  %v6341_v6 = vld [vmem:[%s10723_s3 + $0x7b0] sm:$0xff]  ;;  %v6294_v10 = vld [vmem:[%s10723_s3 + $0x638] sm:$0xff] }
 0x375   : > { %v6293_v9 = vld [vmem:[%s10723_s3 + $0x630] sm:$0xff] }
 0x376   : > { %6801 = vmatpush3.bf16.msra.mxu1 %v6800_v12  ;;  %v6820_v12 = vpack.c.bf16 %v6268_v17, %v6267_v15  ;;  %v6870_v15 = vpack.c.bf16 %v6342_v8, %v6341_v6  ;;  %v6840_v17 = vpack.c.bf16 %v6294_v10, %v6293_v9 }
 0x377   : > { %6803 = vmatprep.subr.bf16.mxu1 %v6802_v27  ;;  %6773 = vmatpush3.bf16.msra.mxu0 %v6772_v28  ;;  %v6822_v27 = vpack.c.bf16 %v6286_v20, %v6285_v18  ;;  %v6792_v28 = vpack.c.bf16 %v6238_v23, %v6237_v21  ;;  %v6325_v18 = vld [vmem:[%s10723_s3 + $0x730] sm:$0xff]  ;;  %v6343_v20 = vld [vmem:[%s10723_s3 + $0x7c0] sm:$0xff]  ;;  %v6344_v23 = vld [vmem:[%s10723_s3 + $0x7c8] sm:$0xff] }
 0x378   : > { %6775 = vmatprep.subr.bf16.mxu0 %v6774_v22  ;;  %v6826_v22 = vpack.c.bf16 %v6304_v25, %v6303_v50  ;;  %v6295_v50 = vld [vmem:[%s10723_s3 + $0x640] sm:$0xff]  ;;  %v6296_v25 = vld [vmem:[%s10723_s3 + $0x648] sm:$0xff] }
 0x37a   : > { %6805 = vmatpush3.bf16.msra.mxu1 %v6804_v38  ;;  %v6824_v38 = vpack.c.bf16 %v6270_v39, %v6269_v30  ;;  %v6874_v30 = vpack.c.bf16 %v6344_v23, %v6343_v20  ;;  %v6844_v39 = vpack.c.bf16 %v6296_v25, %v6295_v50 }
 0x37b   : > { %6807 = vmatprep.subr.bf16.mxu1 %v6806_v40  ;;  %6777 = vmatpush3.bf16.msra.mxu0 %v6776_v41  ;;  %v6858_v40 = vpack.c.bf16 %v6336_v33, %v6335_v31  ;;  %v6828_v41 = vpack.c.bf16 %v6288_v36, %v6287_v51  ;;  %v6327_v31 = vld [vmem:[%s10723_s3 + $0x740] sm:$0xff]  ;;  %v6345_v33 = vld [vmem:[%s10723_s3 + $0x7d0] sm:$0xff]  ;;  %v6346_v36 = vld [vmem:[%s10723_s3 + $0x7d8] sm:$0xff] }
 0x37c   : > { %6779 = vmatprep.subr.bf16.mxu0 %v6778_v35  ;;  %v5133_v35 = vrot.slane %v10104_v19, 2 }
 0x37e   : > { %6809 = vmatpush3.bf16.msra.mxu1 %v6808_v53  ;;  %v6308_v53 = vld [vmem:[%s10723_s3 + $0x6a8] sm:$0xff] }
 0x37f   : > { %6811 = vmatprep.subr.bf16.mxu1 %v6810_v49  ;;  %6781 = vmatpush3.bf16.msra.mxu0 %v6780_v54  ;;  %v5348_v49 = vrot.slane %v10092_v16, 3  ;;  %v6860_v54 = vpack.c.bf16 %v6320_v43, %v6319_v29  ;;  %v5350_v16 = vrot.slane %v10124_v32, 3  ;;  %v6834_v60 = vpack.c.bf16 %v6308_v53, %v6307_v48  ;;  %v6310_v32 = vld [vmem:[%s10723_s3 + $0x6b8] sm:$0xff]  ;;  %v6300_v48 = vld [vmem:[%s10723_s3 + $0x668] sm:$0xff]  ;;  %v6317_v53 = vld [vmem:[%s10723_s3 + $0x6f0] sm:$0xff] }
 0x380   : > { %6783 = vmatprep.subr.bf16.mxu0 %v6782_v57  ;;  %v6321_v57 = vld [vmem:[%s10723_s3 + $0x710] sm:$0xff]  ;;  %v6878_v29 = vpack.c.bf16 %v6346_v36, %v6345_v33  ;;  %v6848_v43 = vpack.c.bf16 %v6298_v37, %v6297_v24 }
 0x382   : > { %6813 = vmatpush3.bf16.msra.mxu1 %v6812_v63  ;;  %v6292_v63 = vld [vmem:[%s10723_s3 + $0x628] sm:$0xff] }
 0x383   : > { %6815 = vmatprep.subr.bf16.mxu1 %v6814_v0  ;;  %6785 = vmatpush3.bf16.msra.mxu0 %v6784_v1  ;;  %v6309_v0 = vld [vmem:[%s10723_s3 + $0x6b0] sm:$0xff]  ;;  %v6864_v1 = vpack.c.bf16 %v6322_v58, %v6321_v57  ;;  %v6836_v3 = vpack.c.bf16 %v6292_v63, %v6291_v62  ;;  %v6332_v57 = vld [vmem:[%s10723_s3 + $0x768] sm:$0xff] }
 0x384   : > { %6787 = vmatprep.subr.bf16.mxu0 %v6786_v5  ;;  %v6324_v5 = vld [vmem:[%s10723_s3 + $0x728] sm:$0xff]  ;;  %v6838_v7 = vpack.c.bf16 %v6310_v32, %v6309_v0  ;;  %v6349_v58 = vld [vmem:[%s10723_s3 + $0x7f0] sm:$0xff] }
 0x385   : > { %v6333_v32 = vld [vmem:[%s10723_s3 + $0x770] sm:$0xff] }
 0x386   : > { %6817 = vmatpush3.bf16.msra.mxu1 %v6816_v11  ;;  %v6311_v11 = vld [vmem:[%s10723_s3 + $0x6c0] sm:$0xff] }
 0x387   : > { %6819 = vmatprep.subr.bf16.mxu1 %v6818_v13  ;;  %6789 = vmatpush3.bf16.msra.mxu0 %v6788_v14  ;;  %v6312_v13 = vld [vmem:[%s10723_s3 + $0x6c8] sm:$0xff]  ;;  %v6868_v14 = vpack.c.bf16 %v6324_v5, %v6323_v4  ;;  %v5349_v4 = vrot.slane %v10127_v26, 3 }
 0x388   : > { %6791 = vmatprep.subr.bf16.mxu0 %v6790_v52  ;;  %v6326_v52 = vld [vmem:[%s10723_s3 + $0x738] sm:$0xff]  ;;  %v6842_v21 = vpack.c.bf16 %v6312_v13, %v6311_v11 }
 0x38a   : > { %6821 = vmatpush3.bf16.msra.mxu1 %v6820_v12  ;;  %v6313_v12 = vld [vmem:[%s10723_s3 + $0x6d0] sm:$0xff] }
 0x38b   : > { %6823 = vmatprep.subr.bf16.mxu1 %v6822_v27  ;;  %6793 = vmatpush3.bf16.msra.mxu0 %v6792_v28  ;;  %v6314_v27 = vld [vmem:[%s10723_s3 + $0x6d8] sm:$0xff]  ;;  %v6872_v28 = vpack.c.bf16 %v6326_v52, %v6325_v18 }
 0x38c   : > { %6827 = vmatprep.subr.bf16.mxu0 %v6826_v22  ;;  %v6328_v22 = vld [vmem:[%s10723_s3 + $0x748] sm:$0xff]  ;;  %v6846_v51 = vpack.c.bf16 %v6314_v27, %v6313_v12 }
 0x38e   : > { %6825 = vmatpush3.bf16.msra.mxu1 %v6824_v38  ;;  %5206 = vmatmul.mubr.f32.vlgmr.msra.gmra.mrb[8].mxu0 %v5133_v35  ;;  %v6315_v38 = vld [vmem:[%s10723_s3 + $0x6e0] sm:$0xff]  ;;  %v6330_v35 = vld [vmem:[%s10723_s3 + $0x758] sm:$0xff] }
 0x38f   : > { %6859 = vmatprep.subr.bf16.mxu1 %v6858_v40  ;;  %6829 = vmatpush3.bf16.msra.mxu0 %v6828_v41  ;;  %v6316_v40 = vld [vmem:[%s10723_s3 + $0x6e8] sm:$0xff]  ;;  %v6876_v41 = vpack.c.bf16 %v6328_v22, %v6327_v31 }
 0x390   : > { %5419 = vmatprep.mubr.f32.mxu0 %v5348_v49  ;;  %6831 = vmatprep.subr.bf16.mxu0 %v6830_v46  ;;  %v6347_v46 = vld [vmem:[%s10723_s3 + $0x7e0] sm:$0xff]  ;;  %v6850_v47 = vpack.c.bf16 %v6316_v40, %v6315_v38  ;;  %v6318_v49 = vld [vmem:[%s10723_s3 + $0x6f8] sm:$0xff] }
 0x391   : > { %5276 = vmatmul.mubr.f32.vlgmr.msra.gmra.mrb[8].mxu1 %v5135_v55  ;;  %v6882_v55 = vpack.c.bf16 %v6348_v34, %v6347_v46  ;;  %v6854_v59 = vpack.c.bf16 %v6318_v49, %v6317_v53 }
 0x392   : > { %6861 = vmatpush3.bf16.msra.mxu1 %v6860_v54  ;;  %5489 = vmatprep.mubr.f32.mxu1 %v5350_v16  ;;  %v6880_v54 = vpack.c.bf16 %v6330_v35, %v6329_v44  ;;  %v6350_v16 = vld [vmem:[%s10723_s3 + $0x7f8] sm:$0xff] }
 0x393   : > { %6863 = vmatprep.subr.bf16.mxu1 %v6862_v45  ;;  %6833 = vmatpush3.bf16.msra.mxu0 %v6832_v56  ;;  %v6852_v45 = vpack.c.bf16 %v6300_v48, %v6299_v42  ;;  %v6331_v56 = vld [vmem:[%s10723_s3 + $0x760] sm:$0xff]  ;;  %v6886_v63 = vpack.c.bf16 %v6350_v16, %v6349_v58 }
 0x394   : > { %6835 = vmatprep.subr.bf16.mxu0 %v6834_v60  ;;  %v6301_v60 = vld [vmem:[%s10723_s3 + $0x670] sm:$0xff]  ;;  %v6884_v62 = vpack.c.bf16 %v6332_v57, %v6331_v56 }
 0x395   : > { %v6856_v0 = vpack.c.bf16 %v6302_v61, %v6301_v60 }
 0x396   : > { %6865 = vmatpush3.bf16.msra.mxu1 %v6864_v1  ;;  %v6334_v1 = vld [vmem:[%s10723_s3 + $0x778] sm:$0xff] }
 0x397   : > { %6867 = vmatprep.subr.bf16.mxu1 %v6866_v2  ;;  %6837 = vmatpush3.bf16.msra.mxu0 %v6836_v3  ;;  %v6888_v2 = vpack.c.bf16 %v6334_v1, %v6333_v32  ;;  %v5347_v3 = vrot.slane %v10104_v19, 3  ;;  %v4644_v19 = vld [vmem:[%s10724_s4] sm:$0x1] }
 0x398   : > { %6839 = vmatprep.subr.bf16.mxu0 %v6838_v7 }
 0x39a   : > { %6869 = vmatpush3.bf16.msra.mxu1 %v6868_v14 }
 0x39b   : > { %6871 = vmatprep.subr.bf16.mxu1 %v6870_v15  ;;  %6841 = vmatpush3.bf16.msra.mxu0 %v6840_v17 }
 0x39c   : > { %6843 = vmatprep.subr.bf16.mxu0 %v6842_v21 }
 0x39e   : > { %6873 = vmatpush3.bf16.msra.mxu1 %v6872_v28 }
 0x39f   : > { %6875 = vmatprep.subr.bf16.mxu1 %v6874_v30  ;;  %6845 = vmatpush3.bf16.msra.mxu0 %v6844_v39 }
 0x3a0   : > { %6847 = vmatprep.subr.bf16.mxu0 %v6846_v51 }
 0x3a2   : > { %6877 = vmatpush3.bf16.msra.mxu1 %v6876_v41 }
 0x3a3   : > { %6879 = vmatprep.subr.bf16.mxu1 %v6878_v29  ;;  %6849 = vmatpush3.bf16.msra.mxu0 %v6848_v43 }
 0x3a4   : > { %6851 = vmatprep.subr.bf16.mxu0 %v6850_v47 }
 0x3a6   : > { %6881 = vmatpush3.bf16.msra.mxu1 %v6880_v54 }
 0x3a7   : > { %6883 = vmatprep.subr.bf16.mxu1 %v6882_v55  ;;  %6853 = vmatpush3.bf16.msra.mxu0 %v6852_v45 }
 0x3a8   : > { %6855 = vmatprep.subr.bf16.mxu0 %v6854_v59 }
 0x3aa   : > { %6885 = vmatpush3.bf16.msra.mxu1 %v6884_v62 }
 0x3ab   : > { %6887 = vmatprep.subr.bf16.mxu1 %v6886_v63  ;;  %6857 = vmatpush3.bf16.msra.mxu0 %v6856_v0 }
 0x3ae   : > { %6889 = vmatpush3.bf16.msra.mxu1 %v6888_v2  ;;  %5420 = vmatmul.mubr.f32.vlgmr.msra.gmra.mrb[10].mxu0 %v5347_v3 }
 0x3b1   : > { %5490 = vmatmul.mubr.f32.vlgmr.msra.gmra.mrb[10].mxu1 %v5349_v4 }
 0x421   : > { %v6386_v5 = vpop.f32.mrb[4].mxu0 }
 0x422   : > { %v6387_v6 = vpop.f32.mrb[5].mxu0 }
 0x423   : > { %v6388_v7 = vadd.f32 %v6387_v6, %v6386_v5 }
 0x424   : > { %v6421_v8 = vpop.f32.mrb[4].mxu1 }
 0x425   : > { %v6422_v9 = vpop.f32.mrb[5].mxu1 }
 0x426   : > { %v6423_v10 = vadd.f32 %v6422_v9, %v6421_v8 }
 0x428   : > { %v4846_v11 = vadd.f32 %v6423_v10, %v6388_v7 }
 0x42a   : > { %v4849_v20 = vadd.f32 %v4846_v11, %v4644_v19 }
 0x441   : > { %v6456_v13 = vpop.f32.mrb[6].mxu0 }
 0x442   : > { %v6457_v14 = vpop.f32.mrb[7].mxu0 }
 0x443   : > { %v6458_v15 = vadd.f32 %v6457_v14, %v6456_v13 }
 0x444   : > { %v6491_v17 = vpop.f32.mrb[6].mxu1 }
 0x445   : > { %v6492_v18 = vpop.f32.mrb[7].mxu1 }
 0x446   : > { %v6493_v52 = vadd.f32 %v6492_v18, %v6491_v17 }
 0x448   : > { %v5064_v26 = vadd.f32 %v6493_v52, %v6458_v15 }
 0x44a   : > { %v5067_v21 = vadd.f32 %v5064_v26, %v4849_v20 }
 0x461   : > { %v6526_v23 = vpop.f32.mrb[8].mxu0 }
 0x462   : > { %v6527_v50 = vpop.f32.mrb[9].mxu0 }
 0x463   : > { %v6528_v25 = vadd.f32 %v6527_v50, %v6526_v23 }
 0x464   : > { %v6561_v12 = vpop.f32.mrb[8].mxu1 }
 0x465   : > { %v6562_v27 = vpop.f32.mrb[9].mxu1 }
 0x466   : > { %v6563_v28 = vadd.f32 %v6562_v27, %v6561_v12 }
 0x468   : > { %v5278_v30 = vadd.f32 %v6563_v28, %v6528_v25 }
 0x46a   : > { %v5281_v39 = vadd.f32 %v5278_v30, %v5067_v21 }
 0x481   : > { %v6596_v31 = vpop.f32.mrb[10].mxu0 }
 0x482   : > { %v6597_v22 = vpop.f32.mrb[11].mxu0 }
 0x483   : > { %v6598_v33 = vadd.f32 %v6597_v22, %v6596_v31 }
 0x484   : > { %v6631_v51 = vpop.f32.mrb[10].mxu1 }
 0x485   : > { %v6632_v36 = vpop.f32.mrb[11].mxu1 }
 0x486   : > { %v6633_v24 = vadd.f32 %v6632_v36, %v6631_v51 }
 0x488   : > { %v5492_v37 = vadd.f32 %v6633_v24, %v6598_v33 }
 0x48a   : > { %v5495_v38 = vadd.f32 %v5492_v37, %v5281_v39 }
 0x48c   : > { %v5497_v40 = vsel %vm5496_vm1, %v5495_v38, -inf }
 0x48d   : > { %5498 = vmax.xlane.f32.xlu0 %v5497_v40 }
 0x51a   : > { %v5499_v41 = vpop.xlane.xlu0 %5498 }
 0x51b   : > { %v5500_v29 = vsub.f32 %v5495_v38, %v5499_v41 }
 0x51d   : > { %v5501_v43 = vmul.f32 1.442695, %v5500_v29 }
 0x51f   : > { %7875 = vpow2.f32 %v5501_v43 }
 0x529   : > { %v7876_v44 = vpop.eup %7875 }
 0x52a   : > { %v5503_v35 = vsel %vm5496_vm1, %v7876_v44, 0.0 }
 0x52b   : > { %5504 = vadd.xlane.f32.xlu0 %v5503_v35 }
 0x5b8   : > { %v5505_v46 = vpop.xlane.xlu0 %5504 }
 0x5b9   : > { %7877 = vrcp.f32 %v5505_v46 }
 0x5c3   : > { %v7878_v47 = vpop.eup %7877 }
 0x5c4   : > { %v5507_v34 = vmul.f32 %v7878_v47, %v7876_v44 }
 0x5c6   : > { %5508 = vst [vmem:[%s216_s14] sm:$0x1] %v5507_v34 }
 0x5c7   : > { %7892 = shalt.err (!%p7889_p3)
}
 0x5c8   : > { %s7893_s26 = scalar_lea.hbm %s10678_s25, 16  ;;  %s7897_s10 = scalar_lea.hbm %s10725_s5, 32 }
 0x5c9   : > { %p7894_p4 = scmp.ne.s32.totalorder %s10678_s25, %s7893_s26  ;;  %p7898_p9 = scmp.lt.u32.totalorder %s10678_s25, %s10725_s5 }
 0x5ca   : > { %p7899_p10 = scmp.lt.u32.totalorder %s7897_s10, %s7893_s26  ;;  %p7901_p12 = scmp.lt.u32.totalorder %s7893_s26, %s10678_s25 }
 0x5cb   : > { %p7895_p7 = pnand %p7894_p4, %p8013_p5 }
 0x5cc   : > { %p7900_p11 = por %p7899_p10, %p7898_p9 }
 0x5cd   : > { %p7896_p8 = pneg %p7895_p7 }
 0x5ce   : > { %p7902_p13 = por %p7901_p12, %p7900_p11 }
 0x5d0   : > { %p7903_p0 = pnand %p7902_p13, %p7896_p8 }
 0x5d2   : > { %7906 = shalt.err (!%p7903_p0)
}
 0x5d3   : > { %6959 = dma.vmem_to_hbm [thread:$0]  (%p8013_p5), %s10680_s15, 16, %s10678_s25, %s5510_s30  }
 0x5d4 PF: > { %p6965_p1 = scmp.ge.s32.totalorder %s7941_s21, 2  ;;  %s5534_s13 = sand.u32 1, %s7929_s18  }
 0x5d5   : > { %s5535_s14 = scalar_lea.sflag [#allocation3], %s5534_s13 }
 0x5d6   : > { %p6962_p2 = pnand %p6965_p1, %p8017_p6 }
 0x5d8   : > { %7924 = dma.done.wait (!%p6962_p2), %s5535_s14, 16  }
 0x5d9   : > { %7926 = vsyncadd (!%p6962_p2), %s5535_s14, 4294967280  ;;  %p15_p3 = scmp.ge.s32.totalorder %s8000_s24, 4   ;;  %s10728_s18 = smov %s7933_s19 }
 0x5da   : > { %s10729_s19 = smov %s7937_s20  ;;  %s10730_s20 = smov %s8011_s27 }
 0x5db   : > { %s10731_s21 = smov %s8000_s24  ;;  %17 = sbr.rel (!%p15_p3) target bundleno = 3 (0x3), region = 78 }
 0x5e2   :  { %5539 = vsyncpa [#allocation3], 1 }
 0x5e3   :  { %5541 = vsyncpa [#allocation3 + $0x1], 1 }

</bundles_post_ra>
